<compile_context>
chip_gen: v7x
topology: tpu7x:2x2x1
jax: 0.10.0
libtpu: 0.0.40
codegen_flags: <defaults>
</compile_context>

<pallas_src>
import functools
import math

import jax
import jax.numpy as jnp
from jax.experimental import pallas as pl
from jax.experimental.pallas import tpu as pltpu


def _round_up(x, m):
    return (x + m - 1) // m * m


def _vmem_limit_bytes():
    """~3/4 of this generation's physical VMEM (96 MiB v5e/v6e, 48 MiB v7x)."""
    try:
        cap = int(pltpu.get_tpu_info().vmem_capacity_bytes)
    except Exception:
        cap = 128 << 20
    return cap * 3 // 4


def _pick_row_tile(H, W, th_cap):
    """Largest divisor TH of H with TH <= th_cap and a legal output block
    ((TH*W) % 8 == 0 or TH == H), preferring MXU/bf16-friendly TH*W
    (multiple of 256, then 16, then 8)."""
    cand = [d for d in range(1, H + 1)
            if H % d == 0 and d <= th_cap and ((d * W) % 8 == 0 or d == H)]
    if not cand:
        raise ValueError(
            f"Could not pick a row tile for H={H}, W={W} within the VMEM "
            f"budget (max rows per tile = {th_cap}); pass row_tile= explicitly.")
    for align in (256, 16, 8, 1):
        aligned = [d for d in cand if (d * W) % align == 0]
        if aligned:
            return max(aligned)
    return max(cand)


# ---------------------------------------------------------------------------
# Shared in-kernel pieces
# ---------------------------------------------------------------------------
def _build_modulated_weight(inv_ref, s_ref, w_ref, wcol_ref, *, b, rt,
                            C_pad, O_pad, K, demodulate):
    """wcol <- bf16(w*s (+ inv)).  wcol is scratch (persists across grid steps)
    and depends only on the sample b, so build it once per sample (rt == 0)."""

    @pl.when(rt == 0)
    def _():
        # Hoisted lane-broadcast of the per-channel style (JAX does not CSE
        # broadcast_in_dim; one broadcast instead of K*K).
        s_b = jnp.broadcast_to(s_ref[0], (C_pad, O_pad))        # (C_pad, O_pad) f32
        inv_b = inv_ref[b] if demodulate else None
        for t in range(K * K):                                  # static unroll
            wm = w_ref[t] * s_b                                 # (C_pad, O_pad) f32
            if demodulate:
                wm = wm + inv_b                                 # module's additive demod
            wcol_ref[pl.ds(t * C_pad, C_pad), :] = wm.astype(jnp.bfloat16)


def _im2col_matmul(load_x, o_ref, xcol_ref, wcol_ref, *,
                   W, C_pad, O_pad, K, TH, n_splits):
    """Per half of the row tile: build im2col (plain slice-to-slice bf16 copies
    into a 3-D scratch, no reshape on the store path), then one MXU matmul.
    Splitting lets half h+1's im2col vld/vst co-issue with half h's MXU work."""
    KKC = K * K * C_pad
    THh = TH // n_splits
    for h in range(n_splits):
        r0 = h * THh
        for ki in range(K):
            for kj in range(K):
                t = ki * K + kj
                xcol_ref[pl.ds(r0, THh), :, pl.ds(t * C_pad, C_pad)] = \
                    load_x(r0 + ki, THh, kj)                    # (THh, W, C_pad)
        # Single reshape of the *contiguous* scratch when feeding the MXU.
        xh = xcol_ref[pl.ds(r0, THh), :, :].reshape(THh * W, KKC)
        o_ref[0, pl.ds(r0 * W, THh * W), :] = jnp.dot(
            xh, wcol_ref[...],
            preferred_element_type=jnp.float32).astype(o_ref.dtype)


# ---------------------------------------------------------------------------
# Kernel bodies
# ---------------------------------------------------------------------------
def _conv2d_modulate_kernel_resident(inv_ref, x_ref, s_ref, w_ref, o_ref,
                                     xcol_ref, wcol_ref, *,
                                     W, C_pad, O_pad, K, TH, n_splits, demodulate):
    """x block = whole padded image, resident in VMEM across row tiles."""
    b = pl.program_id(0)
    rt = pl.program_id(1)
    row0 = rt * TH
    if TH % 8 == 0:
        row0 = pl.multiple_of(row0, 8)

    _build_modulated_weight(inv_ref, s_ref, w_ref, wcol_ref, b=b, rt=rt,
                            C_pad=C_pad, O_pad=O_pad, K=K, demodulate=demodulate)

    def load_x(r, n, kj):
        return x_ref[0, pl.ds(row0 + r, n), pl.ds(kj, W), :]

    _im2col_matmul(load_x, o_ref, xcol_ref, wcol_ref,
                   W=W, C_pad=C_pad, O_pad=O_pad, K=K, TH=TH, n_splits=n_splits)


def _conv2d_modulate_kernel_slab(inv_ref, x_hbm, s_ref, w_ref, o_ref,
                                 xbuf_ref, dma_sem, xcol_ref, wcol_ref, *,
                                 W, C_pad, O_pad, K, TH, RT, pad, n_splits,
                                 demodulate):
    """x stays in HBM (pl.ANY); a halo'd slab of TH + 2*pad padded rows is
    manually double-buffered across row tiles (keeps the VMEM footprint
    O(row tile) instead of O(full image) — needed on v7x at large C/H)."""
    b = pl.program_id(0)
    rt = pl.program_id(1)
    nslab = TH + 2 * pad
    slot = rt % 2

    def _start(rt_i, sl):
        pltpu.make_async_copy(x_hbm.at[b, pl.ds(rt_i * TH, nslab), :, :],
                              xbuf_ref.at[sl], dma_sem.at[sl]).start()

    @pl.when(rt == 0)                       # first slab of each sample
    def _():
        _start(0, 0)

    pltpu.make_async_copy(x_hbm.at[b, pl.ds(0, nslab), :, :],
                          xbuf_ref.at[slot], dma_sem.at[slot]).wait()

    @pl.when(rt + 1 < RT)                   # prefetch next row tile's slab
    def _():
        _start(rt + 1, 1 - slot)

    _build_modulated_weight(inv_ref, s_ref, w_ref, wcol_ref, b=b, rt=rt,
                            C_pad=C_pad, O_pad=O_pad, K=K, demodulate=demodulate)

    def load_x(r, n, kj):
        return xbuf_ref[slot, pl.ds(r, n), pl.ds(kj, W), :]

    _im2col_matmul(load_x, o_ref, xcol_ref, wcol_ref,
                   W=W, C_pad=C_pad, O_pad=O_pad, K=K, TH=TH, n_splits=n_splits)


# ---------------------------------------------------------------------------
# Wrapper
# ---------------------------------------------------------------------------
def conv2d_modulate(x_nchw, s, weight, *, demodulate=True, eps=1e-8,
                    row_tile=None, x_mode=None):
    """x_nchw: (B, C, H, W); s: (B, C); weight: raw EqualizedWeight param
    (O, C, K, K).  Returns (B, O, H, W) float32, matching the PyTorch module
    (grouped conv with per-sample modulated weights and the module's additive
    demodulation)."""
    B, C, H, W = x_nchw.shape
    O, _, K, _ = weight.shape
    pad = (K - 1) // 2
    Hp, Wp = H + 2 * pad, W + 2 * pad

    # Lane-dense padding of the channel dims (MXU contraction / N alignment).
    C_pad = _round_up(C, 128)
    O_pad = _round_up(O, 128)

    vmem_limit = _vmem_limit_bytes()
    usable = int(vmem_limit * 0.85)              # headroom for compiler temps

    x_img_bytes = Hp * Wp * C_pad * 2            # bf16 full padded-image block
    w_bytes = K * K * C_pad * O_pad * 4          # f32 weight block
    wcol_bytes = K * K * C_pad * O_pad * 2       # bf16 modulated-weight scratch
    fixed = 2 * w_bytes + wcol_bytes             # conservative (2-buf weight fallback)

    # x handling: full padded image resident in VMEM across row tiles, or a
    # manually double-buffered halo'd row slab when the image does not fit.
    if x_mode is None:
        x_mode = "resident" if 2 * x_img_bytes + fixed <= usable // 2 else "slab"
    if x_mode not in ("resident", "slab"):
        raise ValueError(f"x_mode must be 'resident' or 'slab', got {x_mode!r}")

    # VMEM cost per output row (W pixels): im2col + double-buffered f32 out.
    per_row = W * (K * K * C_pad * 2 + 2 * O_pad * 4)
    if x_mode == "resident":
        fixed += 2 * x_img_bytes
    else:
        per_row += 2 * Wp * C_pad * 2            # two x-slab slots, bf16
        fixed += 2 * (2 * pad) * Wp * C_pad * 2  # halo rows of both slots

    rows_cap = 2048 if vmem_limit >= (72 << 20) else 1024   # v5e/v6e vs v7x
    th_cap = min(H,
                 max(1, rows_cap // max(W, 1)),
                 max(0, (usable - fixed) // per_row))

    if row_tile is not None:
        TH = int(row_tile)
        if H % TH != 0 or not ((TH * W) % 8 == 0 or TH == H):
            raise ValueError(f"row_tile={TH} must divide H={H} with TH*W a "
                             f"multiple of 8 (or TH == H)")
    else:
        TH = _pick_row_tile(H, W, th_cap)
    RT = H // TH

    # Split the tile in two and interleave im2col / matmul when possible.
    n_splits = 2 if (TH % 2 == 0 and ((TH // 2) * W) % 8 == 0) else 1

    # ---- EqualizedWeight forward + hoisted per-sample demod scalar ----
    c_scale = 1.0 / math.sqrt(C * K * K)
    w_eff = weight.astype(jnp.float32) * c_scale                 # (O, C, K, K)
    s32 = s.astype(jnp.float32)
    if demodulate:
        w2 = jnp.sum(w_eff * w_eff, axis=(0, 2, 3))              # (C,)
        inv = jax.lax.rsqrt(jnp.sum(s32 * s32 * w2[None, :], axis=1) + eps)  # (B,)
    else:
        inv = jnp.zeros((B,), jnp.float32)

    # Tap-major zero-padded weight (K*K, C_pad, O_pad); f32 for in-kernel
    # modulation math (cast to bf16 only after modulation).
    w_t = jnp.transpose(w_eff, (2, 3, 1, 0)).reshape(K * K, C, O)
    w_kernel = jnp.pad(w_t, ((0, 0), (0, C_pad - C), (0, O_pad - O)))

    # NCHW -> zero-padded NHWC, bf16 in HBM (halves DMA + x VMEM).
    x_nhwc = jnp.transpose(x_nchw, (0, 2, 3, 1)).astype(jnp.bfloat16)
    x_pad = jnp.pad(x_nhwc, ((0, 0), (pad, pad), (pad, pad), (0, C_pad - C)))

    # Per-sample style column, channel-padded (padded x channels are zero, so
    # padded weight rows never contribute).
    s_col = jnp.pad(s32[:, :, None], ((0, 0), (0, C_pad - C), (0, 0)))

    s_spec = pl.BlockSpec((1, C_pad, 1), lambda b, rt, inv_s: (b, 0, 0))
    out_spec = pl.BlockSpec((1, TH * W, O_pad), lambda b, rt, inv_s: (b, rt, 0))

    if x_mode == "resident":
        kernel = functools.partial(
            _conv2d_modulate_kernel_resident,
            W=W, C_pad=C_pad, O_pad=O_pad, K=K, TH=TH,
            n_splits=n_splits, demodulate=demodulate)
        # Constant block index over rt => DMA'd once per sample, resident.
        x_spec = pl.BlockSpec((1, Hp, Wp, C_pad), lambda b, rt, inv_s: (b, 0, 0, 0))
        scratch = [
            pltpu.VMEM((TH, W, K * K * C_pad), jnp.bfloat16),    # im2col (3-D)
            pltpu.VMEM((K * K * C_pad, O_pad), jnp.bfloat16),    # modulated weight
        ]
    else:
        kernel = functools.partial(
            _conv2d_modulate_kernel_slab,
            W=W, C_pad=C_pad, O_pad=O_pad, K=K, TH=TH, RT=RT, pad=pad,
            n_splits=n_splits, demodulate=demodulate)
        x_spec = pl.BlockSpec(memory_space=pl.ANY)               # x stays in HBM
        scratch = [
            pltpu.VMEM((2, TH + 2 * pad, Wp, C_pad), jnp.bfloat16),  # halo'd slab x2
            pltpu.SemaphoreType.DMA((2,)),
            pltpu.VMEM((TH, W, K * K * C_pad), jnp.bfloat16),
            pltpu.VMEM((K * K * C_pad, O_pad), jnp.bfloat16),
        ]

    def _run(buffered_weight):
        # The weight block is batch-invariant; one pipeline buffer is enough.
        kwargs = {"pipeline_mode": pl.Buffered(1)} if buffered_weight else {}
        w_spec = pl.BlockSpec((K * K, C_pad, O_pad),
                              lambda b, rt, inv_s: (0, 0, 0), **kwargs)
        return pl.pallas_call(
            kernel,
            out_shape=jax.ShapeDtypeStruct((B, H * W, O_pad), jnp.float32),
            grid_spec=pltpu.PrefetchScalarGridSpec(
                num_scalar_prefetch=1,                 # inv -> SMEM
                grid=(B, RT),
                in_specs=[x_spec, s_spec, w_spec],
                out_specs=out_spec,
                scratch_shapes=scratch,
            ),
            compiler_params=pltpu.CompilerParams(
                # rt must stay sequential on one core (wcol built at rt==0,
                # x residency / slab prefetch across rt); b is parallel.
                dimension_semantics=("parallel", "arbitrary"),
                vmem_limit_bytes=vmem_limit,
            ),
        )(inv, x_pad, s_col, w_kernel)

    try:
        out = _run(True)
    except Exception as e:   # narrow: only pipeline_mode / buffering issues retry
        msg = str(e).lower()
        if "pipeline" not in msg and "buffer" not in msg:
            raise
        out = _run(False)

    # (B, H*W, O_pad) -> NCHW (B, O, H, W), dropping zero-padded O columns.
    # TODO(synk): emit bf16 / NHWC directly when the consumer allows (halves
    # HBM writeback and removes the wrapper transpose).
    return out.reshape(B, H, W, O_pad)[..., :O].transpose(0, 3, 1, 2)


# ---------------------------------------------------------------------------
# Plain-JAX f32 reference mirroring the PyTorch forward, for verification.
# ---------------------------------------------------------------------------
def conv2d_modulate_ref(x_nchw, s, weight, *, demodulate=True, eps=1e-8):
    B, C, H, W = x_nchw.shape
    O, _, K, _ = weight.shape
    pad = (K - 1) // 2
    c_scale = 1.0 / math.sqrt(C * K * K)
    w_eff = weight.astype(jnp.float32) * c_scale                   # (O, C, K, K)
    wm = w_eff[None] * s.astype(jnp.float32)[:, None, :, None, None]
    if demodulate:
        inv = jax.lax.rsqrt(jnp.sum(wm ** 2, axis=(1, 2, 3, 4), keepdims=True) + eps)
        wm = wm + inv
    xpad = jnp.pad(x_nchw.astype(jnp.float32),
                   ((0, 0), (0, 0), (pad, pad), (pad, pad)))
    out = jnp.zeros((B, O, H, W), jnp.float32)
    for ki in range(K):
        for kj in range(K):
            out = out + jnp.einsum('bchw,boc->bohw',
                                   xpad[:, :, ki:ki + H, kj:kj + W],
                                   wm[:, :, :, ki, kj])
    return out


if __name__ == "__main__":
    B, C_IN, C_OUT, K, H, W = 2, 4, 8, 3, 16, 16

    key = jax.random.PRNGKey(0)
    kx, ks, kw = jax.random.split(key, 3)
    x = jax.random.normal(kx, (B, C_IN, H, W), dtype=jnp.float32)   # NCHW like PyTorch
    s = jax.random.normal(ks, (B, C_IN), dtype=jnp.float32)
    weight = jax.random.normal(kw, (C_OUT, C_IN, K, K), dtype=jnp.float32)

    ref = jax.block_until_ready(
        conv2d_modulate_ref(x, s, weight, demodulate=True, eps=1e-8))

    # Exercise: auto config (single row tile, resident x), a multi-row-tile
    # resident grid (wcol built once per sample, reused across row tiles), and
    # the manual halo-slab DMA path.
    configs = (
        dict(row_tile=None, x_mode=None),
        dict(row_tile=8, x_mode="resident"),
        dict(row_tile=8, x_mode="slab"),
    )
    for cfg in configs:
        out = jax.block_until_ready(
            conv2d_modulate(x, s, weight, demodulate=True, eps=1e-8, **cfg))
        assert out.shape == (B, C_OUT, H, W), (cfg, out.shape)
        # bf16 MXU operands with f32 accumulation -> relaxed tolerance vs f32 ref
        err = float(jnp.max(jnp.abs(out - ref)))
        assert jnp.allclose(out, ref, atol=1e-1, rtol=5e-2), (cfg, err)

    print("KERNEL_OK")
</pallas_src>

<mosaic_0001>
module attributes {stable_mosaic.version = 11 : i64} {
  func.func @_conv2d_modulate_kernel_resident(%arg0: i32, %arg1: i32, %arg2: memref<2xf32, #tpu.memory_space<smem>>, %arg3: memref<1x18x18x128xbf16, #tpu.memory_space<vmem>>, %arg4: memref<1x128x1xf32, #tpu.memory_space<vmem>>, %arg5: memref<9x128x128xf32, #tpu.memory_space<vmem>>, %arg6: memref<1x256x128xf32, #tpu.memory_space<vmem>>, %arg7: memref<16x16x1152xbf16, #tpu.memory_space<vmem>>, %arg8: memref<1152x128xbf16, #tpu.memory_space<vmem>>) attributes {dimension_semantics = [#tpu.dimension_semantics<parallel>, #tpu.dimension_semantics<arbitrary>], iteration_bounds = array<i64: 2, 1>, scalar_prefetch = 1 : i64, scratch_operands = 2 : i64, tpu.core_type = #tpu.core_type<tc>, window_params = [{transform_indices = @transform_0, window_bounds = array<i64: 1, 18, 18, 128>}, {transform_indices = @transform_1, window_bounds = array<i64: 1, 128, 1>}, {pipeline_mode = #tpu.pipeline_mode<synchronous>, transform_indices = @transform_2, window_bounds = array<i64: 9, 128, 128>}, {transform_indices = @transform_3, window_bounds = array<i64: 1, 256, 128>}]} {
    %c16_i32 = arith.constant 16 : i32
    %0 = arith.muli %arg1, %c16_i32 : i32
    %1 = tpu.assume_multiple %0, 8 : i32
    %c0_i32 = arith.constant 0 : i32
    %2 = arith.cmpi eq, %arg1, %c0_i32 : i32
    %3 = arith.extui %2 : i1 to i32
    %c0_i32_0 = arith.constant 0 : i32
    %4 = arith.cmpi ne, %3, %c0_i32_0 : i32
    scf.if %4 {
      %c0_127 = arith.constant 0 : index
      %c0_128 = arith.constant 0 : index
      %c0_129 = arith.constant 0 : index
      %109 = vector.load %arg4[%c0_127, %c0_128, %c0_129] : memref<1x128x1xf32, #tpu.memory_space<vmem>>, vector<1x128x1xf32>
      %110 = vector.shape_cast %109 : vector<1x128x1xf32> to vector<128x1xf32>
      %111 = vector.shape_cast %110 : vector<128x1xf32> to vector<128x1xf32>
      %112 = vector.broadcast %111 : vector<128x1xf32> to vector<128x128xf32>
      %113 = arith.index_cast %arg0 : i32 to index
      %114 = memref.load %arg2[%113] : memref<2xf32, #tpu.memory_space<smem>>
      %c0_130 = arith.constant 0 : index
      %c0_131 = arith.constant 0 : index
      %c0_132 = arith.constant 0 : index
      %115 = vector.load %arg5[%c0_130, %c0_131, %c0_132] : memref<9x128x128xf32, #tpu.memory_space<vmem>>, vector<1x128x128xf32>
      %116 = vector.shape_cast %115 : vector<1x128x128xf32> to vector<128x128xf32>
      %117 = arith.mulf %116, %112 : vector<128x128xf32>
      %118 = vector.broadcast %114 : f32 to vector<128x128xf32>
      %119 = arith.addf %117, %118 : vector<128x128xf32>
      %120 = arith.truncf %119 : vector<128x128xf32> to vector<128x128xbf16>
      %c0_133 = arith.constant 0 : index
      %c0_134 = arith.constant 0 : index
      %121 = vector.load %arg8[%c0_133, %c0_134] : memref<1152x128xbf16, #tpu.memory_space<vmem>>, vector<128x128xbf16>
      tpu.vector_store %arg8[%c0_133, %c0_134], %120 {strides = array<i32>} : memref<1152x128xbf16, #tpu.memory_space<vmem>>, vector<128x128xbf16>,
      %c1_135 = arith.constant 1 : index
      %c0_136 = arith.constant 0 : index
      %c0_137 = arith.constant 0 : index
      %122 = vector.load %arg5[%c1_135, %c0_136, %c0_137] : memref<9x128x128xf32, #tpu.memory_space<vmem>>, vector<1x128x128xf32>
      %123 = vector.shape_cast %122 : vector<1x128x128xf32> to vector<128x128xf32>
      %124 = arith.mulf %123, %112 : vector<128x128xf32>
      %125 = vector.broadcast %114 : f32 to vector<128x128xf32>
      %126 = arith.addf %124, %125 : vector<128x128xf32>
      %127 = arith.truncf %126 : vector<128x128xf32> to vector<128x128xbf16>
      %c128_138 = arith.constant 128 : index
      %c0_139 = arith.constant 0 : index
      %128 = vector.load %arg8[%c128_138, %c0_139] : memref<1152x128xbf16, #tpu.memory_space<vmem>>, vector<128x128xbf16>
      tpu.vector_store %arg8[%c128_138, %c0_139], %127 {strides = array<i32>} : memref<1152x128xbf16, #tpu.memory_space<vmem>>, vector<128x128xbf16>,
      %c2_140 = arith.constant 2 : index
      %c0_141 = arith.constant 0 : index
      %c0_142 = arith.constant 0 : index
      %129 = vector.load %arg5[%c2_140, %c0_141, %c0_142] : memref<9x128x128xf32, #tpu.memory_space<vmem>>, vector<1x128x128xf32>
      %130 = vector.shape_cast %129 : vector<1x128x128xf32> to vector<128x128xf32>
      %131 = arith.mulf %130, %112 : vector<128x128xf32>
      %132 = vector.broadcast %114 : f32 to vector<128x128xf32>
      %133 = arith.addf %131, %132 : vector<128x128xf32>
      %134 = arith.truncf %133 : vector<128x128xf32> to vector<128x128xbf16>
      %c256_143 = arith.constant 256 : index
      %c0_144 = arith.constant 0 : index
      %135 = vector.load %arg8[%c256_143, %c0_144] : memref<1152x128xbf16, #tpu.memory_space<vmem>>, vector<128x128xbf16>
      tpu.vector_store %arg8[%c256_143, %c0_144], %134 {strides = array<i32>} : memref<1152x128xbf16, #tpu.memory_space<vmem>>, vector<128x128xbf16>,
      %c3 = arith.constant 3 : index
      %c0_145 = arith.constant 0 : index
      %c0_146 = arith.constant 0 : index
      %136 = vector.load %arg5[%c3, %c0_145, %c0_146] : memref<9x128x128xf32, #tpu.memory_space<vmem>>, vector<1x128x128xf32>
      %137 = vector.shape_cast %136 : vector<1x128x128xf32> to vector<128x128xf32>
      %138 = arith.mulf %137, %112 : vector<128x128xf32>
      %139 = vector.broadcast %114 : f32 to vector<128x128xf32>
      %140 = arith.addf %138, %139 : vector<128x128xf32>
      %141 = arith.truncf %140 : vector<128x128xf32> to vector<128x128xbf16>
      %c384_147 = arith.constant 384 : index
      %c0_148 = arith.constant 0 : index
      %142 = vector.load %arg8[%c384_147, %c0_148] : memref<1152x128xbf16, #tpu.memory_space<vmem>>, vector<128x128xbf16>
      tpu.vector_store %arg8[%c384_147, %c0_148], %141 {strides = array<i32>} : memref<1152x128xbf16, #tpu.memory_space<vmem>>, vector<128x128xbf16>,
      %c4 = arith.constant 4 : index
      %c0_149 = arith.constant 0 : index
      %c0_150 = arith.constant 0 : index
      %143 = vector.load %arg5[%c4, %c0_149, %c0_150] : memref<9x128x128xf32, #tpu.memory_space<vmem>>, vector<1x128x128xf32>
      %144 = vector.shape_cast %143 : vector<1x128x128xf32> to vector<128x128xf32>
      %145 = arith.mulf %144, %112 : vector<128x128xf32>
      %146 = vector.broadcast %114 : f32 to vector<128x128xf32>
      %147 = arith.addf %145, %146 : vector<128x128xf32>
      %148 = arith.truncf %147 : vector<128x128xf32> to vector<128x128xbf16>
      %c512_151 = arith.constant 512 : index
      %c0_152 = arith.constant 0 : index
      %149 = vector.load %arg8[%c512_151, %c0_152] : memref<1152x128xbf16, #tpu.memory_space<vmem>>, vector<128x128xbf16>
      tpu.vector_store %arg8[%c512_151, %c0_152], %148 {strides = array<i32>} : memref<1152x128xbf16, #tpu.memory_space<vmem>>, vector<128x128xbf16>,
      %c5 = arith.constant 5 : index
      %c0_153 = arith.constant 0 : index
      %c0_154 = arith.constant 0 : index
      %150 = vector.load %arg5[%c5, %c0_153, %c0_154] : memref<9x128x128xf32, #tpu.memory_space<vmem>>, vector<1x128x128xf32>
      %151 = vector.shape_cast %150 : vector<1x128x128xf32> to vector<128x128xf32>
      %152 = arith.mulf %151, %112 : vector<128x128xf32>
      %153 = vector.broadcast %114 : f32 to vector<128x128xf32>
      %154 = arith.addf %152, %153 : vector<128x128xf32>
      %155 = arith.truncf %154 : vector<128x128xf32> to vector<128x128xbf16>
      %c640_155 = arith.constant 640 : index
      %c0_156 = arith.constant 0 : index
      %156 = vector.load %arg8[%c640_155, %c0_156] : memref<1152x128xbf16, #tpu.memory_space<vmem>>, vector<128x128xbf16>
      tpu.vector_store %arg8[%c640_155, %c0_156], %155 {strides = array<i32>} : memref<1152x128xbf16, #tpu.memory_space<vmem>>, vector<128x128xbf16>,
      %c6 = arith.constant 6 : index
      %c0_157 = arith.constant 0 : index
      %c0_158 = arith.constant 0 : index
      %157 = vector.load %arg5[%c6, %c0_157, %c0_158] : memref<9x128x128xf32, #tpu.memory_space<vmem>>, vector<1x128x128xf32>
      %158 = vector.shape_cast %157 : vector<1x128x128xf32> to vector<128x128xf32>
      %159 = arith.mulf %158, %112 : vector<128x128xf32>
      %160 = vector.broadcast %114 : f32 to vector<128x128xf32>
      %161 = arith.addf %159, %160 : vector<128x128xf32>
      %162 = arith.truncf %161 : vector<128x128xf32> to vector<128x128xbf16>
      %c768_159 = arith.constant 768 : index
      %c0_160 = arith.constant 0 : index
      %163 = vector.load %arg8[%c768_159, %c0_160] : memref<1152x128xbf16, #tpu.memory_space<vmem>>, vector<128x128xbf16>
      tpu.vector_store %arg8[%c768_159, %c0_160], %162 {strides = array<i32>} : memref<1152x128xbf16, #tpu.memory_space<vmem>>, vector<128x128xbf16>,
      %c7 = arith.constant 7 : index
      %c0_161 = arith.constant 0 : index
      %c0_162 = arith.constant 0 : index
      %164 = vector.load %arg5[%c7, %c0_161, %c0_162] : memref<9x128x128xf32, #tpu.memory_space<vmem>>, vector<1x128x128xf32>
      %165 = vector.shape_cast %164 : vector<1x128x128xf32> to vector<128x128xf32>
      %166 = arith.mulf %165, %112 : vector<128x128xf32>
      %167 = vector.broadcast %114 : f32 to vector<128x128xf32>
      %168 = arith.addf %166, %167 : vector<128x128xf32>
      %169 = arith.truncf %168 : vector<128x128xf32> to vector<128x128xbf16>
      %c896_163 = arith.constant 896 : index
      %c0_164 = arith.constant 0 : index
      %170 = vector.load %arg8[%c896_163, %c0_164] : memref<1152x128xbf16, #tpu.memory_space<vmem>>, vector<128x128xbf16>
      tpu.vector_store %arg8[%c896_163, %c0_164], %169 {strides = array<i32>} : memref<1152x128xbf16, #tpu.memory_space<vmem>>, vector<128x128xbf16>,
      %c8_165 = arith.constant 8 : index
      %c0_166 = arith.constant 0 : index
      %c0_167 = arith.constant 0 : index
      %171 = vector.load %arg5[%c8_165, %c0_166, %c0_167] : memref<9x128x128xf32, #tpu.memory_space<vmem>>, vector<1x128x128xf32>
      %172 = vector.shape_cast %171 : vector<1x128x128xf32> to vector<128x128xf32>
      %173 = arith.mulf %172, %112 : vector<128x128xf32>
      %174 = vector.broadcast %114 : f32 to vector<128x128xf32>
      %175 = arith.addf %173, %174 : vector<128x128xf32>
      %176 = arith.truncf %175 : vector<128x128xf32> to vector<128x128xbf16>
      %c1024_168 = arith.constant 1024 : index
      %c0_169 = arith.constant 0 : index
      %177 = vector.load %arg8[%c1024_168, %c0_169] : memref<1152x128xbf16, #tpu.memory_space<vmem>>, vector<128x128xbf16>
      tpu.vector_store %arg8[%c1024_168, %c0_169], %176 {strides = array<i32>} : memref<1152x128xbf16, #tpu.memory_space<vmem>>, vector<128x128xbf16>,
    } else {
    }
    %c0_i32_1 = arith.constant 0 : i32
    %5 = arith.addi %1, %c0_i32_1 : i32
    %c0 = arith.constant 0 : index
    %6 = arith.index_cast %5 : i32 to index
    %c0_2 = arith.constant 0 : index
    %c0_3 = arith.constant 0 : index
    %7 = vector.load %arg3[%c0, %6, %c0_2, %c0_3] : memref<1x18x18x128xbf16, #tpu.memory_space<vmem>>, vector<1x8x16x128xbf16>
    %8 = vector.shape_cast %7 : vector<1x8x16x128xbf16> to vector<8x16x128xbf16>
    %c0_4 = arith.constant 0 : index
    %c0_5 = arith.constant 0 : index
    %c0_6 = arith.constant 0 : index
    %9 = vector.load %arg7[%c0_4, %c0_5, %c0_6] : memref<16x16x1152xbf16, #tpu.memory_space<vmem>>, vector<8x16x128xbf16>
    tpu.vector_store %arg7[%c0_4, %c0_5, %c0_6], %8 {strides = array<i32>} : memref<16x16x1152xbf16, #tpu.memory_space<vmem>>, vector<8x16x128xbf16>,
    %c0_i32_7 = arith.constant 0 : i32
    %10 = arith.addi %1, %c0_i32_7 : i32
    %c0_8 = arith.constant 0 : index
    %11 = arith.index_cast %10 : i32 to index
    %c1 = arith.constant 1 : index
    %c0_9 = arith.constant 0 : index
    %12 = vector.load %arg3[%c0_8, %11, %c1, %c0_9] : memref<1x18x18x128xbf16, #tpu.memory_space<vmem>>, vector<1x8x16x128xbf16>
    %13 = vector.shape_cast %12 : vector<1x8x16x128xbf16> to vector<8x16x128xbf16>
    %c0_10 = arith.constant 0 : index
    %c0_11 = arith.constant 0 : index
    %c128 = arith.constant 128 : index
    %14 = vector.load %arg7[%c0_10, %c0_11, %c128] : memref<16x16x1152xbf16, #tpu.memory_space<vmem>>, vector<8x16x128xbf16>
    tpu.vector_store %arg7[%c0_10, %c0_11, %c128], %13 {strides = array<i32>} : memref<16x16x1152xbf16, #tpu.memory_space<vmem>>, vector<8x16x128xbf16>,
    %c0_i32_12 = arith.constant 0 : i32
    %15 = arith.addi %1, %c0_i32_12 : i32
    %c0_13 = arith.constant 0 : index
    %16 = arith.index_cast %15 : i32 to index
    %c2 = arith.constant 2 : index
    %c0_14 = arith.constant 0 : index
    %17 = vector.load %arg3[%c0_13, %16, %c2, %c0_14] : memref<1x18x18x128xbf16, #tpu.memory_space<vmem>>, vector<1x8x16x128xbf16>
    %18 = vector.shape_cast %17 : vector<1x8x16x128xbf16> to vector<8x16x128xbf16>
    %c0_15 = arith.constant 0 : index
    %c0_16 = arith.constant 0 : index
    %c256 = arith.constant 256 : index
    %19 = vector.load %arg7[%c0_15, %c0_16, %c256] : memref<16x16x1152xbf16, #tpu.memory_space<vmem>>, vector<8x16x128xbf16>
    tpu.vector_store %arg7[%c0_15, %c0_16, %c256], %18 {strides = array<i32>} : memref<16x16x1152xbf16, #tpu.memory_space<vmem>>, vector<8x16x128xbf16>,
    %c1_i32 = arith.constant 1 : i32
    %20 = arith.addi %1, %c1_i32 : i32
    %c0_17 = arith.constant 0 : index
    %21 = arith.index_cast %20 : i32 to index
    %c0_18 = arith.constant 0 : index
    %c0_19 = arith.constant 0 : index
    %22 = vector.load %arg3[%c0_17, %21, %c0_18, %c0_19] : memref<1x18x18x128xbf16, #tpu.memory_space<vmem>>, vector<1x8x16x128xbf16>
    %23 = vector.shape_cast %22 : vector<1x8x16x128xbf16> to vector<8x16x128xbf16>
    %c0_20 = arith.constant 0 : index
    %c0_21 = arith.constant 0 : index
    %c384 = arith.constant 384 : index
    %24 = vector.load %arg7[%c0_20, %c0_21, %c384] : memref<16x16x1152xbf16, #tpu.memory_space<vmem>>, vector<8x16x128xbf16>
    tpu.vector_store %arg7[%c0_20, %c0_21, %c384], %23 {strides = array<i32>} : memref<16x16x1152xbf16, #tpu.memory_space<vmem>>, vector<8x16x128xbf16>,
    %c1_i32_22 = arith.constant 1 : i32
    %25 = arith.addi %1, %c1_i32_22 : i32
    %c0_23 = arith.constant 0 : index
    %26 = arith.index_cast %25 : i32 to index
    %c1_24 = arith.constant 1 : index
    %c0_25 = arith.constant 0 : index
    %27 = vector.load %arg3[%c0_23, %26, %c1_24, %c0_25] : memref<1x18x18x128xbf16, #tpu.memory_space<vmem>>, vector<1x8x16x128xbf16>
    %28 = vector.shape_cast %27 : vector<1x8x16x128xbf16> to vector<8x16x128xbf16>
    %c0_26 = arith.constant 0 : index
    %c0_27 = arith.constant 0 : index
    %c512 = arith.constant 512 : index
    %29 = vector.load %arg7[%c0_26, %c0_27, %c512] : memref<16x16x1152xbf16, #tpu.memory_space<vmem>>, vector<8x16x128xbf16>
    tpu.vector_store %arg7[%c0_26, %c0_27, %c512], %28 {strides = array<i32>} : memref<16x16x1152xbf16, #tpu.memory_space<vmem>>, vector<8x16x128xbf16>,
    %c1_i32_28 = arith.constant 1 : i32
    %30 = arith.addi %1, %c1_i32_28 : i32
    %c0_29 = arith.constant 0 : index
    %31 = arith.index_cast %30 : i32 to index
    %c2_30 = arith.constant 2 : index
    %c0_31 = arith.constant 0 : index
    %32 = vector.load %arg3[%c0_29, %31, %c2_30, %c0_31] : memref<1x18x18x128xbf16, #tpu.memory_space<vmem>>, vector<1x8x16x128xbf16>
    %33 = vector.shape_cast %32 : vector<1x8x16x128xbf16> to vector<8x16x128xbf16>
    %c0_32 = arith.constant 0 : index
    %c0_33 = arith.constant 0 : index
    %c640 = arith.constant 640 : index
    %34 = vector.load %arg7[%c0_32, %c0_33, %c640] : memref<16x16x1152xbf16, #tpu.memory_space<vmem>>, vector<8x16x128xbf16>
    tpu.vector_store %arg7[%c0_32, %c0_33, %c640], %33 {strides = array<i32>} : memref<16x16x1152xbf16, #tpu.memory_space<vmem>>, vector<8x16x128xbf16>,
    %c2_i32 = arith.constant 2 : i32
    %35 = arith.addi %1, %c2_i32 : i32
    %c0_34 = arith.constant 0 : index
    %36 = arith.index_cast %35 : i32 to index
    %c0_35 = arith.constant 0 : index
    %c0_36 = arith.constant 0 : index
    %37 = vector.load %arg3[%c0_34, %36, %c0_35, %c0_36] : memref<1x18x18x128xbf16, #tpu.memory_space<vmem>>, vector<1x8x16x128xbf16>
    %38 = vector.shape_cast %37 : vector<1x8x16x128xbf16> to vector<8x16x128xbf16>
    %c0_37 = arith.constant 0 : index
    %c0_38 = arith.constant 0 : index
    %c768 = arith.constant 768 : index
    %39 = vector.load %arg7[%c0_37, %c0_38, %c768] : memref<16x16x1152xbf16, #tpu.memory_space<vmem>>, vector<8x16x128xbf16>
    tpu.vector_store %arg7[%c0_37, %c0_38, %c768], %38 {strides = array<i32>} : memref<16x16x1152xbf16, #tpu.memory_space<vmem>>, vector<8x16x128xbf16>,
    %c2_i32_39 = arith.constant 2 : i32
    %40 = arith.addi %1, %c2_i32_39 : i32
    %c0_40 = arith.constant 0 : index
    %41 = arith.index_cast %40 : i32 to index
    %c1_41 = arith.constant 1 : index
    %c0_42 = arith.constant 0 : index
    %42 = vector.load %arg3[%c0_40, %41, %c1_41, %c0_42] : memref<1x18x18x128xbf16, #tpu.memory_space<vmem>>, vector<1x8x16x128xbf16>
    %43 = vector.shape_cast %42 : vector<1x8x16x128xbf16> to vector<8x16x128xbf16>
    %c0_43 = arith.constant 0 : index
    %c0_44 = arith.constant 0 : index
    %c896 = arith.constant 896 : index
    %44 = vector.load %arg7[%c0_43, %c0_44, %c896] : memref<16x16x1152xbf16, #tpu.memory_space<vmem>>, vector<8x16x128xbf16>
    tpu.vector_store %arg7[%c0_43, %c0_44, %c896], %43 {strides = array<i32>} : memref<16x16x1152xbf16, #tpu.memory_space<vmem>>, vector<8x16x128xbf16>,
    %c2_i32_45 = arith.constant 2 : i32
    %45 = arith.addi %1, %c2_i32_45 : i32
    %c0_46 = arith.constant 0 : index
    %46 = arith.index_cast %45 : i32 to index
    %c2_47 = arith.constant 2 : index
    %c0_48 = arith.constant 0 : index
    %47 = vector.load %arg3[%c0_46, %46, %c2_47, %c0_48] : memref<1x18x18x128xbf16, #tpu.memory_space<vmem>>, vector<1x8x16x128xbf16>
    %48 = vector.shape_cast %47 : vector<1x8x16x128xbf16> to vector<8x16x128xbf16>
    %c0_49 = arith.constant 0 : index
    %c0_50 = arith.constant 0 : index
    %c1024 = arith.constant 1024 : index
    %49 = vector.load %arg7[%c0_49, %c0_50, %c1024] : memref<16x16x1152xbf16, #tpu.memory_space<vmem>>, vector<8x16x128xbf16>
    tpu.vector_store %arg7[%c0_49, %c0_50, %c1024], %48 {strides = array<i32>} : memref<16x16x1152xbf16, #tpu.memory_space<vmem>>, vector<8x16x128xbf16>,
    %c0_51 = arith.constant 0 : index
    %c0_52 = arith.constant 0 : index
    %c0_53 = arith.constant 0 : index
    %50 = vector.load %arg7[%c0_51, %c0_52, %c0_53] : memref<16x16x1152xbf16, #tpu.memory_space<vmem>>, vector<8x16x1152xbf16>
    %51 = vector.shape_cast %50 : vector<8x16x1152xbf16> to vector<128x1152xbf16>
    %c0_54 = arith.constant 0 : index
    %c0_55 = arith.constant 0 : index
    %52 = vector.load %arg8[%c0_54, %c0_55] : memref<1152x128xbf16, #tpu.memory_space<vmem>>, vector<1152x128xbf16>
    %cst = arith.constant dense<0.000000e+00> : vector<128x128xf32>
    %53 = tpu.matmul %51, %52, %cst {dimension_numbers = #tpu.dot_dimension_numbers<[1], [0], [0], [1], [0, 0, 1, 1], [], []>} : vector<128x1152xbf16>, vector<1152x128xbf16>, vector<128x128xf32> -> vector<128x128xf32>
    %c0_56 = arith.constant 0 : index
    %c0_57 = arith.constant 0 : index
    %c0_58 = arith.constant 0 : index
    %54 = vector.load %arg6[%c0_56, %c0_57, %c0_58] : memref<1x256x128xf32, #tpu.memory_space<vmem>>, vector<1x128x128xf32>
    %55 = vector.shape_cast %54 : vector<1x128x128xf32> to vector<128x128xf32>
    %56 = vector.shape_cast %53 : vector<128x128xf32> to vector<1x128x128xf32>
    tpu.vector_store %arg6[%c0_56, %c0_57, %c0_58], %56 {strides = array<i32>} : memref<1x256x128xf32, #tpu.memory_space<vmem>>, vector<1x128x128xf32>,
    %c8_i32 = arith.constant 8 : i32
    %57 = arith.addi %1, %c8_i32 : i32
    %c0_59 = arith.constant 0 : index
    %58 = arith.index_cast %57 : i32 to index
    %c0_60 = arith.constant 0 : index
    %c0_61 = arith.constant 0 : index
    %59 = vector.load %arg3[%c0_59, %58, %c0_60, %c0_61] : memref<1x18x18x128xbf16, #tpu.memory_space<vmem>>, vector<1x8x16x128xbf16>
    %60 = vector.shape_cast %59 : vector<1x8x16x128xbf16> to vector<8x16x128xbf16>
    %c8 = arith.constant 8 : index
    %c0_62 = arith.constant 0 : index
    %c0_63 = arith.constant 0 : index
    %61 = vector.load %arg7[%c8, %c0_62, %c0_63] : memref<16x16x1152xbf16, #tpu.memory_space<vmem>>, vector<8x16x128xbf16>
    tpu.vector_store %arg7[%c8, %c0_62, %c0_63], %60 {strides = array<i32>} : memref<16x16x1152xbf16, #tpu.memory_space<vmem>>, vector<8x16x128xbf16>,
    %c8_i32_64 = arith.constant 8 : i32
    %62 = arith.addi %1, %c8_i32_64 : i32
    %c0_65 = arith.constant 0 : index
    %63 = arith.index_cast %62 : i32 to index
    %c1_66 = arith.constant 1 : index
    %c0_67 = arith.constant 0 : index
    %64 = vector.load %arg3[%c0_65, %63, %c1_66, %c0_67] : memref<1x18x18x128xbf16, #tpu.memory_space<vmem>>, vector<1x8x16x128xbf16>
    %65 = vector.shape_cast %64 : vector<1x8x16x128xbf16> to vector<8x16x128xbf16>
    %c8_68 = arith.constant 8 : index
    %c0_69 = arith.constant 0 : index
    %c128_70 = arith.constant 128 : index
    %66 = vector.load %arg7[%c8_68, %c0_69, %c128_70] : memref<16x16x1152xbf16, #tpu.memory_space<vmem>>, vector<8x16x128xbf16>
    tpu.vector_store %arg7[%c8_68, %c0_69, %c128_70], %65 {strides = array<i32>} : memref<16x16x1152xbf16, #tpu.memory_space<vmem>>, vector<8x16x128xbf16>,
    %c8_i32_71 = arith.constant 8 : i32
    %67 = arith.addi %1, %c8_i32_71 : i32
    %c0_72 = arith.constant 0 : index
    %68 = arith.index_cast %67 : i32 to index
    %c2_73 = arith.constant 2 : index
    %c0_74 = arith.constant 0 : index
    %69 = vector.load %arg3[%c0_72, %68, %c2_73, %c0_74] : memref<1x18x18x128xbf16, #tpu.memory_space<vmem>>, vector<1x8x16x128xbf16>
    %70 = vector.shape_cast %69 : vector<1x8x16x128xbf16> to vector<8x16x128xbf16>
    %c8_75 = arith.constant 8 : index
    %c0_76 = arith.constant 0 : index
    %c256_77 = arith.constant 256 : index
    %71 = vector.load %arg7[%c8_75, %c0_76, %c256_77] : memref<16x16x1152xbf16, #tpu.memory_space<vmem>>, vector<8x16x128xbf16>
    tpu.vector_store %arg7[%c8_75, %c0_76, %c256_77], %70 {strides = array<i32>} : memref<16x16x1152xbf16, #tpu.memory_space<vmem>>, vector<8x16x128xbf16>,
    %c9_i32 = arith.constant 9 : i32
    %72 = arith.addi %1, %c9_i32 : i32
    %c0_78 = arith.constant 0 : index
    %73 = arith.index_cast %72 : i32 to index
    %c0_79 = arith.constant 0 : index
    %c0_80 = arith.constant 0 : index
    %74 = vector.load %arg3[%c0_78, %73, %c0_79, %c0_80] : memref<1x18x18x128xbf16, #tpu.memory_space<vmem>>, vector<1x8x16x128xbf16>
    %75 = vector.shape_cast %74 : vector<1x8x16x128xbf16> to vector<8x16x128xbf16>
    %c8_81 = arith.constant 8 : index
    %c0_82 = arith.constant 0 : index
    %c384_83 = arith.constant 384 : index
    %76 = vector.load %arg7[%c8_81, %c0_82, %c384_83] : memref<16x16x1152xbf16, #tpu.memory_space<vmem>>, vector<8x16x128xbf16>
    tpu.vector_store %arg7[%c8_81, %c0_82, %c384_83], %75 {strides = array<i32>} : memref<16x16x1152xbf16, #tpu.memory_space<vmem>>, vector<8x16x128xbf16>,
    %c9_i32_84 = arith.constant 9 : i32
    %77 = arith.addi %1, %c9_i32_84 : i32
    %c0_85 = arith.constant 0 : index
    %78 = arith.index_cast %77 : i32 to index
    %c1_86 = arith.constant 1 : index
    %c0_87 = arith.constant 0 : index
    %79 = vector.load %arg3[%c0_85, %78, %c1_86, %c0_87] : memref<1x18x18x128xbf16, #tpu.memory_space<vmem>>, vector<1x8x16x128xbf16>
    %80 = vector.shape_cast %79 : vector<1x8x16x128xbf16> to vector<8x16x128xbf16>
    %c8_88 = arith.constant 8 : index
    %c0_89 = arith.constant 0 : index
    %c512_90 = arith.constant 512 : index
    %81 = vector.load %arg7[%c8_88, %c0_89, %c512_90] : memref<16x16x1152xbf16, #tpu.memory_space<vmem>>, vector<8x16x128xbf16>
    tpu.vector_store %arg7[%c8_88, %c0_89, %c512_90], %80 {strides = array<i32>} : memref<16x16x1152xbf16, #tpu.memory_space<vmem>>, vector<8x16x128xbf16>,
    %c9_i32_91 = arith.constant 9 : i32
    %82 = arith.addi %1, %c9_i32_91 : i32
    %c0_92 = arith.constant 0 : index
    %83 = arith.index_cast %82 : i32 to index
    %c2_93 = arith.constant 2 : index
    %c0_94 = arith.constant 0 : index
    %84 = vector.load %arg3[%c0_92, %83, %c2_93, %c0_94] : memref<1x18x18x128xbf16, #tpu.memory_space<vmem>>, vector<1x8x16x128xbf16>
    %85 = vector.shape_cast %84 : vector<1x8x16x128xbf16> to vector<8x16x128xbf16>
    %c8_95 = arith.constant 8 : index
    %c0_96 = arith.constant 0 : index
    %c640_97 = arith.constant 640 : index
    %86 = vector.load %arg7[%c8_95, %c0_96, %c640_97] : memref<16x16x1152xbf16, #tpu.memory_space<vmem>>, vector<8x16x128xbf16>
    tpu.vector_store %arg7[%c8_95, %c0_96, %c640_97], %85 {strides = array<i32>} : memref<16x16x1152xbf16, #tpu.memory_space<vmem>>, vector<8x16x128xbf16>,
    %c10_i32 = arith.constant 10 : i32
    %87 = arith.addi %1, %c10_i32 : i32
    %c0_98 = arith.constant 0 : index
    %88 = arith.index_cast %87 : i32 to index
    %c0_99 = arith.constant 0 : index
    %c0_100 = arith.constant 0 : index
    %89 = vector.load %arg3[%c0_98, %88, %c0_99, %c0_100] : memref<1x18x18x128xbf16, #tpu.memory_space<vmem>>, vector<1x8x16x128xbf16>
    %90 = vector.shape_cast %89 : vector<1x8x16x128xbf16> to vector<8x16x128xbf16>
    %c8_101 = arith.constant 8 : index
    %c0_102 = arith.constant 0 : index
    %c768_103 = arith.constant 768 : index
    %91 = vector.load %arg7[%c8_101, %c0_102, %c768_103] : memref<16x16x1152xbf16, #tpu.memory_space<vmem>>, vector<8x16x128xbf16>
    tpu.vector_store %arg7[%c8_101, %c0_102, %c768_103], %90 {strides = array<i32>} : memref<16x16x1152xbf16, #tpu.memory_space<vmem>>, vector<8x16x128xbf16>,
    %c10_i32_104 = arith.constant 10 : i32
    %92 = arith.addi %1, %c10_i32_104 : i32
    %c0_105 = arith.constant 0 : index
    %93 = arith.index_cast %92 : i32 to index
    %c1_106 = arith.constant 1 : index
    %c0_107 = arith.constant 0 : index
    %94 = vector.load %arg3[%c0_105, %93, %c1_106, %c0_107] : memref<1x18x18x128xbf16, #tpu.memory_space<vmem>>, vector<1x8x16x128xbf16>
    %95 = vector.shape_cast %94 : vector<1x8x16x128xbf16> to vector<8x16x128xbf16>
    %c8_108 = arith.constant 8 : index
    %c0_109 = arith.constant 0 : index
    %c896_110 = arith.constant 896 : index
    %96 = vector.load %arg7[%c8_108, %c0_109, %c896_110] : memref<16x16x1152xbf16, #tpu.memory_space<vmem>>, vector<8x16x128xbf16>
    tpu.vector_store %arg7[%c8_108, %c0_109, %c896_110], %95 {strides = array<i32>} : memref<16x16x1152xbf16, #tpu.memory_space<vmem>>, vector<8x16x128xbf16>,
    %c10_i32_111 = arith.constant 10 : i32
    %97 = arith.addi %1, %c10_i32_111 : i32
    %c0_112 = arith.constant 0 : index
    %98 = arith.index_cast %97 : i32 to index
    %c2_113 = arith.constant 2 : index
    %c0_114 = arith.constant 0 : index
    %99 = vector.load %arg3[%c0_112, %98, %c2_113, %c0_114] : memref<1x18x18x128xbf16, #tpu.memory_space<vmem>>, vector<1x8x16x128xbf16>
    %100 = vector.shape_cast %99 : vector<1x8x16x128xbf16> to vector<8x16x128xbf16>
    %c8_115 = arith.constant 8 : index
    %c0_116 = arith.constant 0 : index
    %c1024_117 = arith.constant 1024 : index
    %101 = vector.load %arg7[%c8_115, %c0_116, %c1024_117] : memref<16x16x1152xbf16, #tpu.memory_space<vmem>>, vector<8x16x128xbf16>
    tpu.vector_store %arg7[%c8_115, %c0_116, %c1024_117], %100 {strides = array<i32>} : memref<16x16x1152xbf16, #tpu.memory_space<vmem>>, vector<8x16x128xbf16>,
    %c8_118 = arith.constant 8 : index
    %c0_119 = arith.constant 0 : index
    %c0_120 = arith.constant 0 : index
    %102 = vector.load %arg7[%c8_118, %c0_119, %c0_120] : memref<16x16x1152xbf16, #tpu.memory_space<vmem>>, vector<8x16x1152xbf16>
    %103 = vector.shape_cast %102 : vector<8x16x1152xbf16> to vector<128x1152xbf16>
    %c0_121 = arith.constant 0 : index
    %c0_122 = arith.constant 0 : index
    %104 = vector.load %arg8[%c0_121, %c0_122] : memref<1152x128xbf16, #tpu.memory_space<vmem>>, vector<1152x128xbf16>
    %cst_123 = arith.constant dense<0.000000e+00> : vector<128x128xf32>
    %105 = tpu.matmul %103, %104, %cst_123 {dimension_numbers = #tpu.dot_dimension_numbers<[1], [0], [0], [1], [0, 0, 1, 1], [], []>} : vector<128x1152xbf16>, vector<1152x128xbf16>, vector<128x128xf32> -> vector<128x128xf32>
    %c0_124 = arith.constant 0 : index
    %c128_125 = arith.constant 128 : index
    %c0_126 = arith.constant 0 : index
    %106 = vector.load %arg6[%c0_124, %c128_125, %c0_126] : memref<1x256x128xf32, #tpu.memory_space<vmem>>, vector<1x128x128xf32>
    %107 = vector.shape_cast %106 : vector<1x128x128xf32> to vector<128x128xf32>
    %108 = vector.shape_cast %105 : vector<128x128xf32> to vector<1x128x128xf32>
    tpu.vector_store %arg6[%c0_124, %c128_125, %c0_126], %108 {strides = array<i32>} : memref<1x256x128xf32, #tpu.memory_space<vmem>>, vector<1x128x128xf32>,
    return
  }
  func.func @transform_0(%arg0: i32, %arg1: i32, %arg2: memref<2xf32, #tpu.memory_space<smem>>) -> (i32, i32, i32, i32) {
    %c0_i32 = arith.constant 0 : i32
    %c0_i32_0 = arith.constant 0 : i32
    %c0_i32_1 = arith.constant 0 : i32
    %c0_i32_2 = arith.constant 0 : i32
    return %arg0, %c0_i32, %c0_i32_0, %c0_i32_1 : i32, i32, i32, i32
  }
  func.func @transform_1(%arg0: i32, %arg1: i32, %arg2: memref<2xf32, #tpu.memory_space<smem>>) -> (i32, i32, i32) {
    %c0_i32 = arith.constant 0 : i32
    %c0_i32_0 = arith.constant 0 : i32
    %c0_i32_1 = arith.constant 0 : i32
    return %arg0, %c0_i32, %c0_i32_0 : i32, i32, i32
  }
  func.func @transform_2(%arg0: i32, %arg1: i32, %arg2: memref<2xf32, #tpu.memory_space<smem>>) -> (i32, i32, i32) {
    %c0_i32 = arith.constant 0 : i32
    %c0_i32_0 = arith.constant 0 : i32
    %c0_i32_1 = arith.constant 0 : i32
    %c0_i32_2 = arith.constant 0 : i32
    return %c0_i32, %c0_i32_0, %c0_i32_1 : i32, i32, i32
  }
  func.func @transform_3(%arg0: i32, %arg1: i32, %arg2: memref<2xf32, #tpu.memory_space<smem>>) -> (i32, i32, i32) {
    %c0_i32 = arith.constant 0 : i32
    %c0_i32_0 = arith.constant 0 : i32
    return %arg0, %arg1, %c0_i32 : i32, i32, i32
  }
}

</mosaic_0001>

<bundles_post_ra>
// kernel: tpu_custom_call.1
= control target key start
LH: loop header
LB: loop body
LE: loop exit
PB: predicated region body
PF: predicated region fallthrough
CT: control target
= control target key end

     0   :  { %s8182_s0 = inlined_call_operand.hbm [shape: f32[2], index: 0, kind: input, shape index: {}]   ;;  %s8183_s1 = inlined_call_operand.hbm [shape: bf16[2,18,18,128], index: 1, kind: input, shape index: {}]   ;;  %s8184_s2 = inlined_call_operand.hbm [shape: f32[2,128,1], index: 2, kind: input, shape index: {}]   ;;  %s8185_s3 = inlined_call_operand.hbm [shape: f32[9,128,128], index: 3, kind: input, shape index: {}]   ;;  %s8186_s4 = inlined_call_operand.hbm [shape: f32[2,256,128], index: 4, kind: output, shape index: {}]  }
   0x1   :  { %8236 = sst [smem:[#allocation62_spill]] %s8183_s1  ;;  %s6340_s17 = scalar_lea.hbm %s8182_s0, 16 }
   0x2   :  { %8237 = sst [smem:[#allocation63_spill]] %s8185_s3  ;;  %p6341_p0 = scmp.ne.s32.totalorder %s8182_s0, %s6340_s17 }
   0x3   :  { %p6344_p1 = scmp.lt.u32.totalorder %s6340_s17, %s8182_s0 }
   0x5   :  { %p6346_p2 = pnand %p6344_p1, %p6341_p0 }
   0x7   :  { %6349 = shalt.err (!%p6346_p2)  }
   0x8   :  { %s6532_s22 = smov [#allocation5]  }
   0x9   :  { %10 = dma.hbm_to_smem %s8182_s0, 16, %s6532_s22, [#allocation4] }
   0xa   :  { %6490 = dma.done.wait [#allocation4], 16 }
   0xb   :  { %6491 = vsyncadd [#allocation4], 4294967280 }
   0xc   :  { %12 = sfence }
   0xd   :  { %13 = vsyncpa [#allocation7], 0 }
   0xe   :  { %15 = vsyncpa [#allocation7 + $0x1], 0 }
   0xf   :  { %16 = vsyncpa [#allocation10], 0 }
  0x10   :  { %18 = vsyncpa [#allocation10 + $0x1], 0 }
  0x11   :  { %19 = vsyncpa [#allocation8], 0 }
  0x12   :  { %21 = vsyncpa [#allocation8 + $0x1], 0  ;;  %s6581_s25 = smov 0   ;;  %s6583_s26 = smov 0  }
  0x13   :  { %s6585_s27 = smov 0   ;;  %s6587_s28 = smov 0  }
  0x14   :  { %s6589_s29 = smov 0   ;;  %s6591_s0 = smov 0  }
  0x15 LB: > { %s6612_s30 = sadd.s32 4294967295, %s6530_s0   ;;  %s4822_s5 = sadd.s32 4294967294, %s6530_s0   ;;  %s6530_s0 = sphi %s6591_s0, %s27_s0   ;;  %s6526_s29 = sphi %s6589_s29, %s8352_s29   ;;  %s6522_s28 = sphi %s6587_s28, %s8351_s28   ;;  %s6518_s27 = sphi %s6585_s27, %s8350_s27   ;;  %s6514_s26 = sphi %s6583_s26, %s8349_s26   ;;  %s6510_s25 = sphi %s6581_s25, %s8348_s25  }
  0x16   : > { %p59_p3 = scmp.ne.s32.totalorder %s6514_s26, %s6510_s25  ;;  %p8187_p4 = scmp.eq.s32.totalorder %s6612_s30, 0 }
  0x17   : > { %p138_p6 = scmp.eq.s32.totalorder %s4822_s5, 1  ;;  %p4823_p8 = scmp.ge.s32.totalorder %s6530_s0, 1 }
  0x18   : > { %p6621_p7 = por %p8187_p4, %p59_p3  ;;  %p145_p10 = scmp.lt.s32.totalorder %s6530_s0, 3 }
  0x19   : > { %p6626_p9 = por %p138_p6, %p59_p3  ;;  %s6533_s9 = smov [#allocation11]  }
  0x1a   : > { %s8238_s6 = scalar_select %p6621_p7, 1, 0 }
  0x1b   : > { %s8239_s7 = scalar_select %p6626_p9, 1, 0 }
  0x1c   : > { %p6631_p11 = pnand %p4823_p8, %p145_p10  ;;  %s157_s10 = sshll.u32 %s6533_s9, 4  ;;  %s158_s10 = int_to_ptr.vmem [resolvable:$true] %s157_s10 }
  0x1d   : > { %s39_s12 = sadd.s32 1, %s6526_s29  ;;  %s8242_s3 = sld [smem:[#allocation63_spill]] }
  0x1e   : > { %s8240_s8 = scalar_select %p6631_p11, 1, 0 }
  0x1f   : > { %p6022_p12 = pneg %p6631_p11 }
  0x21   : > { %p6640_p0 = pnand %p6022_p12, %p8187_p4 }
  0x23   : > { %s6350_s15 = scalar_lea.hbm %s8242_s3, 18432  ;;  %p6352_p2 = pneg %p6640_p0 }
  0x24   : > { %p6351_p1 = scmp.ne.s32.totalorder %s8242_s3, %s6350_s15  ;;  %p6357_p8 = scmp.lt.u32.totalorder %s6350_s15, %s8242_s3 }
  0x26   : > { %p6353_p3 = pnand %p6352_p2, %p6351_p1 }
  0x28   : > { %p6354_p6 = pneg %p6353_p3 }
  0x2a   : > { %p6359_p10 = pnand %p6357_p8, %p6354_p6 }
  0x2c   : > { %6362 = shalt.err (!%p6359_p10)
}
  0x2d   : > { %s6363_s20 = scalar_lea.vmem %s158_s10, 18432  ;;  %p6371_p5 = scmp.lt.s32.totalorder %s158_s10, %s158_s10 }
  0x2e   : > { %p6364_p12 = scmp.ne.s32.totalorder %s158_s10, %s6363_s20  ;;  %p6372_p9 = scmp.lt.s32.totalorder %s6363_s20, %s6363_s20 }
  0x30   : > { %p6366_p13 = pnand %p6364_p12, %p6352_p2  ;;  %p6373_p7 = por %p6372_p9, %p6371_p5 }
  0x32   : > { %p6367_p4 = pneg %p6366_p13 }
  0x34   : > { %p6374_p11 = pnand %p6373_p7, %p6367_p4 }
  0x36   : > { %6377 = shalt.err (!%p6374_p11)
}
  0x37   : > { %s8190_s21 = smov 128   ;;  %s8191_s22 = smov 8  }
  0x38   : > { %6025 = dma.hbm_to_vmem [thread:$0]  (!%p6640_p0), %s8242_s3, 18432, %s158_s10, [#allocation10], %s8190_s21, %s8190_s21, %s8191_s22  }
  0x39   : > { %p41_p4 = scmp.ge.s32.totalorder %s39_s12, 2  ;;  %s46_s5 = sadd.s32 1, %s6518_s27 }
  0x3a   : > { %p53_p5 = scmp.ne.s32.totalorder %s6518_s27, %s6514_s26  ;;  %p54_p7 = scmp.eq.s32.totalorder %s6530_s0, 0 }
  0x3b   : > { %s8354_s12 = smov (%p41_p4, %s39_s12), 0  ;;  %p8244_p11 = scmp.eq.s32.totalorder %s6612_s30, 1 }
  0x3c   : > { %8243 = sst [smem:[#allocation18_spill]] %s8354_s12  ;;  %p55_p9 = por %p54_p7, %p53_p5 }
  0x3d   : > { %p6672_p13 = por %p8244_p11, %p53_p5  ;;  %s43_s11 = ssub.s32 %s6526_s29, %s8354_s12 }
  0x3e   : > { %p6038_p1 = scmp.lt.s32.totalorder %s6530_s0, 2  ;;  %p44_p2 = scmp.eq.s32.totalorder %s43_s11, 0 }
  0x3f   : > { %s6680_s13 = sand.u32 1, %s6518_s27   ;;  %s6010_s15 = smul.u32 3456, %s6526_s29 }
  0x40   : > { %s6009_s10 = smul.u32 216, %s6680_s13  ;;  %p6687_p0 = pnand %p6038_p1, %p55_p9 }
  0x41   : > { %s6684_s14 = scalar_select %p44_p2, %s6518_s27, %s46_s5  }
  0x42   : > { %s175_s16 = scalar_lea.vmem [#allocation6], %s6009_s10  ;;  %s8247_s1 = sld [smem:[#allocation62_spill]] }
  0x43   : > { %s182_s17 = sshll.u32 %s175_s16, 4  ;;  %s172_s5 = scalar_lea.sflag [#allocation7], %s6680_s13  ;;  %s6696_s17 = int_to_ptr.vmem [resolvable:$true] %s182_s17 }
  0x44   : > { %p6380_p6 = pneg %p6687_p0 }
  0x48   : > { %s6694_s23 = scalar_lea.hbm %s8247_s1, %s6010_s15  ;;  %s6383_s15 = scalar_lea.hbm %s8247_s1, 6912 }
  0x49   : > { %s6378_s11 = scalar_lea.hbm %s6694_s23, 3456  ;;  %p6384_p12 = scmp.lt.u32.totalorder %s6694_s23, %s8247_s1 }
  0x4a   : > { %p6379_p3 = scmp.ne.s32.totalorder %s6694_s23, %s6378_s11  ;;  %p6385_p4 = scmp.lt.u32.totalorder %s6383_s15, %s6378_s11 }
  0x4b   : > { %p6387_p7 = scmp.lt.u32.totalorder %s6378_s11, %s6694_s23 }
  0x4c   : > { %p6381_p8 = pnand %p6380_p6, %p6379_p3  ;;  %p6386_p5 = por %p6385_p4, %p6384_p12 }
  0x4e   : > { %p6382_p10 = pneg %p6381_p8  ;;  %p6388_p9 = por %p6387_p7, %p6386_p5 }
  0x50   : > { %p6389_p11 = pnand %p6388_p9, %p6382_p10 }
  0x52   : > { %6392 = shalt.err (!%p6389_p11)
}
  0x53   : > { %s6393_s21 = scalar_lea.vmem %s6696_s17, 3456  ;;  %s6536_s10 = smov [#allocation6]  }
  0x54   : > { %p6394_p1 = scmp.ne.s32.totalorder %s6696_s17, %s6393_s21  ;;  %s6398_s16 = sshll.u32 %s6536_s10, 4  ;;  %s6399_s16 = int_to_ptr.vmem [resolvable:$false] %s6398_s16 }
  0x55   : > { %s6400_s19 = scalar_lea.vmem %s6399_s16, 6912  ;;  %p6401_p8 = scmp.lt.s32.totalorder %s6696_s17, %s6399_s16 }
  0x56   : > { %p6396_p2 = pnand %p6394_p1, %p6380_p6  ;;  %p6402_p12 = scmp.lt.s32.totalorder %s6400_s19, %s6393_s21 }
  0x58   : > { %p6397_p3 = pneg %p6396_p2  ;;  %p6403_p4 = por %p6402_p12, %p6401_p8 }
  0x5a   : > { %p6404_p5 = pnand %p6403_p4, %p6397_p3 }
  0x5c   : > { %6407 = shalt.err (!%p6404_p5)
}
  0x5d   : > { %s6537_s11 = smov 64   ;;  %s6538_s15 = smov 4  }
  0x5e   : > { %6029 = dma.hbm_to_vmem [thread:$0]  (!%p6687_p0), %s6694_s23, 3456, %s6696_s17, %s172_s5, %s6537_s11, %s6537_s11, %s6538_s15  }
  0x5f   : > { %s4827_s20 = sshll.u32 %s6680_s13, 7  ;;  %s5399_s10 = sshll.u32 %s6526_s29, 11 }
  0x60   : > { %s6732_s19 = scalar_lea.hbm %s8184_s2, %s5399_s10  ;;  %s196_s22 = scalar_lea.vmem [#allocation9], %s4827_s20 }
  0x61   : > { %s203_s24 = sshll.u32 %s196_s22, 4  ;;  %s8248_s1 = sand.u32 1, %s6530_s0   ;;  %s6734_s24 = int_to_ptr.vmem [resolvable:$true] %s203_s24 }
  0x62   : > { %s6738_s3 = scalar_lea.sflag [#allocation10], %s8248_s1  ;;  %s6408_s12 = scalar_lea.hbm %s6732_s19, 2048 }
  0x63   : > { %p6409_p10 = scmp.ne.s32.totalorder %s6732_s19, %s6408_s12  ;;  %s6413_s23 = scalar_lea.hbm %s8184_s2, 4096 }
  0x64   : > { %p6414_p11 = scmp.lt.u32.totalorder %s6732_s19, %s8184_s2  ;;  %p6415_p1 = scmp.lt.u32.totalorder %s6413_s23, %s6408_s12 }
  0x65   : > { %p6411_p7 = pnand %p6409_p10, %p6380_p6  ;;  %p6417_p3 = scmp.lt.u32.totalorder %s6408_s12, %s6732_s19 }
  0x66   : > { %p6416_p2 = por %p6415_p1, %p6414_p11 }
  0x67   : > { %p6412_p9 = pneg %p6411_p7 }
  0x68   : > { %p6418_p8 = por %p6417_p3, %p6416_p2 }
  0x6a   : > { %p6419_p12 = pnand %p6418_p8, %p6412_p9 }
  0x6c   : > { %6422 = shalt.err (!%p6419_p12)
}
  0x6d   : > { %s6423_s1 = scalar_lea.vmem %s6734_s24, 2048  ;;  %s6539_s22 = smov [#allocation9]  }
  0x6e   : > { %p6424_p4 = scmp.ne.s32.totalorder %s6734_s24, %s6423_s1  ;;  %s6428_s15 = sshll.u32 %s6539_s22, 4  ;;  %s6429_s15 = int_to_ptr.vmem [resolvable:$false] %s6428_s15 }
  0x6f   : > { %s6430_s20 = scalar_lea.vmem %s6429_s15, 4096  ;;  %p6431_p7 = scmp.lt.s32.totalorder %s6734_s24, %s6429_s15 }
  0x70   : > { %p6426_p5 = pnand %p6424_p4, %p6380_p6  ;;  %p6432_p11 = scmp.lt.s32.totalorder %s6430_s20, %s6423_s1 }
  0x72   : > { %p6427_p10 = pneg %p6426_p5  ;;  %p6433_p1 = por %p6432_p11, %p6431_p7 }
  0x74   : > { %p6434_p2 = pnand %p6433_p1, %p6427_p10 }
  0x76   : > { %6437 = shalt.err (!%p6434_p2)
}
  0x77   : > { %s8249_s12 = smov 8   ;;  %s8250_s10 = smov 128  }
  0x78   : > { %6032 = dma.hbm_to_vmem [thread:$0]  (!%p6687_p0), %s6732_s19, 2048, %s6734_s24, %s6738_s3, %s8250_s10, %s8250_s10, %s8249_s12  }
  0x79   : > { %p8251_p6 = scmp.ne.s32.totalorder %s8240_s8, 0 }
  0x7b   : > { %215 = sbr.rel (%p8251_p6) target bundleno = 845 (0x34d), region = 32 }
  0x82   : > { %s6770_s16 = sand.u32 1, %s6514_s26   ;;  %p8252_p9 = scmp.ne.s32.totalorder %s8238_s6, 0 }
  0x83   : > { %s6011_s21 = smul.u32 216, %s6770_s16  ;;  %s218_s13 = scalar_lea.sflag [#allocation7], %s6770_s16 }
  0x85   : > { %s6774_s17 = scalar_lea.vmem [#allocation6], %s6011_s21 }
  0x86   : > { %6493 = dma.done.wait (%p8252_p9), %s218_s13, 3456  }
  0x87   : > { %6495 = vsyncadd (%p8252_p9), %s218_s13, 4294963840  ;;  %s226_s3 = sand.u32 1, %s6612_s30   ;;  %s4831_s8 = sshll.u32 %s6770_s16, 7 }
  0x88   : > { %s227_s18 = scalar_lea.sflag [#allocation10], %s226_s3  ;;  %s6782_s24 = scalar_lea.vmem [#allocation9], %s4831_s8 }
  0x89   : > { %6497 = dma.done.wait (%p8252_p9), %s227_s18, 2048  }
  0x8a   : > { %6499 = vsyncadd (%p8252_p9), %s227_s18, 4294965248  ;;  %p8253_p0 = scmp.eq.s32.totalorder %s6612_s30, 0 }
  0x8c   : > { %6501 = dma.done.wait (%p8253_p0), [#allocation10], 18432   ;;  %p8254_p3 = pmov %p8253_p0 }
  0x8d   : > { %v6540_v0 = vmov 0   ;;  %v271_v1 = vld [vmem:[%s6782_s24 + $0x10] sm:$0xff]  ;;  %v269_v2 = vld [vmem:[%s6782_s24] sm:$0xff]  ;;  %v272_v3 = vld [vmem:[%s6782_s24 + $0x18] sm:$0xff]  ;;  %vm1114_vm0 = vsmask.f32 7424 }
  0x8e   : > { %6503 = vsyncadd (%p8254_p3), [#allocation10], 4294948864  ;;  %6099 = vset.pattern.permute.xlu1 %v6540_v0  ;;  %6098 = vset.pattern.permute.xlu0 %v6540_v0  ;;  %v270_v4 = vld [vmem:[%s6782_s24 + $0x8] sm:$0xff]  ;;  %v273_v6 = vld [vmem:[%s6782_s24 + $0x20] sm:$0xff]  ;;  %s6845_s30 = sld [smem:[#allocation5 + %s6522_s28]]  ;;  %vm1315_vm1 = vcmask 1046528  }
  0x8f   : > { %297 = vperm.xlu1 %6099, %v271_v1   ;;  %287 = vperm.xlu0 %6098, %v269_v2   ;;  %v274_v5 = vld [vmem:[%s6782_s24 + $0x28] sm:$0xff]  ;;  %v276_v7 = vld [vmem:[%s6782_s24 + $0x38] sm:$0xff]  ;;  %v275_v8 = vld [vmem:[%s6782_s24 + $0x30] sm:$0xff]  ;;  %s4833_s6 = sshll.u32 %s6770_s16, 8  ;;  %s5400_s23 = sshll.u32 %s6522_s28, 12 }
  0x90   : > { %v278_v9 = vld [vmem:[%s6782_s24 + $0x48] sm:$0xff]  ;;  %v277_v10 = vld [vmem:[%s6782_s24 + $0x40] sm:$0xff]  ;;  %v280_v11 = vld [vmem:[%s6782_s24 + $0x58] sm:$0xff]  ;;  %s7973_s19 = scalar_lea.vmem [#allocation12], %s4833_s6  ;;  %s8129_s22 = scalar_lea.hbm %s8186_s4, %s5400_s23 }
  0x91   : > { %v279_v12 = vld [vmem:[%s6782_s24 + $0x50] sm:$0xff]  ;;  %v282_v13 = vld [vmem:[%s6782_s24 + $0x68] sm:$0xff]  ;;  %v281_v14 = vld [vmem:[%s6782_s24 + $0x60] sm:$0xff]  ;;  %s4683_s5 = sshll.u32 %s7973_s19, 4  ;;  %s4668_s15 = scalar_lea.sflag [#allocation8], %s6770_s16  ;;  %s8131_s5 = int_to_ptr.vmem [resolvable:$true] %s4683_s5 }
  0x92   : > { %v284_v15 = vld [vmem:[%s6782_s24 + $0x78] sm:$0xff]  ;;  %v283_v16 = vld [vmem:[%s6782_s24 + $0x70] sm:$0xff]  ;;  %v6112_v34 = vld [vmem:[%s6774_s17 + $0x18] sm:$0xff]   ;;  %s6438_s28 = scalar_lea.vmem %s8131_s5, 4096  ;;  %s6541_s20 = smov [#allocation12]  }
  0x93   : > { %302 = vperm.xlu1 %6099, %v272_v3   ;;  %292 = vperm.xlu0 %6098, %v270_v4   ;;  %v6100_v17 = vld [vmem:[%s6774_s17] sm:$0xff]   ;;  %v6101_v18 = vld [vmem:[%s6774_s17 + $0x8] ss:$0 sps:$4 sm:$0x11]   ;;  %v6102_v19 = vld [vmem:[%s6774_s17 + $0xc] sm:$0xff]   ;;  %v1142_v40 = vshll.u32 %v6112_v34, 16  ;;  %p6439_p8 = scmp.ne.s32.totalorder %s8131_s5, %s6438_s28 }
  0x94   : > { %v1116_v20 = vshrl.u32 %v6100_v17, 16  ;;  %v1118_v21 = vshll.u32 %v6100_v17, 16  ;;  %v1123_v22 = vshll.u32 %v6101_v18, 16  ;;  %2437 = vmatprep.mubr.bf16.mxu1 %v6102_v19  ;;  %v6106_v27 = vld [vmem:[%s6774_s17 + $0xc] sm:$0xff]   ;;  %v6815_v29 = vld [vmem:[%s6774_s17] sm:$0xfe]  }
  0x95   : > { %v6107_v28 = vld [vmem:[%s6774_s17 + $0x14] ss:$0 sps:$4 sm:$0x11]   ;;  %v6818_v30 = vld [vmem:[%s6774_s17 + $0x8] ss:$0 sps:$4 sm:$0x11]   ;;  %p6440_p12 = pnand %p6439_p8, %p6672_p13 }
  0x96   : > { %v1120_v23 = vrot.slane %v1118_v21, 1  ;;  %v1125_v24 = vrot.slane %v1123_v22, 1  ;;  %v1130_v31 = vshll.u32 %v6106_v27, 16  ;;  %v6821_v32 = vld [vmem:[%s6774_s17 + $0xc] sm:$0xfe]   ;;  %v1135_v35 = vshll.u32 %v6107_v28, 16 }
  0x97   : > { %312 = vperm.xlu1 %6099, %v274_v5   ;;  %307 = vperm.xlu0 %6098, %v273_v6   ;;  %v6824_v33 = vld [vmem:[%s6774_s17 + $0x14] ss:$0 sps:$4 sm:$0x11]   ;;  %v6113_v36 = vld [vmem:[%s6774_s17 + $0x20] ss:$0 sps:$4 sm:$0x11]   ;;  %v6854_v28 = vstv %s6845_s30  ;;  %p6441_p4 = pneg %p6440_p12 }
  0x98   : > { %v1121_v25 = vor.u32 %v1120_v23, %v1116_v20  ;;  %v6829_v37 = vld [vmem:[%s6774_s17 + $0x18] sm:$0xfe]   ;;  %v6118_v38 = vld [vmem:[%s6774_s17 + $0x24] sm:$0xff]   ;;  %v6833_v39 = vld [vmem:[%s6774_s17 + $0x20] ss:$0 sps:$4 sm:$0x11]  }
  0x99   : > { %v6119_v41 = vld [vmem:[%s6774_s17 + $0x2c] ss:$0 sps:$4 sm:$0x11]   ;;  %v6124_v42 = vld [vmem:[%s6774_s17 + $0x30] sm:$0xff]   ;;  %v1316_v43 = vrot.slane %v6815_v29, 1  ;;  %v1317_v44 = vrot.slane %v6818_v30, 1 }
  0x9a   : > { %v1126_v26 = vsel %vm1114_vm0, %v1121_v25, %v1125_v24  ;;  %v1154_v45 = vshll.u32 %v6118_v38, 16  ;;  %v6125_v46 = vld [vmem:[%s6774_s17 + $0x38] ss:$0 sps:$4 sm:$0x11]   ;;  %v1128_v47 = vshrl.u32 %v6106_v27, 16  ;;  %v1132_v48 = vrot.slane %v1130_v31, 1 }
  0x9b   : > { %322 = vperm.xlu1 %6099, %v276_v7   ;;  %317 = vperm.xlu0 %6098, %v275_v8   ;;  %v1319_v49 = vrot.slane %v6821_v32, 1  ;;  %v1320_v50 = vrot.slane %v6824_v33, 1  ;;  %v6130_v51 = vld [vmem:[%s6774_s17 + $0x3c] sm:$0xff]   ;;  %v1137_v52 = vrot.slane %v1135_v35, 1  ;;  %v1140_v53 = vshrl.u32 %v6112_v34, 16  ;;  %s6442_s12 = sshll.u32 %s6541_s20, 4  ;;  %s6443_s12 = int_to_ptr.vmem [resolvable:$false] %s6442_s12 }
  0x9c   : > { %2340 = vmatprep.mubr.bf16.mxu0 %v1126_v26  ;;  %v1147_v54 = vshll.u32 %v6113_v36, 16  ;;  %v1322_v55 = vrot.slane %v6829_v37, 1  ;;  %v1144_v56 = vrot.slane %v1142_v40, 1  ;;  %v1323_v57 = vrot.slane %v6833_v39, 1  ;;  %v6122_v2 = vld [vmem:[%s6774_s17 + $0x24] sm:$0xfe]   ;;  %p6445_p5 = scmp.lt.s32.totalorder %s8131_s5, %s6443_s12 }
  0x9d   : > { %v1152_v58 = vshrl.u32 %v6118_v38, 16  ;;  %v1166_v59 = vshll.u32 %v6124_v42, 16  ;;  %v1156_v60 = vrot.slane %v1154_v45, 1  ;;  %v1159_v61 = vshll.u32 %v6119_v41, 16  ;;  %v6128_v6 = vld [vmem:[%s6774_s17 + $0x30] sm:$0xfe]  }
  0x9e   : > { %v1164_v62 = vshrl.u32 %v6124_v42, 16  ;;  %v1171_v63 = vshll.u32 %v6125_v46, 16  ;;  %v6131_v0 = vld [vmem:[%s6774_s17 + $0x44] ss:$0 sps:$4 sm:$0x11]   ;;  %v1178_v1 = vshll.u32 %v6130_v51, 16  ;;  %v6857_v30 = vsel %vm1315_vm1, %v1316_v43, %v1317_v44 }
  0x9f   : > { %332 = vperm.xlu1 %6099, %v278_v9   ;;  %327 = vperm.xlu0 %6098, %v277_v10   ;;  %v6123_v3 = vld [vmem:[%s6774_s17 + $0x2c] ss:$0 sps:$4 sm:$0x11]   ;;  %v1168_v4 = vrot.slane %v1166_v59, 1  ;;  %v1176_v5 = vshrl.u32 %v6130_v51, 16  ;;  %v1183_v9 = vshll.u32 %v6131_v0, 16  ;;  %v1133_v10 = vor.u32 %v1132_v48, %v1128_v47 }
  0xa0   : > { %v6129_v7 = vld [vmem:[%s6774_s17 + $0x38] ss:$0 sps:$4 sm:$0x11]   ;;  %v1180_v8 = vrot.slane %v1178_v1, 1  ;;  %v1328_v17 = vrot.slane %v6128_v6, 1  ;;  %v1173_v22 = vrot.slane %v1171_v63, 1  ;;  %v6860_v31 = vsel %vm1315_vm1, %v1319_v49, %v1320_v50 }
  0xa1   : > { %v1329_v18 = vrot.slane %v6129_v7, 1  ;;  %v432_v19 = vld [vmem:[#allocation11 + $0x80] sm:$0xff]  ;;  %v1169_v21 = vor.u32 %v1168_v4, %v1164_v62  ;;  %v1185_v24 = vrot.slane %v1183_v9, 1  ;;  %v434_v27 = vld [vmem:[#allocation11 + $0x90] sm:$0xff]  ;;  %v6863_v34 = vsel %vm1114_vm0, %v1133_v10, %v1137_v52  ;;  %v433_v40 = vld [vmem:[#allocation11 + $0x88] sm:$0xff]  ;;  %s6444_s10 = scalar_lea.vmem %s6443_s12, 8192 }
  0xa2   : > { %v562_v20 = vld [vmem:[#allocation11 + $0x180] sm:$0xff]  ;;  %v1181_v23 = vor.u32 %v1180_v8, %v1176_v5  ;;  %v564_v29 = vld [vmem:[#allocation11 + $0x190] sm:$0xff]  ;;  %v6869_v36 = vsel %vm1315_vm1, %v1322_v55, %v1323_v57  ;;  %v563_v41 = vld [vmem:[#allocation11 + $0x188] sm:$0xff]  ;;  %p6446_p10 = scmp.lt.s32.totalorder %s6444_s10, %s6438_s28 }
  0xa3   : > { %342 = vperm.xlu1 %6099, %v280_v11   ;;  %337 = vperm.xlu0 %6098, %v279_v12   ;;  %v1145_v11 = vor.u32 %v1144_v56, %v1140_v53  ;;  %v1149_v12 = vrot.slane %v1147_v54, 1  ;;  %v366_v25 = vld [vmem:[#allocation11] sm:$0xff]  ;;  %v368_v32 = vld [vmem:[#allocation11 + $0x10] sm:$0xff]  ;;  %v367_v42 = vld [vmem:[#allocation11 + $0x8] sm:$0xff]  ;;  %v6882_v44 = vsel %vm1114_vm0, %v1169_v21, %v1173_v22  ;;  %v6885_v45 = vsel %vm1315_vm1, %v1328_v17, %v1329_v18 }
  0xa4   : > { %v497_v26 = vld [vmem:[#allocation11 + $0x100] sm:$0xff]  ;;  %v499_v33 = vld [vmem:[#allocation11 + $0x110] sm:$0xff]  ;;  %v6888_v46 = vsel %vm1114_vm0, %v1181_v23, %v1185_v24  ;;  %v498_v51 = vld [vmem:[#allocation11 + $0x108] sm:$0xff]  ;;  %p6447_p7 = por %p6446_p10, %p6445_p5 }
  0xa5   : > { %v6866_v35 = vsel %vm1114_vm0, %v1145_v11, %v1149_v12  ;;  %v435_v52 = vld [vmem:[#allocation11 + $0x98] sm:$0xff]  ;;  %v567_v21 = vld [vmem:[#allocation11 + $0x1a8] sm:$0xff]  ;;  %v370_v22 = vld [vmem:[#allocation11 + $0x20] sm:$0xff] }
  0xa6   : > { %v565_v54 = vld [vmem:[#allocation11 + $0x198] sm:$0xff]  ;;  %v371_v23 = vld [vmem:[#allocation11 + $0x28] sm:$0xff]  ;;  %p6448_p11 = pnand %p6447_p7, %p6441_p4 }
  0xa7   : > { %352 = vperm.xlu1 %6099, %v282_v13   ;;  %347 = vperm.xlu0 %6098, %v281_v14   ;;  %v1325_v13 = vrot.slane %v6122_v2, 1  ;;  %v1326_v14 = vrot.slane %v6123_v3, 1  ;;  %v369_v62 = vld [vmem:[#allocation11 + $0x18] sm:$0xff] }
  0xa8   : > { %v500_v63 = vld [vmem:[#allocation11 + $0x118] sm:$0xff] }
  0xa9   : > { %v6872_v37 = vsel %vm1315_vm1, %v1325_v13, %v1326_v14  ;;  %v436_v14 = vld [vmem:[#allocation11 + $0xa0] sm:$0xff] }
  0xab   : > { %362 = vperm.xlu1 %6099, %v284_v15   ;;  %357 = vperm.xlu0 %6098, %v283_v16   ;;  %v1157_v15 = vor.u32 %v1156_v60, %v1152_v58  ;;  %v1161_v16 = vrot.slane %v1159_v61, 1 }
  0xad   : > { %v6879_v43 = vsel %vm1114_vm0, %v1157_v15, %v1161_v16  ;;  %v437_v15 = vld [vmem:[#allocation11 + $0xa8] sm:$0xff]  ;;  %v566_v16 = vld [vmem:[#allocation11 + $0x1a0] sm:$0xff] }
 0x10e   : > { %v6874_v38 = vpop.permute.xlu1 %297  ;;  %v6876_v39 = vpop.permute.xlu0 %287 }
 0x10f   : > { %v448_v47 = vmul.f32 %v432_v19, %v6876_v39  ;;  %v578_v48 = vmul.f32 %v562_v20, %v6876_v39  ;;  %v382_v49 = vmul.f32 %v366_v25, %v6876_v39  ;;  %v513_v50 = vmul.f32 %v497_v26, %v6876_v39 }
 0x110   : > { %v450_v53 = vmul.f32 %v434_v27, %v6874_v38  ;;  %v580_v55 = vmul.f32 %v564_v29, %v6874_v38  ;;  %v384_v56 = vmul.f32 %v368_v32, %v6874_v38  ;;  %v515_v57 = vmul.f32 %v499_v33, %v6874_v38 }
 0x111   : > { %v464_v58 = vadd.f32 %v448_v47, %v6854_v28  ;;  %v594_v59 = vadd.f32 %v578_v48, %v6854_v28  ;;  %v399_v60 = vadd.f32 %v6854_v28, %v382_v49  ;;  %v529_v61 = vadd.f32 %v513_v50, %v6854_v28 }
 0x112   : > { %v6902_v0 = vpop.permute.xlu1 %302  ;;  %v6904_v1 = vpop.permute.xlu0 %292  ;;  %v466_v2 = vadd.f32 %v450_v53, %v6854_v28  ;;  %v596_v3 = vadd.f32 %v580_v55, %v6854_v28  ;;  %v401_v4 = vadd.f32 %v6854_v28, %v384_v56  ;;  %v531_v5 = vadd.f32 %v515_v57, %v6854_v28  ;;  %v502_v55 = vld [vmem:[#allocation11 + $0x128] sm:$0xff] }
 0x113   : > { %v449_v6 = vmul.f32 %v433_v40, %v6904_v1  ;;  %v579_v7 = vmul.f32 %v563_v41, %v6904_v1  ;;  %v383_v8 = vmul.f32 %v367_v42, %v6904_v1  ;;  %v514_v9 = vmul.f32 %v498_v51, %v6904_v1 }
 0x114   : > { %v451_v10 = vmul.f32 %v435_v52, %v6902_v0  ;;  %v581_v11 = vmul.f32 %v565_v54, %v6902_v0  ;;  %v385_v12 = vmul.f32 %v369_v62, %v6902_v0  ;;  %v516_v13 = vmul.f32 %v500_v63, %v6902_v0  ;;  %v501_v54 = vld [vmem:[#allocation11 + $0x120] sm:$0xff]  ;;  %v439_v62 = vld [vmem:[#allocation11 + $0xb8] sm:$0xff]  ;;  %v568_v63 = vld [vmem:[#allocation11 + $0x1b0] sm:$0xff] }
 0x115   : > { %v465_v17 = vadd.f32 %v449_v6, %v6854_v28  ;;  %v595_v18 = vadd.f32 %v579_v7, %v6854_v28  ;;  %v400_v19 = vadd.f32 %v6854_v28, %v383_v8  ;;  %v530_v20 = vadd.f32 %v514_v9, %v6854_v28  ;;  %v372_v6 = vld [vmem:[#allocation11 + $0x30] sm:$0xff]  ;;  %v373_v7 = vld [vmem:[#allocation11 + $0x38] sm:$0xff] }
 0x116   : > { %v6922_v24 = vpop.permute.xlu1 %312  ;;  %v6924_v25 = vpop.permute.xlu0 %307  ;;  %v467_v26 = vadd.f32 %v451_v10, %v6854_v28  ;;  %v597_v27 = vadd.f32 %v581_v11, %v6854_v28  ;;  %v402_v29 = vadd.f32 %v6854_v28, %v385_v12  ;;  %v532_v32 = vadd.f32 %v516_v13, %v6854_v28  ;;  %v503_v8 = vld [vmem:[#allocation11 + $0x130] sm:$0xff] }
 0x117   : > { %v6930_v33 = vpack.c.bf16 %v465_v17, %v464_v58  ;;  %v6932_v40 = vpack.c.bf16 %v595_v18, %v594_v59  ;;  %v6934_v41 = vpack.c.bf16 %v400_v19, %v399_v60  ;;  %v6936_v42 = vpack.c.bf16 %v530_v20, %v529_v61  ;;  %v438_v61 = vld [vmem:[#allocation11 + $0xb0] sm:$0xff] }
 0x118   : > { %v6938_v47 = vpack.c.bf16 %v467_v26, %v466_v2  ;;  %v6940_v48 = vpack.c.bf16 %v597_v27, %v596_v3  ;;  %v6942_v49 = vpack.c.bf16 %v402_v29, %v401_v4  ;;  %v6944_v50 = vpack.c.bf16 %v532_v32, %v531_v5  ;;  %v569_v5 = vld [vmem:[#allocation11 + $0x1b8] sm:$0xff] }
 0x119   : > { %8255 = vst [vmem:[#allocation19_spill] sm:$0xff] %v6932_v40  ;;  %8256 = vst [vmem:[#allocation20_spill] sm:$0xff] %v6936_v42  ;;  %5401 = vmatprep.subr.bf16.mxu0 %v6930_v33  ;;  %5465 = vmatprep.subr.bf16.mxu1 %v6932_v40  ;;  %v452_v51 = vmul.f32 %v436_v14, %v6924_v25  ;;  %v453_v52 = vmul.f32 %v437_v15, %v6922_v24 }
 0x11a   : > { %8257 = vst [vmem:[#allocation21_spill] sm:$0xff] %v6940_v48  ;;  %8258 = vst [vmem:[#allocation22_spill] sm:$0xff] %v6944_v50  ;;  %v582_v53 = vmul.f32 %v566_v16, %v6924_v25  ;;  %v6951_v56 = vpop.permute.xlu1 %322  ;;  %5402 = vmatpush3.bf16.msra.mxu0 %v6934_v41  ;;  %5466 = vmatpush3.bf16.msra.mxu1 %v6936_v42  ;;  %v6955_v57 = vpop.permute.xlu0 %317  ;;  %v583_v58 = vmul.f32 %v567_v21, %v6922_v24 }
 0x11b   : > { %v386_v59 = vmul.f32 %v370_v22, %v6924_v25  ;;  %v387_v60 = vmul.f32 %v371_v23, %v6922_v24  ;;  %5403 = vmatprep.subr.bf16.mxu0 %v6938_v47  ;;  %5467 = vmatprep.subr.bf16.mxu1 %v6940_v48  ;;  %v468_v2 = vadd.f32 %v452_v51, %v6854_v28  ;;  %v504_v22 = vld [vmem:[#allocation11 + $0x138] sm:$0xff]  ;;  %v380_v48 = vld [vmem:[#allocation11 + $0x70] sm:$0xff] }
 0x11c   : > { %v469_v3 = vadd.f32 %v453_v52, %v6854_v28  ;;  %v598_v4 = vadd.f32 %v582_v53, %v6854_v28  ;;  %v599_v9 = vadd.f32 %v583_v58, %v6854_v28  ;;  %v517_v12 = vmul.f32 %v501_v54, %v6924_v25  ;;  %v440_v54 = vld [vmem:[#allocation11 + $0xc0] sm:$0xff] }
 0x11d   : > { %v403_v10 = vadd.f32 %v6854_v28, %v386_v59  ;;  %v404_v11 = vadd.f32 %v6854_v28, %v387_v60  ;;  %v518_v14 = vmul.f32 %v502_v55, %v6922_v24  ;;  %v454_v15 = vmul.f32 %v438_v61, %v6955_v57  ;;  %v441_v55 = vld [vmem:[#allocation11 + $0xc8] sm:$0xff] }
 0x11e   : > { %v6969_v13 = vpack.c.bf16 %v469_v3, %v468_v2  ;;  %v455_v16 = vmul.f32 %v439_v62, %v6951_v56  ;;  %v6974_v17 = vpop.permute.xlu1 %332  ;;  %5404 = vmatpush3.bf16.msra.mxu0 %v6942_v49  ;;  %5468 = vmatpush3.bf16.msra.mxu1 %v6944_v50  ;;  %v6978_v18 = vpop.permute.xlu0 %327  ;;  %v6980_v19 = vpack.c.bf16 %v599_v9, %v598_v4  ;;  %v570_v62 = vld [vmem:[#allocation11 + $0x1c0] sm:$0xff] }
 0x11f   : > { %v6982_v20 = vpack.c.bf16 %v404_v11, %v403_v10  ;;  %v533_v21 = vadd.f32 %v517_v12, %v6854_v28  ;;  %v534_v23 = vadd.f32 %v518_v14, %v6854_v28  ;;  %v470_v26 = vadd.f32 %v454_v15, %v6854_v28  ;;  %v505_v14 = vld [vmem:[#allocation11 + $0x140] sm:$0xff]  ;;  %v506_v15 = vld [vmem:[#allocation11 + $0x148] sm:$0xff] }
 0x120   : > { %8259 = vst [vmem:[#allocation23_spill] sm:$0xff] %v6980_v19  ;;  %5405 = vmatprep.subr.bf16.mxu0 %v6969_v13  ;;  %v471_v27 = vadd.f32 %v455_v16, %v6854_v28  ;;  %v584_v29 = vmul.f32 %v568_v63, %v6955_v57  ;;  %5469 = vmatprep.subr.bf16.mxu1 %v6980_v19  ;;  %v571_v63 = vld [vmem:[#allocation11 + $0x1c8] sm:$0xff]  ;;  %v442_v16 = vld [vmem:[#allocation11 + $0xd0] sm:$0xff] }
 0x121   : > { %v585_v32 = vmul.f32 %v569_v5, %v6951_v56  ;;  %v388_v51 = vmul.f32 %v372_v6, %v6955_v57  ;;  %v389_v52 = vmul.f32 %v373_v7, %v6951_v56  ;;  %v519_v53 = vmul.f32 %v503_v8, %v6955_v57  ;;  %v374_v6 = vld [vmem:[#allocation11 + $0x40] sm:$0xff]  ;;  %v375_v7 = vld [vmem:[#allocation11 + $0x48] sm:$0xff] }
 0x122   : > { %v6995_v58 = vpack.c.bf16 %v534_v23, %v533_v21  ;;  %v6997_v59 = vpack.c.bf16 %v471_v27, %v470_v26  ;;  %v600_v60 = vadd.f32 %v584_v29, %v6854_v28  ;;  %v520_v61 = vmul.f32 %v504_v22, %v6951_v56  ;;  %5406 = vmatpush3.bf16.msra.mxu0 %v6982_v20  ;;  %v7006_v8 = vpop.permute.xlu1 %342  ;;  %v7009_v9 = vpop.permute.xlu0 %337  ;;  %v443_v27 = vld [vmem:[#allocation11 + $0xd8] sm:$0xff]  ;;  %v572_v29 = vld [vmem:[#allocation11 + $0x1d0] sm:$0xff] }
 0x123   : > { %v601_v2 = vadd.f32 %v585_v32, %v6854_v28  ;;  %v405_v3 = vadd.f32 %v6854_v28, %v388_v51  ;;  %v406_v4 = vadd.f32 %v6854_v28, %v389_v52  ;;  %v535_v5 = vadd.f32 %v519_v53, %v6854_v28  ;;  %v573_v32 = vld [vmem:[#allocation11 + $0x1d8] sm:$0xff] }
 0x124   : > { %8260 = vst [vmem:[#allocation24_spill] sm:$0xff] %v6995_v58  ;;  %5470 = vmatpush3.bf16.msra.mxu1 %v6995_v58  ;;  %5407 = vmatprep.subr.bf16.mxu0 %v6997_v59  ;;  %v536_v10 = vadd.f32 %v520_v61, %v6854_v28  ;;  %v456_v11 = vmul.f32 %v440_v54, %v6978_v18  ;;  %v510_v58 = vld [vmem:[#allocation11 + $0x168] sm:$0xff] }
 0x125   : > { %v457_v12 = vmul.f32 %v441_v55, %v6974_v17  ;;  %v7015_v21 = vpack.c.bf16 %v601_v2, %v600_v60  ;;  %v7017_v22 = vpack.c.bf16 %v406_v4, %v405_v3  ;;  %v586_v23 = vmul.f32 %v570_v62, %v6978_v18  ;;  %v376_v55 = vld [vmem:[#allocation11 + $0x50] sm:$0xff] }
 0x126   : > { %v587_v26 = vmul.f32 %v571_v63, %v6974_v17  ;;  %v7021_v51 = vpack.c.bf16 %v536_v10, %v535_v5  ;;  %v472_v52 = vadd.f32 %v456_v11, %v6854_v28  ;;  %v390_v54 = vmul.f32 %v374_v6, %v6978_v18  ;;  %v377_v63 = vld [vmem:[#allocation11 + $0x58] sm:$0xff]  ;;  %v507_v6 = vld [vmem:[#allocation11 + $0x150] sm:$0xff] }
 0x127   : > { %8261 = vst [vmem:[#allocation25_spill] sm:$0xff] %v7015_v21  ;;  %v473_v53 = vadd.f32 %v457_v12, %v6854_v28  ;;  %5471 = vmatprep.subr.bf16.mxu1 %v7015_v21  ;;  %5408 = vmatpush3.bf16.msra.mxu0 %v7017_v22  ;;  %v602_v60 = vadd.f32 %v586_v23, %v6854_v28  ;;  %v508_v10 = vld [vmem:[#allocation11 + $0x158] sm:$0xff]  ;;  %v574_v21 = vld [vmem:[#allocation11 + $0x1e0] sm:$0xff] }
 0x128   : > { %8262 = vst [vmem:[#allocation26_spill] sm:$0xff] %v7021_v51  ;;  %v603_v61 = vadd.f32 %v587_v26, %v6854_v28  ;;  %v391_v62 = vmul.f32 %v375_v7, %v6974_v17  ;;  %5472 = vmatpush3.bf16.msra.mxu1 %v7021_v51  ;;  %v407_v3 = vadd.f32 %v6854_v28, %v390_v54  ;;  %v7042_v26 = vpop.permute.xlu1 %352  ;;  %v445_v51 = vld [vmem:[#allocation11 + $0xe8] sm:$0xff] }
 0x129   : > { %v7032_v2 = vpack.c.bf16 %v473_v53, %v472_v52  ;;  %v521_v4 = vmul.f32 %v505_v14, %v6978_v18  ;;  %v522_v5 = vmul.f32 %v506_v15, %v6974_v17  ;;  %v458_v23 = vmul.f32 %v442_v16, %v7009_v9  ;;  %v7044_v52 = vpop.permute.xlu0 %347 }
 0x12a   : > { %v7037_v11 = vpack.c.bf16 %v603_v61, %v602_v60  ;;  %v408_v12 = vadd.f32 %v6854_v28, %v391_v62  ;;  %v459_v7 = vmul.f32 %v443_v27, %v7006_v8  ;;  %v588_v53 = vmul.f32 %v572_v29, %v7009_v9  ;;  %v444_v62 = vld [vmem:[#allocation11 + $0xe0] sm:$0xff] }
 0x12b   : > { %5409 = vmatprep.subr.bf16.mxu0 %v7032_v2  ;;  %v537_v14 = vadd.f32 %v521_v4, %v6854_v28  ;;  %v538_v15 = vadd.f32 %v522_v5, %v6854_v28  ;;  %v589_v54 = vmul.f32 %v573_v32, %v7006_v8  ;;  %v474_v16 = vadd.f32 %v458_v23, %v6854_v28 }
 0x12c   : > { %8263 = vst [vmem:[#allocation27_spill] sm:$0xff] %v7037_v11  ;;  %5473 = vmatprep.subr.bf16.mxu1 %v7037_v11  ;;  %v7052_v60 = vpack.c.bf16 %v408_v12, %v407_v3  ;;  %v475_v27 = vadd.f32 %v459_v7, %v6854_v28  ;;  %v392_v61 = vmul.f32 %v376_v55, %v7009_v9  ;;  %v575_v11 = vld [vmem:[#allocation11 + $0x1e8] sm:$0xff]  ;;  %v378_v3 = vld [vmem:[#allocation11 + $0x60] sm:$0xff]  ;;  %v7079_v50 = vpop.permute.xlu1 %362 }
 0x12d   : > { %v7057_v4 = vpack.c.bf16 %v538_v15, %v537_v14  ;;  %v604_v5 = vadd.f32 %v588_v53, %v6854_v28  ;;  %v605_v29 = vadd.f32 %v589_v54, %v6854_v28  ;;  %v393_v32 = vmul.f32 %v377_v63, %v7006_v8  ;;  %v379_v12 = vld [vmem:[#allocation11 + $0x68] sm:$0xff]  ;;  %v509_v15 = vld [vmem:[#allocation11 + $0x160] sm:$0xff] }
 0x12e   : > { %5410 = vmatpush3.bf16.msra.mxu0 %v7052_v60  ;;  %v7063_v23 = vpack.c.bf16 %v475_v27, %v474_v16  ;;  %v409_v55 = vadd.f32 %v6854_v28, %v392_v61  ;;  %v523_v7 = vmul.f32 %v507_v6, %v7009_v9  ;;  %v524_v14 = vmul.f32 %v508_v10, %v7006_v8  ;;  %v446_v16 = vld [vmem:[#allocation11 + $0xf0] sm:$0xff]  ;;  %v447_v27 = vld [vmem:[#allocation11 + $0xf8] sm:$0xff] }
 0x12f   : > { %8264 = vst [vmem:[#allocation28_spill] sm:$0xff] %v7057_v4  ;;  %5474 = vmatpush3.bf16.msra.mxu1 %v7057_v4  ;;  %v7069_v53 = vpack.c.bf16 %v605_v29, %v604_v5  ;;  %v410_v63 = vadd.f32 %v6854_v28, %v393_v32  ;;  %v460_v54 = vmul.f32 %v444_v62, %v7044_v52  ;;  %v576_v5 = vld [vmem:[#allocation11 + $0x1f0] sm:$0xff]  ;;  %v577_v29 = vld [vmem:[#allocation11 + $0x1f8] sm:$0xff]  ;;  %v7081_v32 = vpop.permute.xlu0 %357 }
 0x130   : > { %8265 = vst [vmem:[#allocation29_spill] sm:$0xff] %v7063_v23  ;;  %v461_v19 = vmul.f32 %v445_v51, %v7042_v26  ;;  %5411 = vmatprep.subr.bf16.mxu0 %v7063_v23  ;;  %v539_v6 = vadd.f32 %v523_v7, %v6854_v28  ;;  %v540_v10 = vadd.f32 %v524_v14, %v6854_v28  ;;  %v628_v23 = vld [vmem:[#allocation11 + $0x208] sm:$0xff] }
 0x131   : > { %8266 = vst [vmem:[#allocation30_spill] sm:$0xff] %v7069_v53  ;;  %v590_v61 = vmul.f32 %v574_v21, %v7044_v52  ;;  %v591_v4 = vmul.f32 %v575_v11, %v7042_v26  ;;  %5475 = vmatprep.subr.bf16.mxu1 %v7069_v53  ;;  %v7084_v51 = vpack.c.bf16 %v410_v63, %v409_v55 }
 0x132   : > { %v476_v62 = vadd.f32 %v460_v54, %v6854_v28  ;;  %v477_v7 = vadd.f32 %v461_v19, %v6854_v28  ;;  %v394_v14 = vmul.f32 %v378_v3, %v7044_v52  ;;  %v7089_v21 = vpack.c.bf16 %v540_v10, %v539_v6  ;;  %v381_v6 = vld [vmem:[#allocation11 + $0x78] sm:$0xff]  ;;  %v692_v10 = vld [vmem:[#allocation11 + $0x280] sm:$0xff] }
 0x133   : > { %8267 = vst [vmem:[#allocation31_spill] sm:$0xff] %v7084_v51  ;;  %v606_v11 = vadd.f32 %v590_v61, %v6854_v28  ;;  %v607_v42 = vadd.f32 %v591_v4, %v6854_v28  ;;  %v395_v40 = vmul.f32 %v379_v12, %v7042_v26  ;;  %5412 = vmatpush3.bf16.msra.mxu0 %v7084_v51  ;;  %v693_v61 = vld [vmem:[#allocation11 + $0x288] sm:$0xff] }
 0x134   : > { %8268 = vst [vmem:[#allocation32_spill] sm:$0xff] %v7089_v21  ;;  %v7095_v53 = vpack.c.bf16 %v477_v7, %v476_v62  ;;  %v411_v55 = vadd.f32 %v6854_v28, %v394_v14  ;;  %v525_v63 = vmul.f32 %v509_v15, %v7044_v52  ;;  %v526_v19 = vmul.f32 %v510_v58, %v7042_v26  ;;  %v511_v7 = vld [vmem:[#allocation11 + $0x170] sm:$0xff]  ;;  %v512_v14 = vld [vmem:[#allocation11 + $0x178] sm:$0xff] }
 0x135   : > { %5476 = vmatpush3.bf16.msra.mxu1 %v7089_v21  ;;  %v7101_v3 = vpack.c.bf16 %v607_v42, %v606_v11  ;;  %v412_v54 = vadd.f32 %v6854_v28, %v395_v40  ;;  %v462_v4 = vmul.f32 %v446_v16, %v7081_v32  ;;  %v463_v12 = vmul.f32 %v447_v27, %v7079_v50  ;;  %v822_v40 = vld [vmem:[#allocation11 + $0x380] sm:$0xff] }
 0x136   : > { %8269 = vst [vmem:[#allocation33_spill] sm:$0xff] %v7095_v53  ;;  %5413 = vmatprep.subr.bf16.mxu0 %v7095_v53  ;;  %v541_v62 = vadd.f32 %v525_v63, %v6854_v28  ;;  %v542_v15 = vadd.f32 %v526_v19, %v6854_v28  ;;  %v592_v58 = vmul.f32 %v576_v5, %v7081_v32  ;;  %v823_v63 = vld [vmem:[#allocation11 + $0x388] sm:$0xff]  ;;  %v627_v53 = vld [vmem:[#allocation11 + $0x200] sm:$0xff] }
 0x137   : > { %8270 = vst [vmem:[#allocation34_spill] sm:$0xff] %v7101_v3  ;;  %v593_v42 = vmul.f32 %v577_v29, %v7079_v50  ;;  %5477 = vmatprep.subr.bf16.mxu1 %v7101_v3  ;;  %v7112_v16 = vpack.c.bf16 %v412_v54, %v411_v55  ;;  %v478_v27 = vadd.f32 %v462_v4, %v6854_v28 }
 0x138   : > { %v479_v11 = vadd.f32 %v463_v12, %v6854_v28  ;;  %v396_v21 = vmul.f32 %v380_v48, %v7081_v32  ;;  %v7117_v19 = vpack.c.bf16 %v542_v15, %v541_v62  ;;  %v608_v5 = vadd.f32 %v592_v58, %v6854_v28  ;;  %v757_v12 = vld [vmem:[#allocation11 + $0x300] sm:$0xff]  ;;  %v758_v62 = vld [vmem:[#allocation11 + $0x308] sm:$0xff] }
 0x139   : > { %8271 = vst [vmem:[#allocation35_spill] sm:$0xff] %v7112_v16  ;;  %v609_v29 = vadd.f32 %v593_v42, %v6854_v28  ;;  %v397_v51 = vmul.f32 %v381_v6, %v7079_v50  ;;  %5414 = vmatpush3.bf16.msra.mxu0 %v7112_v16  ;;  %v527_v4 = vmul.f32 %v511_v7, %v7081_v32  ;;  %v629_v16 = vld [vmem:[#allocation11 + $0x210] sm:$0xff] }
 0x13a   : > { %8272 = vst [vmem:[#allocation36_spill] sm:$0xff] %v7117_v19  ;;  %v7123_v55 = vpack.c.bf16 %v479_v11, %v478_v27  ;;  %v413_v54 = vadd.f32 %v6854_v28, %v396_v21  ;;  %v528_v48 = vmul.f32 %v512_v14, %v7079_v50  ;;  %5478 = vmatpush3.bf16.msra.mxu1 %v7117_v19  ;;  %v694_v27 = vld [vmem:[#allocation11 + $0x290] sm:$0xff]  ;;  %v695_v11 = vld [vmem:[#allocation11 + $0x298] sm:$0xff] }
 0x13b   : > { %v7129_v15 = vpack.c.bf16 %v609_v29, %v608_v5  ;;  %v414_v6 = vadd.f32 %v6854_v28, %v397_v51  ;;  %v708_v58 = vmul.f32 %v692_v10, %v6876_v39  ;;  %v709_v42 = vmul.f32 %v693_v61, %v6904_v1  ;;  %v6103_v5 = vld [vmem:[%s6774_s17] sm:$0xff]  }
 0x13c   : > { %8273 = vst [vmem:[#allocation37_spill] sm:$0xff] %v7123_v55  ;;  %5415 = vmatprep.subr.bf16.mxu0 %v7123_v55  ;;  %v543_v21 = vadd.f32 %v527_v4, %v6854_v28  ;;  %v544_v7 = vadd.f32 %v528_v48, %v6854_v28  ;;  %v838_v14 = vmul.f32 %v822_v40, %v6876_v39  ;;  %v825_v55 = vld [vmem:[#allocation11 + $0x398] sm:$0xff] }
 0x13d   : > { %8274 = vst [vmem:[#allocation38_spill] sm:$0xff] %v7129_v15  ;;  %v839_v19 = vmul.f32 %v823_v63, %v6904_v1  ;;  %5479 = vmatprep.subr.bf16.mxu1 %v7129_v15  ;;  %v7141_v51 = vpack.c.bf16 %v414_v6, %v413_v54  ;;  %v724_v10 = vadd.f32 %v708_v58, %v6854_v28  ;;  %v824_v63 = vld [vmem:[#allocation11 + $0x390] sm:$0xff] }
 0x13e   : > { %v725_v61 = vadd.f32 %v709_v42, %v6854_v28  ;;  %v643_v29 = vmul.f32 %v627_v53, %v6876_v39  ;;  %v7146_v3 = vpack.c.bf16 %v544_v7, %v543_v21  ;;  %v854_v4 = vadd.f32 %v838_v14, %v6854_v28  ;;  %v630_v42 = vld [vmem:[#allocation11 + $0x218] sm:$0xff]  ;;  %v759_v21 = vld [vmem:[#allocation11 + $0x310] sm:$0xff] }
 0x13f   : > { %8275 = vst [vmem:[#allocation39_spill] sm:$0xff] %v7141_v51  ;;  %v855_v48 = vadd.f32 %v839_v19, %v6854_v28  ;;  %v644_v40 = vmul.f32 %v628_v23, %v6904_v1  ;;  %5416 = vmatpush3.bf16.msra.mxu0 %v7141_v51  ;;  %v773_v58 = vmul.f32 %v757_v12, %v6876_v39  ;;  %v760_v7 = vld [vmem:[#allocation11 + $0x318] sm:$0xff] }
 0x140   : > { %8276 = vst [vmem:[#allocation40_spill] sm:$0xff] %v7146_v3  ;;  %v7152_v54 = vpack.c.bf16 %v725_v61, %v724_v10  ;;  %v659_v6 = vadd.f32 %v643_v29, %v6854_v28  ;;  %v774_v53 = vmul.f32 %v758_v62, %v6904_v1  ;;  %5480 = vmatpush3.bf16.msra.mxu1 %v7146_v3  ;;  %v696_v61 = vld [vmem:[#allocation11 + $0x2a0] sm:$0xff]  ;;  %v697_v29 = vld [vmem:[#allocation11 + $0x2a8] sm:$0xff] }
 0x141   : > { %v7158_v19 = vpack.c.bf16 %v855_v48, %v854_v4  ;;  %v660_v23 = vadd.f32 %v644_v40, %v6854_v28  ;;  %v710_v14 = vmul.f32 %v694_v27, %v6874_v38  ;;  %v711_v10 = vmul.f32 %v695_v11, %v6902_v0  ;;  %v826_v48 = vld [vmem:[#allocation11 + $0x3a0] sm:$0xff]  ;;  %v827_v3 = vld [vmem:[#allocation11 + $0x3a8] sm:$0xff] }
 0x142   : > { %8277 = vst [vmem:[#allocation41_spill] sm:$0xff] %v7152_v54  ;;  %5529 = vmatprep.subr.bf16.mxu0 %v7152_v54  ;;  %v789_v12 = vadd.f32 %v773_v58, %v6854_v28  ;;  %v790_v62 = vadd.f32 %v774_v53, %v6854_v28  ;;  %v840_v15 = vmul.f32 %v824_v63, %v6874_v38  ;;  %v6108_v54 = vld [vmem:[%s6774_s17 + $0x18] sm:$0xff]  }
 0x143   : > { %8278 = vst [vmem:[#allocation42_spill] sm:$0xff] %v7158_v19  ;;  %v841_v4 = vmul.f32 %v825_v55, %v6902_v0  ;;  %5593 = vmatprep.subr.bf16.mxu1 %v7158_v19  ;;  %2341 = vmatmul.mubr.bf16.vlgmr.msra.gmra.mrb[0].mxu0 %v6103_v5  ;;  %v7169_v27 = vpack.c.bf16 %v660_v23, %v659_v6  ;;  %v631_v5 = vld [vmem:[#allocation11 + $0x220] sm:$0xff]  ;;  %v828_v19 = vld [vmem:[#allocation11 + $0x3b0] sm:$0xff] }
 0x144   : > { %v726_v11 = vadd.f32 %v710_v14, %v6854_v28  ;;  %v727_v40 = vadd.f32 %v711_v10, %v6854_v28  ;;  %2438 = vmatmul.mubr.bf16.vlgmr.msra.gmra.mrb[0].mxu1 %v6857_v30  ;;  %v7175_v58 = vpack.c.bf16 %v790_v62, %v789_v12  ;;  %v856_v63 = vadd.f32 %v840_v15, %v6854_v28  ;;  %v632_v10 = vld [vmem:[#allocation11 + $0x228] sm:$0xff]  ;;  %v761_v12 = vld [vmem:[#allocation11 + $0x320] sm:$0xff] }
 0x145   : > { %8279 = vst [vmem:[#allocation43_spill] sm:$0xff] %v7169_v27  ;;  %v857_v55 = vadd.f32 %v841_v4, %v6854_v28  ;;  %v645_v53 = vmul.f32 %v629_v16, %v6874_v38  ;;  %5530 = vmatpush3.bf16.msra.mxu0 %v7169_v27  ;;  %v646_v23 = vmul.f32 %v630_v42, %v6902_v0 }
 0x146   : > { %8280 = vst [vmem:[#allocation44_spill] sm:$0xff] %v7175_v58  ;;  %v7181_v6 = vpack.c.bf16 %v727_v40, %v726_v11  ;;  %v775_v14 = vmul.f32 %v759_v21, %v6874_v38  ;;  %v776_v30 = vmul.f32 %v760_v7, %v6902_v0  ;;  %5594 = vmatpush3.bf16.msra.mxu1 %v7175_v58  ;;  %v6109_v11 = vld [vmem:[%s6774_s17 + $0xc] sm:$0xff]   ;;  %v762_v40 = vld [vmem:[#allocation11 + $0x328] sm:$0xff] }
 0x147   : > { %v7187_v15 = vpack.c.bf16 %v857_v55, %v856_v63  ;;  %v661_v62 = vadd.f32 %v645_v53, %v6854_v28  ;;  %v712_v16 = vmul.f32 %v696_v61, %v6924_v25  ;;  %v713_v4 = vmul.f32 %v697_v29, %v6922_v24  ;;  %v698_v55 = vld [vmem:[#allocation11 + $0x2b0] sm:$0xff]  ;;  %2348 = vmatprep.mubr.bf16.mxu0 %v6863_v34  ;;  %v699_v58 = vld [vmem:[#allocation11 + $0x2b8] sm:$0xff] }
 0x148   : > { %8281 = vst [vmem:[#allocation45_spill] sm:$0xff] %v7181_v6  ;;  %5531 = vmatprep.subr.bf16.mxu0 %v7181_v6  ;;  %v662_v42 = vadd.f32 %v646_v23, %v6854_v28  ;;  %v791_v21 = vadd.f32 %v775_v14, %v6854_v28  ;;  %v792_v7 = vadd.f32 %v776_v30, %v6854_v28  ;;  %v7204_v23 = vld [vmem:[%s6774_s17 + $0x48] sm:$0xff]  }
 0x149   : > { %8282 = vst [vmem:[#allocation46_spill] sm:$0xff] %v7187_v15  ;;  %v842_v63 = vmul.f32 %v826_v48, %v6924_v25  ;;  %5595 = vmatprep.subr.bf16.mxu1 %v7187_v15  ;;  %v728_v61 = vadd.f32 %v712_v16, %v6854_v28  ;;  %v729_v29 = vadd.f32 %v713_v4, %v6854_v28  ;;  %v829_v16 = vld [vmem:[#allocation11 + $0x3b8] sm:$0xff]  ;;  %v633_v6 = vld [vmem:[#allocation11 + $0x230] sm:$0xff] }
 0x14a   : > { %v843_v53 = vmul.f32 %v827_v3, %v6922_v24  ;;  %v7206_v14 = vpack.c.bf16 %v662_v42, %v661_v62  ;;  %v7208_v30 = vpack.c.bf16 %v792_v7, %v791_v21  ;;  %2445 = vmatprep.mubr.bf16.mxu1 %v6108_v54  ;;  %v647_v15 = vmul.f32 %v631_v5, %v6924_v25  ;;  %v634_v4 = vld [vmem:[#allocation11 + $0x238] sm:$0xff]  ;;  %v763_v42 = vld [vmem:[#allocation11 + $0x330] sm:$0xff] }
 0x14b   : > { %v858_v48 = vadd.f32 %v842_v63, %v6854_v28  ;;  %v7212_v27 = vpack.c.bf16 %v729_v29, %v728_v61  ;;  %v648_v3 = vmul.f32 %v632_v10, %v6922_v24  ;;  %v777_v51 = vmul.f32 %v761_v12, %v6924_v25  ;;  %2349 = vmatmul.mubr.bf16.gmra.mrb[4].mxu0 %v6109_v11  ;;  %v764_v7 = vld [vmem:[#allocation11 + $0x338] sm:$0xff]  ;;  %v700_v29 = vld [vmem:[#allocation11 + $0x2c0] sm:$0xff]  ;;  %v701_v11 = vld [vmem:[#allocation11 + $0x2c8] sm:$0xff] }
 0x14c   : > { %8283 = vst [vmem:[#allocation47_spill] sm:$0xff] %v7208_v30  ;;  %v859_v34 = vadd.f32 %v843_v53, %v6854_v28  ;;  %5532 = vmatpush3.bf16.msra.mxu0 %v7206_v14  ;;  %5596 = vmatpush3.bf16.msra.mxu1 %v7208_v30  ;;  %v663_v62 = vadd.f32 %v647_v15, %v6854_v28  ;;  %v830_v53 = vld [vmem:[#allocation11 + $0x3c0] sm:$0xff] }
 0x14d   : > { %8284 = vst [vmem:[#allocation48_spill] sm:$0xff] %v7212_v27  ;;  %v778_v54 = vmul.f32 %v762_v40, %v6922_v24  ;;  %v714_v5 = vmul.f32 %v698_v55, %v6955_v57  ;;  %5533 = vmatprep.subr.bf16.mxu0 %v7212_v27  ;;  %v664_v10 = vadd.f32 %v648_v3, %v6854_v28  ;;  %v6114_v3 = vld [vmem:[%s6774_s17 + $0x24] sm:$0xff]  }
 0x14e   : > { %v7223_v21 = vpack.c.bf16 %v859_v34, %v858_v48  ;;  %v793_v12 = vadd.f32 %v777_v51, %v6854_v28  ;;  %2446 = vmatmul.mubr.bf16.gmra.mrb[4].mxu1 %v6860_v31  ;;  %v715_v40 = vmul.f32 %v699_v58, %v6951_v56  ;;  %v844_v61 = vmul.f32 %v828_v19, %v6955_v57  ;;  %v831_v58 = vld [vmem:[#allocation11 + $0x3c8] sm:$0xff]  ;;  %v702_v27 = vld [vmem:[#allocation11 + $0x2d0] sm:$0xff] }
 0x14f   : > { %v794_v15 = vadd.f32 %v778_v54, %v6854_v28  ;;  %v730_v55 = vadd.f32 %v714_v5, %v6854_v28  ;;  %v7234_v51 = vpack.c.bf16 %v664_v10, %v663_v62  ;;  %v845_v48 = vmul.f32 %v829_v16, %v6951_v56  ;;  %v635_v54 = vld [vmem:[#allocation11 + $0x240] sm:$0xff]  ;;  %2356 = vmatprep.mubr.bf16.mxu0 %v6866_v35  ;;  %v636_v10 = vld [vmem:[#allocation11 + $0x248] sm:$0xff] }
 0x150   : > { %8285 = vst [vmem:[#allocation49_spill] sm:$0xff] %v7223_v21  ;;  %5597 = vmatprep.subr.bf16.mxu1 %v7223_v21  ;;  %v649_v31 = vmul.f32 %v633_v6, %v6955_v57  ;;  %v650_v34 = vmul.f32 %v634_v4, %v6951_v56  ;;  %v731_v19 = vadd.f32 %v715_v40, %v6854_v28  ;;  %v6115_v62 = vld [vmem:[%s6774_s17 + $0x18] sm:$0xff]  }
 0x151   : > { %8286 = vst [vmem:[#allocation50_spill] sm:$0xff] %v7234_v51  ;;  %v7240_v5 = vpack.c.bf16 %v794_v15, %v793_v12  ;;  %v860_v63 = vadd.f32 %v844_v61, %v6854_v28  ;;  %v779_v30 = vmul.f32 %v763_v42, %v6955_v57  ;;  %v7248_v16 = vld [vmem:[%s6774_s17 + $0x3c] sm:$0xfe]   ;;  %5534 = vmatpush3.bf16.msra.mxu0 %v7234_v51 }
 0x152   : > { %v861_v6 = vadd.f32 %v845_v48, %v6854_v28  ;;  %v665_v4 = vadd.f32 %v649_v31, %v6854_v28  ;;  %v666_v12 = vadd.f32 %v650_v34, %v6854_v28  ;;  %v780_v15 = vmul.f32 %v764_v7, %v6951_v56  ;;  %v765_v21 = vld [vmem:[#allocation11 + $0x340] sm:$0xff]  ;;  %v766_v51 = vld [vmem:[#allocation11 + $0x348] sm:$0xff]  ;;  %2453 = vmatprep.mubr.bf16.mxu1 %v6114_v3 }
 0x153   : > { %8287 = vst [vmem:[#allocation51_spill] sm:$0xff] %v7240_v5  ;;  %5598 = vmatpush3.bf16.msra.mxu1 %v7240_v5  ;;  %v7256_v40 = vpack.c.bf16 %v731_v19, %v730_v55  ;;  %v795_v35 = vadd.f32 %v779_v30, %v6854_v28  ;;  %v716_v42 = vmul.f32 %v700_v29, %v6978_v18  ;;  %v703_v55 = vld [vmem:[#allocation11 + $0x2d8] sm:$0xff]  ;;  %v832_v19 = vld [vmem:[#allocation11 + $0x3d0] sm:$0xff] }
 0x154   : > { %v717_v61 = vmul.f32 %v701_v11, %v6974_v17  ;;  %v7261_v48 = vpack.c.bf16 %v861_v6, %v860_v63  ;;  %v7263_v31 = vpack.c.bf16 %v666_v12, %v665_v4  ;;  %v796_v34 = vadd.f32 %v780_v15, %v6854_v28  ;;  %v833_v4 = vld [vmem:[#allocation11 + $0x3d8] sm:$0xff]  ;;  %2357 = vmatmul.mubr.bf16.gmra.mrb[8].mxu0 %v6115_v62  ;;  %v705_v12 = vld [vmem:[#allocation11 + $0x2e8] sm:$0xff] }
 0x155   : > { %v846_v7 = vmul.f32 %v830_v53, %v6978_v18  ;;  %5535 = vmatprep.subr.bf16.mxu0 %v7256_v40  ;;  %v732_v30 = vadd.f32 %v716_v42, %v6854_v28  ;;  %v847_v11 = vmul.f32 %v831_v58, %v6974_v17  ;;  %v651_v63 = vmul.f32 %v635_v54, %v6978_v18  ;;  %v637_v54 = vld [vmem:[#allocation11 + $0x250] sm:$0xff] }
 0x156   : > { %8288 = vst [vmem:[#allocation52_spill] sm:$0xff] %v7261_v48  ;;  %8289 = vst [vmem:[#allocation53_spill] sm:$0xff] %v7263_v31  ;;  %v733_v29 = vadd.f32 %v717_v61, %v6854_v28  ;;  %5599 = vmatprep.subr.bf16.mxu1 %v7261_v48  ;;  %5536 = vmatpush3.bf16.msra.mxu0 %v7263_v31  ;;  %v7274_v6 = vpack.c.bf16 %v796_v34, %v795_v35  ;;  %v638_v61 = vld [vmem:[#allocation11 + $0x258] sm:$0xff] }
 0x157   : > { %v862_v53 = vadd.f32 %v846_v7, %v6854_v28  ;;  %v652_v3 = vmul.f32 %v636_v10, %v6974_v17  ;;  %v863_v42 = vadd.f32 %v847_v11, %v6854_v28  ;;  %2454 = vmatmul.mubr.bf16.gmra.mrb[8].mxu1 %v6869_v36  ;;  %v667_v58 = vadd.f32 %v651_v63, %v6854_v28  ;;  %v768_v36 = vld [vmem:[#allocation11 + $0x358] sm:$0xff] }
 0x158   : > { %8290 = vst [vmem:[#allocation54_spill] sm:$0xff] %v7274_v6  ;;  %v7279_v15 = vpack.c.bf16 %v733_v29, %v732_v30  ;;  %5600 = vmatpush3.bf16.msra.mxu1 %v7274_v6  ;;  %v781_v34 = vmul.f32 %v765_v21, %v6978_v18  ;;  %v782_v7 = vmul.f32 %v766_v51, %v6974_v17  ;;  %v767_v30 = vld [vmem:[#allocation11 + $0x350] sm:$0xff]  ;;  %v704_v29 = vld [vmem:[#allocation11 + $0x2e0] sm:$0xff] }
 0x159   : > { %v668_v10 = vadd.f32 %v652_v3, %v6854_v28  ;;  %v718_v62 = vmul.f32 %v702_v27, %v7009_v9  ;;  %v7291_v11 = vpack.c.bf16 %v863_v42, %v862_v53  ;;  %v719_v63 = vmul.f32 %v703_v55, %v7006_v8  ;;  %v6120_v21 = vld [vmem:[%s6774_s17 + $0x30] sm:$0xff]   ;;  %v7298_v6 = vld [vmem:[%s6774_s17 + $0x44] ss:$0 sps:$4 sm:$0x11]   ;;  %2364 = vmatprep.mubr.bf16.mxu0 %v6879_v43 }
 0x15a   : > { %8291 = vst [vmem:[#allocation55_spill] sm:$0xff] %v7279_v15  ;;  %5537 = vmatprep.subr.bf16.mxu0 %v7279_v15  ;;  %v848_v35 = vmul.f32 %v832_v19, %v7009_v9  ;;  %v849_v3 = vmul.f32 %v833_v4, %v7006_v8  ;;  %v797_v27 = vadd.f32 %v781_v34, %v6854_v28  ;;  %v834_v53 = vld [vmem:[#allocation11 + $0x3e0] sm:$0xff]  ;;  %v835_v42 = vld [vmem:[#allocation11 + $0x3e8] sm:$0xff] }
 0x15b   : > { %8292 = vst [vmem:[#allocation56_spill] sm:$0xff] %v7291_v11  ;;  %v7300_v51 = vpack.c.bf16 %v668_v10, %v667_v58  ;;  %v798_v48 = vadd.f32 %v782_v7, %v6854_v28  ;;  %v734_v5 = vadd.f32 %v718_v62, %v6854_v28  ;;  %v6121_v55 = vld [vmem:[%s6774_s17 + $0x24] sm:$0xff]   ;;  %5601 = vmatprep.subr.bf16.mxu1 %v7291_v11  ;;  %v639_v15 = vld [vmem:[#allocation11 + $0x260] sm:$0xff] }
 0x15c   : > { %v735_v19 = vadd.f32 %v719_v63, %v6854_v28  ;;  %v864_v4 = vadd.f32 %v848_v35, %v6854_v28  ;;  %v865_v58 = vadd.f32 %v849_v3, %v6854_v28  ;;  %v653_v10 = vmul.f32 %v637_v54, %v7009_v9  ;;  %v640_v11 = vld [vmem:[#allocation11 + $0x268] sm:$0xff]  ;;  %v7319_v31 = vld [vmem:[%s6774_s17 + $0x50] ss:$0 sps:$4 sm:$0x11]   ;;  %2461 = vmatprep.mubr.bf16.mxu1 %v6120_v21 }
 0x15d   : > { %5538 = vmatpush3.bf16.msra.mxu0 %v7300_v51  ;;  %v7313_v34 = vpack.c.bf16 %v798_v48, %v797_v27  ;;  %v654_v7 = vmul.f32 %v638_v61, %v7006_v8  ;;  %v783_v62 = vmul.f32 %v767_v30, %v7009_v9  ;;  %v784_v43 = vmul.f32 %v768_v36, %v7006_v8  ;;  %v769_v21 = vld [vmem:[#allocation11 + $0x360] sm:$0xff] }
 0x15e   : > { %v7321_v63 = vpack.c.bf16 %v735_v19, %v734_v5  ;;  %v7323_v35 = vpack.c.bf16 %v865_v58, %v864_v4  ;;  %v669_v54 = vadd.f32 %v653_v10, %v6854_v28  ;;  %v720_v48 = vmul.f32 %v704_v29, %v7044_v52  ;;  %v770_v19 = vld [vmem:[#allocation11 + $0x368] sm:$0xff]  ;;  %2365 = vmatmul.mubr.bf16.gmra.mrb[12].mxu0 %v6121_v55  ;;  %v642_v55 = vld [vmem:[#allocation11 + $0x278] sm:$0xff] }
 0x15f   : > { %8293 = vst [vmem:[#allocation57_spill] sm:$0xff] %v7313_v34  ;;  %5602 = vmatpush3.bf16.msra.mxu1 %v7313_v34  ;;  %v670_v61 = vadd.f32 %v654_v7, %v6854_v28  ;;  %v799_v30 = vadd.f32 %v783_v62, %v6854_v28  ;;  %v800_v36 = vadd.f32 %v784_v43, %v6854_v28  ;;  %v6126_v4 = vld [vmem:[%s6774_s17 + $0x3c] sm:$0xff]   ;;  %v707_v43 = vld [vmem:[#allocation11 + $0x2f8] sm:$0xff] }
 0x160   : > { %8294 = vst [vmem:[#allocation58_spill] sm:$0xff] %v7321_v63  ;;  %8295 = vst [vmem:[#allocation59_spill] sm:$0xff] %v7323_v35  ;;  %v721_v3 = vmul.f32 %v705_v12, %v7042_v26  ;;  %5539 = vmatprep.subr.bf16.mxu0 %v7321_v63  ;;  %5603 = vmatprep.subr.bf16.mxu1 %v7323_v35  ;;  %v736_v5 = vadd.f32 %v720_v48, %v6854_v28  ;;  %v706_v62 = vld [vmem:[#allocation11 + $0x2f0] sm:$0xff]  ;;  %v887_v63 = vld [vmem:[#allocation11 + $0x400] sm:$0xff] }
 0x161   : > { %v850_v27 = vmul.f32 %v834_v53, %v7044_v52  ;;  %v851_v29 = vmul.f32 %v835_v42, %v7042_v26  ;;  %v7339_v10 = vpack.c.bf16 %v670_v61, %v669_v54  ;;  %v7341_v7 = vpack.c.bf16 %v800_v36, %v799_v30  ;;  %2462 = vmatmul.mubr.bf16.gmra.mrb[12].mxu1 %v6872_v37  ;;  %v836_v48 = vld [vmem:[#allocation11 + $0x3f0] sm:$0xff]  ;;  %v837_v30 = vld [vmem:[#allocation11 + $0x3f8] sm:$0xff] }
 0x162   : > { %v737_v12 = vadd.f32 %v721_v3, %v6854_v28  ;;  %v8298_v53 = vshll.u32 %v7204_v23, 16  ;;  %v655_v54 = vmul.f32 %v639_v15, %v7044_v52  ;;  %v656_v61 = vmul.f32 %v640_v11, %v7042_v26  ;;  %v641_v36 = vld [vmem:[#allocation11 + $0x270] sm:$0xff]  ;;  %2372 = vmatprep.mubr.bf16.mxu0 %v6882_v44  ;;  %v772_v15 = vld [vmem:[#allocation11 + $0x378] sm:$0xff]  ;;  %2469 = vmatprep.mubr.bf16.mxu1 %v6126_v4 }
 0x163   : > { %8296 = vst [vmem:[#allocation60_spill] sm:$0xff] %v7339_v10  ;;  %8297 = vst [vmem:[#allocation61_spill] sm:$0xff] %v7341_v7  ;;  %v866_v35 = vadd.f32 %v850_v27, %v6854_v28  ;;  %v867_v58 = vadd.f32 %v851_v29, %v6854_v28  ;;  %5540 = vmatpush3.bf16.msra.mxu0 %v7339_v10  ;;  %5604 = vmatpush3.bf16.msra.mxu1 %v7341_v7  ;;  %v771_v29 = vld [vmem:[#allocation11 + $0x370] sm:$0xff]  ;;  %v1195_v11 = vshll.u32 %v7319_v31, 16  ;;  %v888_v7 = vld [vmem:[#allocation11 + $0x408] sm:$0xff] }
 0x164   : > { %v7347_v42 = vrot.slane %v8298_v53, 1  ;;  %v7356_v37 = vpack.c.bf16 %v737_v12, %v736_v5  ;;  %v785_v3 = vmul.f32 %v769_v21, %v7044_v52  ;;  %v786_v27 = vmul.f32 %v770_v19, %v7042_v26  ;;  %v6127_v5 = vld [vmem:[%s6774_s17 + $0x30] sm:$0xff]  }
 0x165   : > { %v7361_v53 = vpack.c.bf16 %v867_v58, %v866_v35  ;;  %v671_v34 = vadd.f32 %v655_v54, %v6854_v28  ;;  %v672_v44 = vadd.f32 %v656_v61, %v6854_v28  ;;  %v722_v10 = vmul.f32 %v706_v62, %v7081_v32 }
 0x166   : > { %5541 = vmatprep.subr.bf16.mxu0 %v7356_v37  ;;  %v801_v21 = vadd.f32 %v785_v3, %v6854_v28  ;;  %v802_v19 = vadd.f32 %v786_v27, %v6854_v28  ;;  %v723_v31 = vmul.f32 %v707_v43, %v7079_v50  ;;  %v852_v35 = vmul.f32 %v836_v48, %v7081_v32  ;;  %v6132_v27 = vld [vmem:[%s6774_s17 + $0x48] sm:$0xff]  }
 0x167   : > { %5605 = vmatprep.subr.bf16.mxu1 %v7361_v53  ;;  %v7373_v58 = vpack.c.bf16 %v672_v44, %v671_v34  ;;  %v738_v4 = vadd.f32 %v722_v10, %v6854_v28  ;;  %v853_v12 = vmul.f32 %v837_v30, %v7079_v50  ;;  %v657_v62 = vmul.f32 %v641_v36, %v7081_v32  ;;  %v6142_v36 = vld [vmem:[%s6774_s17 + $0x54] sm:$0xff]   ;;  %v6143_v44 = vld [vmem:[%s6774_s17 + $0x5c] ss:$0 sps:$4 sm:$0x11]  }
 0x168   : > { %v7378_v54 = vpack.c.bf16 %v802_v19, %v801_v21  ;;  %v739_v61 = vadd.f32 %v723_v31, %v6854_v28  ;;  %v868_v43 = vadd.f32 %v852_v35, %v6854_v28  ;;  %v658_v48 = vmul.f32 %v642_v55, %v7079_v50  ;;  %2373 = vmatmul.mubr.bf16.gmra.mrb[16].mxu0 %v6127_v5 }
 0x169   : > { %5542 = vmatpush3.bf16.msra.mxu0 %v7373_v58  ;;  %v869_v3 = vadd.f32 %v853_v12, %v6854_v28  ;;  %v673_v34 = vadd.f32 %v657_v62, %v6854_v28  ;;  %v787_v10 = vmul.f32 %v771_v29, %v7081_v32  ;;  %v788_v30 = vmul.f32 %v772_v15, %v7079_v50  ;;  %v6141_v62 = vld [vmem:[%s6774_s17 + $0x50] ss:$0 sps:$4 sm:$0x11]  }
 0x16a   : > { %5606 = vmatpush3.bf16.msra.mxu1 %v7378_v54  ;;  %v7392_v21 = vpack.c.bf16 %v739_v61, %v738_v4  ;;  %v674_v55 = vadd.f32 %v658_v48, %v6854_v28  ;;  %v903_v19 = vmul.f32 %v887_v63, %v6876_v39  ;;  %v904_v31 = vmul.f32 %v888_v7, %v6904_v1  ;;  %v6140_v63 = vld [vmem:[%s6774_s17 + $0x48] sm:$0xfe]  }
 0x16b   : > { %v7397_v35 = vpack.c.bf16 %v869_v3, %v868_v43  ;;  %v803_v29 = vadd.f32 %v787_v10, %v6854_v28  ;;  %v804_v15 = vadd.f32 %v788_v30, %v6854_v28  ;;  %2470 = vmatmul.mubr.bf16.gmra.mrb[16].mxu1 %v6885_v45  ;;  %v1197_v12 = vrot.slane %v1195_v11, 1  ;;  %2380 = vmatprep.mubr.bf16.mxu0 %v6888_v46  ;;  %v6133_v45 = vld [vmem:[%s6774_s17 + $0x3c] sm:$0xff]   ;;  %v6138_v46 = vld [vmem:[%s6774_s17 + $0x54] sm:$0xff]  }
 0x16c   : > { %5543 = vmatprep.subr.bf16.mxu0 %v7392_v21  ;;  %v7403_v4 = vpack.c.bf16 %v674_v55, %v673_v34  ;;  %v919_v39 = vadd.f32 %v903_v19, %v6854_v28  ;;  %v920_v1 = vadd.f32 %v904_v31, %v6854_v28  ;;  %2477 = vmatprep.mubr.bf16.mxu1 %v6132_v27  ;;  %v8299_v11 = vshrl.u32 %v7204_v23, 16  ;;  %v6150_v34 = vld [vmem:[%s6774_s17 + $0x18] sm:$0xff]   ;;  %v6151_v55 = vld [vmem:[%s6774_s17 + $0x20] ss:$0 sps:$4 sm:$0x11]   ;;  %v902_v31 = vld [vmem:[#allocation11 + $0x478] sm:$0xff] }
 0x16d   : > { %5607 = vmatprep.subr.bf16.mxu1 %v7397_v35  ;;  %v7410_v7 = vpack.c.bf16 %v804_v15, %v803_v29  ;;  %v1202_v61 = vshll.u32 %v6142_v36, 16  ;;  %v1207_v43 = vshll.u32 %v6143_v44, 16  ;;  %v8300_v3 = vrot.slane %v7298_v6, 1  ;;  %v6139_v29 = vld [vmem:[%s6774_s17 + $0x48] sm:$0xff]   ;;  %v6144_v15 = vld [vmem:[%s6774_s17 + $0x60] sm:$0xff]  }
 0x16e   : > { %v1193_v5 = vor.u32 %v7347_v42, %v8299_v11  ;;  %5544 = vmatpush3.bf16.msra.mxu0 %v7403_v4  ;;  %v7418_v48 = vpack.c.bf16 %v920_v1, %v919_v39  ;;  %v8301_v23 = vrot.slane %v7248_v16, 1  ;;  %v1200_v30 = vshrl.u32 %v6142_v36, 16  ;;  %v901_v16 = vld [vmem:[#allocation11 + $0x470] sm:$0xff]  ;;  %v6147_v39 = vld [vmem:[%s6774_s17 + $0x5c] ss:$0 sps:$4 sm:$0x11]  }
 0x16f   : > { %5608 = vmatpush3.bf16.msra.mxu1 %v7410_v7  ;;  %v1204_v27 = vrot.slane %v1202_v61, 1  ;;  %v1334_v44 = vrot.slane %v6140_v63, 1  ;;  %v1209_v6 = vrot.slane %v1207_v43, 1  ;;  %v1927_v19 = vshll.u32 %v6150_v34, 16  ;;  %v6152_v1 = vld [vmem:[%s6774_s17 + $0xc] sm:$0xff]  }
 0x170   : > { %5945 = vmatprep.subr.bf16.mxu0 %v7418_v48  ;;  %5673 = vmatprep.subr.bf16.mxu1 %v6930_v33  ;;  %v1333_v42 = vsel %vm1315_vm1, %v8301_v23, %v8300_v3  ;;  %v1198_v10 = vsel %vm1114_vm0, %v1193_v5, %v1197_v12  ;;  %v1335_v33 = vrot.slane %v6141_v62, 1  ;;  %v6146_v12 = vld [vmem:[%s6774_s17 + $0x54] sm:$0xfe]   ;;  %v917_v11 = vmul.f32 %v901_v16, %v7081_v32  ;;  %v6149_v61 = vld [vmem:[%s6774_s17 + $0x14] ss:$0 sps:$4 sm:$0x11]  }
 0x171   : > { %2381 = vmatmul.mubr.bf16.gmra.mrb[20].mxu0 %v6133_v45  ;;  %v1205_v36 = vor.u32 %v1204_v27, %v1200_v30  ;;  %v6148_v45 = vld [vmem:[%s6774_s17 + $0xc] sm:$0xfe]   ;;  %v918_v5 = vmul.f32 %v902_v31, %v7079_v50  ;;  %v1925_v43 = vshrl.u32 %v6150_v34, 16  ;;  %v1932_v3 = vshll.u32 %v6151_v55, 16  ;;  %v6157_v23 = vld [vmem:[%s6774_s17 + $0x24] sm:$0xff]  }
 0x172   : > { %2388 = vmatprep.mubr.bf16.mxu0 %v1198_v10  ;;  %v1336_v63 = vsel %vm1315_vm1, %v1334_v44, %v1335_v33  ;;  %v1523_v30 = vshll.u32 %v6152_v1, 16  ;;  %v1337_v50 = vrot.slane %v6146_v12, 1  ;;  %v1338_v32 = vrot.slane %v6147_v39, 1  ;;  %v6153_v44 = vld [vmem:[%s6774_s17 + $0x14] ss:$0 sps:$4 sm:$0x11]  }
 0x173   : > { %2478 = vmatmul.mubr.bf16.gmra.mrb[20].mxu1 %v1333_v42  ;;  %v1210_v62 = vsel %vm1114_vm0, %v1205_v36, %v1209_v6  ;;  %v933_v42 = vadd.f32 %v917_v11, %v6854_v28  ;;  %v934_v10 = vadd.f32 %v918_v5, %v6854_v28  ;;  %v1720_v27 = vrot.slane %v6148_v45, 1  ;;  %v889_v16 = vld [vmem:[#allocation11 + $0x410] sm:$0xff]  ;;  %v890_v11 = vld [vmem:[#allocation11 + $0x418] sm:$0xff]  ;;  %v6159_v39 = vld [vmem:[%s6774_s17 + $0x18] sm:$0xff]  }
 0x174   : > { %2485 = vmatprep.mubr.bf16.mxu1 %v6138_v46  ;;  %v1929_v46 = vrot.slane %v1927_v19, 1  ;;  %v1721_v33 = vrot.slane %v6149_v61, 1  ;;  %v1934_v55 = vrot.slane %v1932_v3, 1  ;;  %v6158_v19 = vld [vmem:[%s6774_s17 + $0x2c] ss:$0 sps:$4 sm:$0x11]  }
 0x175   : > { %v7447_v34 = vpack.c.bf16 %v934_v10, %v933_v42  ;;  %v1939_v31 = vshll.u32 %v6157_v23, 16  ;;  %v1521_v36 = vshrl.u32 %v6152_v1, 16  ;;  %v1528_v12 = vshll.u32 %v6153_v44, 16  ;;  %v6156_v61 = vld [vmem:[%s6774_s17 + $0x20] ss:$0 sps:$4 sm:$0x11]  }
 0x176   : > { %v1930_v6 = vor.u32 %v1929_v46, %v1925_v43  ;;  %v1722_v45 = vsel %vm1315_vm1, %v1720_v27, %v1721_v33  ;;  %v1937_v43 = vshrl.u32 %v6157_v23, 16  ;;  %v1944_v3 = vshll.u32 %v6158_v19, 16  ;;  %v891_v10 = vld [vmem:[#allocation11 + $0x420] sm:$0xff]  ;;  %v892_v27 = vld [vmem:[#allocation11 + $0x428] sm:$0xff] }
 0x177   : > { %v1941_v46 = vrot.slane %v1939_v31, 1  ;;  %v905_v1 = vmul.f32 %v889_v16, %v6874_v38  ;;  %v906_v42 = vmul.f32 %v890_v11, %v6902_v0  ;;  %v6160_v44 = vld [vmem:[%s6774_s17 + $0x20] ss:$0 sps:$4 sm:$0x11]   ;;  %v1535_v23 = vshll.u32 %v6159_v39, 16  ;;  %v6154_v19 = vld [vmem:[%s6774_s17 + $0x18] sm:$0xff]  }
 0x178   : > { %v1935_v5 = vsel %vm1114_vm0, %v1930_v6, %v1934_v55  ;;  %v1724_v6 = vrot.slane %v6156_v61, 1  ;;  %v907_v55 = vmul.f32 %v891_v10, %v6924_v25  ;;  %v1946_v16 = vrot.slane %v1944_v3, 1  ;;  %v6165_v0 = vld [vmem:[%s6774_s17 + $0x38] ss:$0 sps:$4 sm:$0x11]  }
 0x179   : > { %2389 = vmatmul.mubr.bf16.gmra.mrb[24].mxu0 %v6139_v29  ;;  %v6145_v29 = vld [vmem:[%s6774_s17 + $0x54] sm:$0xff]   ;;  %v1942_v38 = vor.u32 %v1941_v46, %v1937_v43  ;;  %v921_v31 = vadd.f32 %v905_v1, %v6854_v28  ;;  %v1537_v25 = vrot.slane %v1535_v23, 1  ;;  %v6162_v43 = vld [vmem:[%s6774_s17 + $0x24] sm:$0xfe]   ;;  %v1956_v10 = vshll.u32 %v6165_v0, 16 }
 0x17a   : > { %2396 = vmatprep.mubr.bf16.mxu0 %v1210_v62  ;;  %v6155_v62 = vld [vmem:[%s6774_s17 + $0x18] sm:$0xfe]   ;;  %v6163_v46 = vld [vmem:[%s6774_s17 + $0x2c] ss:$0 sps:$4 sm:$0x11]  }
 0x17b   : > { %2486 = vmatmul.mubr.bf16.gmra.mrb[24].mxu1 %v1336_v63  ;;  %v1525_v63 = vrot.slane %v1523_v30, 1  ;;  %v7460_v30 = vld [vmem:[%s6774_s17 + $0x30] sm:$0xff]   ;;  %v1723_v33 = vrot.slane %v6155_v62, 1  ;;  %v7472_v62 = vld [vmem:[%s6774_s17 + $0x24] sm:$0xff]   ;;  %v1947_v1 = vsel %vm1114_vm0, %v1942_v38, %v1946_v16  ;;  %v1726_v38 = vrot.slane %v6162_v43, 1 }
 0x17c   : > { %2493 = vmatprep.mubr.bf16.mxu1 %v6144_v15  ;;  %v1339_v15 = vsel %vm1315_vm1, %v1337_v50, %v1338_v32  ;;  %v1530_v32 = vrot.slane %v1528_v12, 1  ;;  %v1951_v11 = vshll.u32 %v7460_v30, 16  ;;  %v1533_v12 = vshrl.u32 %v6159_v39, 16  ;;  %v7482_v39 = vld [vmem:[%s6774_s17 + $0x3c] sm:$0xff]   ;;  %v6169_v43 = vld [vmem:[%s6774_s17 + $0x30] sm:$0xfe]  }
 0x17d   : > { %v1526_v50 = vor.u32 %v1525_v63, %v1521_v36  ;;  %v908_v36 = vmul.f32 %v892_v27, %v6922_v24  ;;  %v893_v63 = vld [vmem:[#allocation11 + $0x430] sm:$0xff]  ;;  %v1725_v61 = vsel %vm1315_vm1, %v1723_v33, %v1724_v6  ;;  %v1949_v3 = vshrl.u32 %v7460_v30, 16  ;;  %v896_v6 = vld [vmem:[#allocation11 + $0x448] sm:$0xff] }
 0x17e   : > { %v923_v24 = vadd.f32 %v907_v55, %v6854_v28  ;;  %v1953_v30 = vrot.slane %v1951_v11, 1  ;;  %v6167_v23 = vld [vmem:[%s6774_s17 + $0x2c] ss:$0 sps:$4 sm:$0x11]   ;;  %v1547_v55 = vshll.u32 %v7472_v62, 16  ;;  %v1727_v16 = vrot.slane %v6163_v46, 1 }
 0x17f   : > { %v6161_v11 = vld [vmem:[%s6774_s17 + $0x24] sm:$0xff]  }
 0x181   : > { %2397 = vmatmul.mubr.bf16.gmra.mrb[28].mxu0 %v6145_v29  ;;  %v922_v29 = vadd.f32 %v906_v42, %v6854_v28  ;;  %v909_v42 = vmul.f32 %v893_v63, %v6955_v57  ;;  %v1538_v57 = vor.u32 %v1537_v25, %v1533_v12  ;;  %v1954_v12 = vor.u32 %v1953_v30, %v1949_v3  ;;  %v6174_v30 = vld [vmem:[%s6774_s17 + $0x38] ss:$0 sps:$4 sm:$0x11]  }
 0x182   : > { %2534 = vmatprep.mubr.bf16.mxu0 %v1722_v45  ;;  %v1540_v45 = vshll.u32 %v6160_v44, 16  ;;  %v895_v44 = vld [vmem:[#allocation11 + $0x440] sm:$0xff]  ;;  %v1545_v25 = vshrl.u32 %v7472_v62, 16  ;;  %v1728_v3 = vsel %vm1315_vm1, %v1726_v38, %v1727_v16 }
 0x183   : > { %2494 = vmatmul.mubr.bf16.gmra.mrb[28].mxu1 %v1339_v15  ;;  %v1531_v15 = vsel %vm1114_vm0, %v1526_v50, %v1530_v32  ;;  %v7484_v50 = vpack.c.bf16 %v922_v29, %v921_v31  ;;  %v924_v32 = vadd.f32 %v908_v36, %v6854_v28  ;;  %v925_v0 = vadd.f32 %v909_v42, %v6854_v28  ;;  %v897_v31 = vld [vmem:[#allocation11 + $0x450] sm:$0xff]  ;;  %v898_v29 = vld [vmem:[#allocation11 + $0x458] sm:$0xff]  ;;  %v6170_v42 = vld [vmem:[%s6774_s17 + $0x38] ss:$0 sps:$4 sm:$0x11]  }
 0x184   : > { %2631 = vmatprep.mubr.bf16.mxu1 %v1935_v5  ;;  %v894_v5 = vld [vmem:[#allocation11 + $0x438] sm:$0xff]  ;;  %v1542_v33 = vrot.slane %v1540_v45, 1  ;;  %v1963_v36 = vshll.u32 %v7482_v39, 16  ;;  %v1549_v45 = vrot.slane %v1547_v55, 1  ;;  %v914_v62 = vmul.f32 %v898_v29, %v7006_v8 }
 0x185   : > { %v910_v27 = vmul.f32 %v894_v5, %v6951_v56  ;;  %v6172_v56 = vld [vmem:[%s6774_s17 + $0x44] ss:$0 sps:$4 sm:$0x11]   ;;  %v7498_v63 = vpack.c.bf16 %v924_v32, %v923_v24  ;;  %v1552_v5 = vshll.u32 %v6167_v23, 16  ;;  %v913_v24 = vmul.f32 %v897_v31, %v7009_v9 }
 0x186   : > { %v1968_v46 = vshll.u32 %v6172_v56, 16  ;;  %v900_v32 = vld [vmem:[#allocation11 + $0x468] sm:$0xff]  ;;  %v1550_v8 = vor.u32 %v1549_v45, %v1545_v25  ;;  %v1730_v16 = vrot.slane %v6170_v42, 1  ;;  %v6179_v56 = vld [vmem:[%s6774_s17 + $0x50] ss:$0 sps:$4 sm:$0x11]  }
 0x187   : > { %v1554_v9 = vrot.slane %v1552_v5, 1  ;;  %v929_v55 = vadd.f32 %v913_v24, %v6854_v28  ;;  %v916_v38 = vmul.f32 %v900_v32, %v7042_v26  ;;  %v1564_v29 = vshll.u32 %v6174_v30, 16  ;;  %v6177_v45 = vld [vmem:[%s6774_s17 + $0x44] ss:$0 sps:$4 sm:$0x11]  }
 0x188   : > { %v6184_v42 = vld [vmem:[%s6774_s17 + $0x50] ss:$0 sps:$4 sm:$0x11]  }
 0x189   : > { %2535 = vmatmul.mubr.bf16.vlgmr.msra.gmra.mrb[32].mxu0 %v1531_v15  ;;  %v912_v15 = vmul.f32 %v896_v6, %v6974_v17  ;;  %v1961_v17 = vshrl.u32 %v7482_v39, 16  ;;  %v6168_v6 = vld [vmem:[%s6774_s17 + $0x30] sm:$0xff]  }
 0x18a   : > { %5946 = vmatpush3.bf16.msra.mxu0 %v7418_v48  ;;  %2542 = vmatprep.mubr.bf16.mxu0 %v1725_v61  ;;  %v7508_v61 = vld [vmem:[%s6774_s17 + $0x30] sm:$0xff]  }
 0x18b   : > { %2632 = vmatmul.mubr.bf16.vlgmr.msra.gmra.mrb[32].mxu1 %v6154_v19  ;;  %5947 = vmatprep.subr.bf16.mxu0 %v7484_v50  ;;  %v911_v19 = vmul.f32 %v895_v44, %v6978_v18  ;;  %v1543_v18 = vsel %vm1114_vm0, %v1538_v57, %v1542_v33  ;;  %v7524_v44 = vld [vmem:[%s6774_s17 + $0x48] sm:$0xff]   ;;  %v1559_v23 = vshll.u32 %v7508_v61, 16  ;;  %v1729_v33 = vrot.slane %v6169_v43, 1 }
 0x18c   : > { %5674 = vmatpush3.bf16.msra.mxu1 %v6934_v41  ;;  %2639 = vmatprep.mubr.bf16.mxu1 %v1947_v1  ;;  %v1958_v41 = vrot.slane %v1956_v10, 1  ;;  %v899_v1 = vld [vmem:[#allocation11 + $0x460] sm:$0xff]  ;;  %v1557_v31 = vshrl.u32 %v7508_v61, 16  ;;  %v1980_v61 = vshll.u32 %v6179_v56, 16  ;;  %v1566_v43 = vrot.slane %v1564_v29, 1 }
 0x18d   : > { %5675 = vmatprep.subr.bf16.mxu1 %v6938_v47  ;;  %v926_v47 = vadd.f32 %v910_v27, %v6854_v28  ;;  %v1965_v27 = vrot.slane %v1963_v36, 1  ;;  %v915_v57 = vmul.f32 %v899_v1, %v7044_v52  ;;  %v1975_v52 = vshll.u32 %v7524_v44, 16  ;;  %v6180_v36 = vld [vmem:[%s6774_s17 + $0x3c] sm:$0xff]  }
 0x18e   : > { %5948 = vmatpush3.bf16.msra.mxu0 %v7484_v50  ;;  %v1959_v39 = vsel %vm1114_vm0, %v1954_v12, %v1958_v41  ;;  %v1555_v41 = vsel %vm1114_vm0, %v1550_v8, %v1554_v9  ;;  %v1561_v26 = vrot.slane %v1559_v23, 1  ;;  %v1731_v12 = vsel %vm1315_vm1, %v1729_v33, %v1730_v16  ;;  %v8304_v33 = vld [vmem:[#allocation33_spill] sm:$0xff] }
 0x18f   : > { %5949 = vmatprep.subr.bf16.mxu0 %v7498_v63  ;;  %v7519_v10 = vpack.c.bf16 %v926_v47, %v925_v0  ;;  %v1977_v5 = vrot.slane %v1975_v52, 1  ;;  %v1982_v32 = vrot.slane %v1980_v61, 1  ;;  %v1569_v9 = vshrl.u32 %v6180_v36, 16  ;;  %v8307_v61 = vld [vmem:[#allocation39_spill] sm:$0xff] }
 0x190   : > { %5676 = vmatpush3.bf16.msra.mxu1 %v6942_v49  ;;  %v927_v49 = vadd.f32 %v911_v19, %v6854_v28  ;;  %v1966_v19 = vor.u32 %v1965_v27, %v1961_v17  ;;  %v6181_v17 = vld [vmem:[%s6774_s17 + $0x44] ss:$0 sps:$4 sm:$0x11]   ;;  %v6183_v27 = vld [vmem:[%s6774_s17 + $0x48] sm:$0xfe]  }
 0x191   : > { %5677 = vmatprep.subr.bf16.mxu1 %v6969_v13  ;;  %2543 = vmatmul.mubr.bf16.gmra.mrb[36].mxu0 %v1543_v18  ;;  %v928_v13 = vadd.f32 %v912_v15, %v6854_v28  ;;  %v931_v15 = vadd.f32 %v915_v57, %v6854_v28  ;;  %v6176_v18 = vld [vmem:[%s6774_s17 + $0x3c] sm:$0xfe]   ;;  %v1576_v23 = vshll.u32 %v6181_v17, 16  ;;  %v6187_v57 = vld [vmem:[%s6774_s17 + $0x48] sm:$0xff]  }
 0x192   : > { %5950 = vmatpush3.bf16.msra.mxu0 %v7498_v63  ;;  %2550 = vmatprep.mubr.bf16.mxu0 %v1728_v3  ;;  %v6186_v3 = vld [vmem:[%s6774_s17 + $0x5c] ss:$0 sps:$4 sm:$0x11]   ;;  %v1732_v1 = vrot.slane %v6176_v18, 1  ;;  %v1583_v29 = vshll.u32 %v6187_v57, 16  ;;  %v6182_v18 = vld [vmem:[%s6774_s17 + $0x48] sm:$0xff]  }
 0x193   : > { %2640 = vmatmul.mubr.bf16.gmra.mrb[36].mxu1 %v6161_v11  ;;  %5951 = vmatprep.subr.bf16.mxu0 %v7519_v10  ;;  %v7538_v0 = vpack.c.bf16 %v928_v13, %v927_v49  ;;  %v6185_v11 = vld [vmem:[%s6774_s17 + $0x54] sm:$0xff]   ;;  %v8302_v49 = vld [vmem:[#allocation29_spill] sm:$0xff] }
 0x194   : > { %5678 = vmatpush3.bf16.msra.mxu1 %v6982_v20  ;;  %2647 = vmatprep.mubr.bf16.mxu1 %v1959_v39  ;;  %v930_v20 = vadd.f32 %v914_v62, %v6854_v28  ;;  %v1987_v24 = vshll.u32 %v6185_v11, 16  ;;  %v6175_v62 = vld [vmem:[%s6774_s17 + $0x3c] sm:$0xff]   ;;  %v1585_v17 = vrot.slane %v1583_v29, 1 }
 0x195   : > { %5679 = vmatprep.subr.bf16.mxu1 %v6997_v59  ;;  %v1970_v59 = vrot.slane %v1968_v46, 1  ;;  %v1571_v46 = vshll.u32 %v6180_v36, 16  ;;  %v8306_v36 = vld [vmem:[#allocation37_spill] sm:$0xff] }
 0x196   : > { %5952 = vmatpush3.bf16.msra.mxu0 %v7519_v10  ;;  %v7549_v47 = vpack.c.bf16 %v930_v20, %v929_v55  ;;  %v1989_v55 = vrot.slane %v1987_v24, 1  ;;  %v1992_v20 = vshll.u32 %v6186_v3, 16  ;;  %v8309_v3 = vld [vmem:[#allocation41_spill] sm:$0xff] }
 0x197   : > { %5953 = vmatprep.subr.bf16.mxu0 %v7538_v0  ;;  %v1971_v25 = vsel %vm1114_vm0, %v1966_v19, %v1970_v59  ;;  %v1573_v30 = vrot.slane %v1571_v46, 1  ;;  %v1735_v19 = vrot.slane %v6183_v27, 1  ;;  %v8305_v59 = vld [vmem:[#allocation35_spill] sm:$0xff] }
 0x198   : > { %5680 = vmatpush3.bf16.msra.mxu1 %v7017_v22  ;;  %v932_v22 = vadd.f32 %v916_v38, %v6854_v28  ;;  %v1562_v28 = vor.u32 %v1561_v26, %v1557_v31  ;;  %v6192_v38 = vld [vmem:[%s6774_s17 + $0x60] sm:$0xff]   ;;  %v1736_v31 = vrot.slane %v6184_v42, 1  ;;  %v6188_v26 = vld [vmem:[%s6774_s17 + $0x50] ss:$0 sps:$4 sm:$0x11]  }
 0x199   : > { %5681 = vmatprep.subr.bf16.mxu1 %v7032_v2  ;;  %2551 = vmatmul.mubr.bf16.gmra.mrb[40].mxu0 %v1555_v41  ;;  %v1973_v2 = vshrl.u32 %v7524_v44, 16  ;;  %v8303_v44 = vld [vmem:[#allocation31_spill] sm:$0xff]  ;;  %v1574_v52 = vor.u32 %v1573_v30, %v1569_v9  ;;  %v1578_v41 = vrot.slane %v1576_v23, 1  ;;  %v1588_v46 = vshll.u32 %v6188_v26, 16 }
 0x19a   : > { %5954 = vmatpush3.bf16.msra.mxu0 %v7538_v0  ;;  %2558 = vmatprep.mubr.bf16.mxu0 %v1731_v12  ;;  %v7566_v13 = vpack.c.bf16 %v932_v22, %v931_v15  ;;  %v1567_v8 = vsel %vm1114_vm0, %v1562_v28, %v1566_v43  ;;  %v1994_v15 = vrot.slane %v1992_v20, 1  ;;  %v6193_v22 = vld [vmem:[%s6774_s17 + $0x68] ss:$0 sps:$4 sm:$0x11]   ;;  %v1999_v12 = vshll.u32 %v6192_v38, 16 }
 0x19b   : > { %2648 = vmatmul.mubr.bf16.gmra.mrb[40].mxu1 %v6168_v6  ;;  %5955 = vmatprep.subr.bf16.mxu0 %v7549_v47  ;;  %v1978_v39 = vor.u32 %v1977_v5, %v1973_v2  ;;  %v1985_v6 = vshrl.u32 %v6185_v11, 16  ;;  %v6190_v2 = vld [vmem:[%s6774_s17 + $0x54] sm:$0xfe]   ;;  %v1579_v28 = vsel %vm1114_vm0, %v1574_v52, %v1578_v41  ;;  %v1737_v43 = vsel %vm1315_vm1, %v1735_v19, %v1736_v31  ;;  %v6195_v27 = vld [vmem:[%s6774_s17 + $0x5c] ss:$0 sps:$4 sm:$0x11]  }
 0x19c   : > { %5682 = vmatpush3.bf16.msra.mxu1 %v7052_v60  ;;  %2655 = vmatprep.mubr.bf16.mxu1 %v1971_v25  ;;  %v1733_v60 = vrot.slane %v6177_v45, 1  ;;  %v6191_v25 = vld [vmem:[%s6774_s17 + $0x5c] ss:$0 sps:$4 sm:$0x11]   ;;  %v1581_v45 = vshrl.u32 %v6187_v57, 16  ;;  %v6194_v5 = vld [vmem:[%s6774_s17 + $0x54] sm:$0xff]  }
 0x19d   : > { %5683 = vmatprep.subr.bf16.mxu1 %v8302_v49  ;;  %v1983_v56 = vsel %vm1114_vm0, %v1978_v39, %v1982_v32  ;;  %v1990_v11 = vor.u32 %v1989_v55, %v1985_v6  ;;  %v8308_v49 = vld [vmem:[#allocation19_spill] sm:$0xff]  ;;  %v2004_v42 = vshll.u32 %v6193_v22, 16  ;;  %v1738_v39 = vrot.slane %v6190_v2, 1  ;;  %v6197_v6 = vld [vmem:[%s6774_s17 + $0x60] sm:$0xfe]  }
 0x19e   : > { %5956 = vmatpush3.bf16.msra.mxu0 %v7549_v47  ;;  %v1734_v16 = vsel %vm1315_vm1, %v1732_v1, %v1733_v60  ;;  %v2001_v1 = vrot.slane %v1999_v12, 1  ;;  %v6199_v60 = vld [vmem:[%s6774_s17 + $0x6c] sm:$0xff]   ;;  %v1739_v32 = vrot.slane %v6191_v25, 1  ;;  %v1595_v9 = vshll.u32 %v6194_v5, 16  ;;  %v6189_v55 = vld [vmem:[%s6774_s17 + $0x54] sm:$0xff]   ;;  %v6201_v52 = vld [vmem:[%s6774_s17 + $0x60] sm:$0xff]  }
 0x19f   : > { %5957 = vmatprep.subr.bf16.mxu0 %v7566_v13  ;;  %v1995_v24 = vsel %vm1114_vm0, %v1990_v11, %v1994_v15  ;;  %v2006_v23 = vrot.slane %v2004_v42, 1  ;;  %v6200_v57 = vld [vmem:[%s6774_s17 + $0x74] ss:$0 sps:$4 sm:$0x11]   ;;  %v2009_v31 = vshrl.u32 %v6199_v60, 16  ;;  %v1741_v12 = vrot.slane %v6197_v6, 1 }
 0x1a0   : > { %5684 = vmatpush3.bf16.msra.mxu1 %v8303_v44  ;;  %v1586_v44 = vor.u32 %v1585_v17, %v1581_v45  ;;  %v1740_v20 = vsel %vm1315_vm1, %v1738_v39, %v1739_v32  ;;  %v1597_v19 = vrot.slane %v1595_v9, 1  ;;  %v2016_v29 = vshll.u32 %v6200_v57, 16  ;;  %v6202_v11 = vld [vmem:[%s6774_s17 + $0x68] ss:$0 sps:$4 sm:$0x11]   ;;  %v6203_v57 = vld [vmem:[%s6774_s17 + $0x6c] sm:$0xff]  }
 0x1a1   : > { %5685 = vmatprep.subr.bf16.mxu1 %v8304_v33  ;;  %2559 = vmatmul.mubr.bf16.gmra.mrb[44].mxu0 %v1567_v8  ;;  %v1590_v8 = vrot.slane %v1588_v46, 1  ;;  %v2011_v33 = vshll.u32 %v6199_v60, 16  ;;  %v1612_v17 = vshll.u32 %v6202_v11, 16  ;;  %v6204_v46 = vld [vmem:[%s6774_s17 + $0x18] sm:$0xfe]  }
 0x1a2   : > { %5958 = vmatpush3.bf16.msra.mxu0 %v7566_v13  ;;  %2566 = vmatprep.mubr.bf16.mxu0 %v1734_v16  ;;  %v2018_v2 = vrot.slane %v2016_v29, 1  ;;  %v6214_v6 = vld [vmem:[%s6774_s17 + $0x74] ss:$0 sps:$4 sm:$0x11]  }
 0x1a3   : > { %2656 = vmatmul.mubr.bf16.gmra.mrb[44].mxu1 %v6175_v62  ;;  %5959 = vmatprep.subr.bf16.mxu0 %v7447_v34  ;;  %v1997_v62 = vshrl.u32 %v6192_v38, 16  ;;  %v6198_v38 = vld [vmem:[%s6774_s17 + $0x68] ss:$0 sps:$4 sm:$0x11]   ;;  %v1591_v16 = vsel %vm1114_vm0, %v1586_v44, %v1590_v8  ;;  %v2013_v26 = vrot.slane %v2011_v33, 1  ;;  %v1614_v44 = vrot.slane %v1612_v17, 1 }
 0x1a4   : > { %5686 = vmatpush3.bf16.msra.mxu1 %v8305_v59  ;;  %2663 = vmatprep.mubr.bf16.mxu1 %v1983_v56  ;;  %v1593_v56 = vshrl.u32 %v6194_v5, 16  ;;  %v1600_v59 = vshll.u32 %v6195_v27, 16  ;;  %v1742_v25 = vrot.slane %v6198_v38, 1  ;;  %v6207_v5 = vld [vmem:[%s6774_s17 + $0x68] ss:$0 sps:$4 sm:$0x11]  }
 0x1a5   : > { %5687 = vmatprep.subr.bf16.mxu1 %v8306_v36  ;;  %v2002_v30 = vor.u32 %v2001_v1, %v1997_v62  ;;  %v6206_v36 = vld [vmem:[%s6774_s17 + $0x60] sm:$0xff]   ;;  %v2014_v45 = vor.u32 %v2013_v26, %v2009_v31  ;;  %v6213_v1 = vld [vmem:[%s6774_s17 + $0x6c] sm:$0xff]   ;;  %v2982_v32 = vshll.u32 %v6207_v5, 16  ;;  %v2124_v8 = vrot.slane %v6204_v46, 1 }
 0x1a6   : > { %5960 = vmatpush3.bf16.msra.mxu0 %v7447_v34  ;;  %v1598_v15 = vor.u32 %v1597_v19, %v1593_v56  ;;  %v1602_v22 = vrot.slane %v1600_v59, 1  ;;  %v2975_v62 = vshrl.u32 %v6206_v36, 16  ;;  %v1743_v42 = vsel %vm1315_vm1, %v1741_v12, %v1742_v25  ;;  %v6209_v33 = vld [vmem:[%s6774_s17 + $0x2c] ss:$0 sps:$4 sm:$0x11]   ;;  %v6210_v12 = vld [vmem:[%s6774_s17 + $0x60] sm:$0xff]  }
 0x1a7   : > { %5737 = vmatprep.subr.bf16.mxu0 %v8308_v49  ;;  %v2007_v41 = vsel %vm1114_vm0, %v2002_v30, %v2006_v23  ;;  %v6205_v49 = vld [vmem:[%s6774_s17 + $0x20] ss:$0 sps:$4 sm:$0x11]   ;;  %v2019_v60 = vsel %vm1114_vm0, %v2014_v45, %v2018_v2  ;;  %v2984_v23 = vrot.slane %v2982_v32, 1  ;;  %v2987_v19 = vshrl.u32 %v6213_v1, 16 }
 0x1a8   : > { %5688 = vmatpush3.bf16.msra.mxu1 %v8307_v61  ;;  %v2977_v61 = vshll.u32 %v6206_v36, 16  ;;  %v2125_v9 = vrot.slane %v6205_v49, 1  ;;  %v6212_v56 = vld [vmem:[%s6774_s17 + $0x38] ss:$0 sps:$4 sm:$0x11]   ;;  %v2994_v26 = vshll.u32 %v6214_v6, 16 }
 0x1a9   : > { %5801 = vmatprep.subr.bf16.mxu1 %v8309_v3  ;;  %2567 = vmatmul.mubr.bf16.gmra.mrb[48].mxu0 %v1579_v28  ;;  %v6196_v28 = vld [vmem:[%s6774_s17 + $0x60] sm:$0xff]   ;;  %v1603_v3 = vsel %vm1114_vm0, %v1598_v15, %v1602_v22  ;;  %v2128_v36 = vrot.slane %v6209_v33, 1  ;;  %v2131_v15 = vrot.slane %v6212_v56, 1  ;;  %v6218_v17 = vld [vmem:[%s6774_s17 + $0x48] sm:$0xfe]  }
 0x1aa   : > { %2574 = vmatprep.mubr.bf16.mxu0 %v1737_v43  ;;  %v1605_v43 = vshrl.u32 %v6201_v52, 16  ;;  %v2979_v39 = vrot.slane %v2977_v61, 1  ;;  %v2126_v59 = vsel %vm1315_vm1, %v2124_v8, %v2125_v9  ;;  %v6216_v22 = vld [vmem:[%s6774_s17 + $0x44] ss:$0 sps:$4 sm:$0x11]   ;;  %v2996_v25 = vrot.slane %v2994_v26, 1 }
 0x1ab   : > { %2664 = vmatmul.mubr.bf16.gmra.mrb[48].mxu1 %v6182_v18  ;;  %v1607_v18 = vshll.u32 %v6201_v52, 16  ;;  %v6221_v45 = vld [vmem:[%s6774_s17 + $0x80] ss:$0 sps:$4 sm:$0x11]   ;;  %v6217_v9 = vld [vmem:[%s6774_s17 + $0x6c] sm:$0xff]  }
 0x1ac   : > { %2671 = vmatprep.mubr.bf16.mxu1 %v1995_v24  ;;  %v2980_v30 = vor.u32 %v2979_v39, %v2975_v62  ;;  %v6215_v61 = vld [vmem:[%s6774_s17 + $0x3c] sm:$0xfe]   ;;  %v6227_v62 = vld [vmem:[%s6774_s17 + $0x84] sm:$0xff]   ;;  %v2134_v39 = vrot.slane %v6216_v22, 1 }
 0x1ad   : > { %v1609_v24 = vrot.slane %v1607_v18, 1  ;;  %v8312_v32 = vld [vmem:[#allocation21_spill] sm:$0xff]  ;;  %v3013_v33 = vshll.u32 %v6227_v62, 16  ;;  %v8314_v6 = vld [vmem:[#allocation22_spill] sm:$0xff]  ;;  %v8316_v56 = vld [vmem:[#allocation48_spill] sm:$0xff] }
 0x1ae   : > { %v2985_v52 = vsel %vm1114_vm0, %v2980_v30, %v2984_v23 }
 0x1af   : > { %v1610_v27 = vor.u32 %v1609_v24, %v1605_v43  ;;  %v3006_v24 = vshll.u32 %v6221_v45, 16  ;;  %v3015_v26 = vrot.slane %v3013_v33, 1  ;;  %v6224_v45 = vld [vmem:[%s6774_s17 + $0x78] sm:$0xff]   ;;  %v6231_v33 = vld [vmem:[%s6774_s17 + $0x84] sm:$0xff]  }
 0x1b1   : > { %2575 = vmatmul.mubr.bf16.gmra.mrb[52].mxu0 %v1591_v16  ;;  %v1615_v38 = vsel %vm1114_vm0, %v1610_v27, %v1614_v44  ;;  %v6211_v16 = vld [vmem:[%s6774_s17 + $0x30] sm:$0xfe]   ;;  %v8313_v27 = vld [vmem:[#allocation45_spill] sm:$0xff]  ;;  %v2136_v44 = vrot.slane %v6218_v17, 1  ;;  %v3008_v23 = vrot.slane %v3006_v24, 1 }
 0x1b2   : > { %2582 = vmatprep.mubr.bf16.mxu0 %v1740_v20  ;;  %v6208_v20 = vld [vmem:[%s6774_s17 + $0x24] sm:$0xfe]   ;;  %v2130_v11 = vrot.slane %v6211_v16, 1  ;;  %v8315_v16 = vld [vmem:[#allocation23_spill] sm:$0xff] }
 0x1b3   : > { %2672 = vmatmul.mubr.bf16.gmra.mrb[52].mxu1 %v6189_v55  ;;  %v2989_v55 = vshll.u32 %v6213_v1, 16  ;;  %v2127_v29 = vrot.slane %v6208_v20, 1  ;;  %v8310_v1 = vld [vmem:[#allocation20_spill] sm:$0xff]  ;;  %v8321_v17 = vld [vmem:[#allocation53_spill] sm:$0xff]  ;;  %v8322_v24 = vld [vmem:[#allocation27_spill] sm:$0xff] }
 0x1b4   : > { %2679 = vmatprep.mubr.bf16.mxu1 %v2007_v41  ;;  %v6220_v41 = vld [vmem:[%s6774_s17 + $0x78] sm:$0xff]   ;;  %v2132_v43 = vsel %vm1315_vm1, %v2130_v11, %v2131_v15  ;;  %v8318_v11 = vld [vmem:[#allocation50_spill] sm:$0xff] }
 0x1b5   : > { %v2991_v31 = vrot.slane %v2989_v55, 1  ;;  %v3001_v2 = vshll.u32 %v6220_v41, 16  ;;  %v2129_v5 = vsel %vm1315_vm1, %v2127_v29, %v2128_v36  ;;  %v2999_v49 = vshrl.u32 %v6220_v41, 16  ;;  %v6222_v20 = vld [vmem:[%s6774_s17 + $0x54] sm:$0xfe]  }
 0x1b6   : > { %v6232_v29 = vld [vmem:[%s6774_s17 + $0x90] sm:$0xff]   ;;  %v8317_v36 = vld [vmem:[#allocation24_spill] sm:$0xff]  ;;  %v2139_v15 = vrot.slane %v6222_v20, 1 }
 0x1b7   : > { %v2992_v18 = vor.u32 %v2991_v31, %v2987_v19  ;;  %v3011_v31 = vshrl.u32 %v6227_v62, 16  ;;  %v6238_v62 = vld [vmem:[%s6774_s17 + $0x9c] sm:$0xff]  }
 0x1b8   : > { %v8327_v20 = vld [vmem:[#allocation32_spill] sm:$0xff] }
 0x1b9   : > { %2583 = vmatmul.mubr.bf16.gmra.mrb[56].mxu0 %v1603_v3  ;;  %v2997_v46 = vsel %vm1114_vm0, %v2992_v18, %v2996_v25  ;;  %v3003_v3 = vrot.slane %v3001_v2, 1  ;;  %v3016_v2 = vor.u32 %v3015_v26, %v3011_v31  ;;  %v6244_v31 = vld [vmem:[%s6774_s17 + $0xa8] sm:$0xff]  }
 0x1ba   : > { %2590 = vmatprep.mubr.bf16.mxu0 %v1743_v42  ;;  %v8311_v42 = vld [vmem:[#allocation43_spill] sm:$0xff] }
 0x1bb   : > { %2680 = vmatmul.mubr.bf16.gmra.mrb[56].mxu1 %v6196_v28  ;;  %v6219_v28 = vld [vmem:[%s6774_s17 + $0x50] ss:$0 sps:$4 sm:$0x11]   ;;  %v3004_v30 = vor.u32 %v3003_v3, %v2999_v49  ;;  %v6230_v3 = vld [vmem:[%s6774_s17 + $0x74] ss:$0 sps:$4 sm:$0x11]  }
 0x1bc   : > { %2687 = vmatprep.mubr.bf16.mxu1 %v2019_v60  ;;  %v2133_v60 = vrot.slane %v6215_v61, 1  ;;  %v2137_v8 = vrot.slane %v6219_v28, 1  ;;  %v6233_v61 = vld [vmem:[%s6774_s17 + $0x98] ss:$0 sps:$4 sm:$0x11]   ;;  %v3025_v28 = vshll.u32 %v6232_v29, 16 }
 0x1bd   : > { %v3009_v41 = vsel %vm1114_vm0, %v3004_v30, %v3008_v23  ;;  %v6229_v49 = vld [vmem:[%s6774_s17 + $0x6c] sm:$0xfe]   ;;  %v6239_v23 = vld [vmem:[%s6774_s17 + $0xa4] ss:$0 sps:$4 sm:$0x11]  }
 0x1be   : > { %v2135_v55 = vsel %vm1315_vm1, %v2133_v60, %v2134_v39  ;;  %v2138_v19 = vsel %vm1315_vm1, %v2136_v44, %v2137_v8  ;;  %v3023_v60 = vshrl.u32 %v6232_v29, 16  ;;  %v3027_v39 = vrot.slane %v3025_v28, 1  ;;  %v8326_v30 = vld [vmem:[#allocation58_spill] sm:$0xff]  ;;  %v8330_v29 = vld [vmem:[#allocation36_spill] sm:$0xff] }
 0x1bf   : > { %v2145_v44 = vrot.slane %v6229_v49, 1  ;;  %v2146_v8 = vrot.slane %v6230_v3, 1  ;;  %v6234_v26 = vld [vmem:[%s6774_s17 + $0x6c] sm:$0xff]   ;;  %v6240_v28 = vld [vmem:[%s6774_s17 + $0x78] sm:$0xff]  }
 0x1c0   : > { %v6250_v49 = vld [vmem:[%s6774_s17 + $0xb4] sm:$0xff]  }
 0x1c1   : > { %2591 = vmatmul.mubr.bf16.gmra.mrb[60].mxu0 %v1615_v38  ;;  %v6223_v38 = vld [vmem:[%s6774_s17 + $0x5c] ss:$0 sps:$4 sm:$0x11]  }
 0x1c2   : > { %5961 = vmatprep.mubr.bf16.mxu0 %v2126_v59  ;;  %v6225_v59 = vld [vmem:[%s6774_s17 + $0x60] sm:$0xfe]   ;;  %v2140_v22 = vrot.slane %v6223_v38, 1 }
 0x1c3   : > { %2688 = vmatmul.mubr.bf16.gmra.mrb[60].mxu1 %v6203_v57  ;;  %v6228_v57 = vld [vmem:[%s6774_s17 + $0x8c] ss:$0 sps:$4 sm:$0x11]   ;;  %v2142_v18 = vrot.slane %v6225_v59, 1  ;;  %v8328_v38 = vld [vmem:[#allocation60_spill] sm:$0xff]  ;;  %v3035_v59 = vshrl.u32 %v6238_v62, 16 }
 0x1c4   : > { %4198 = vmatprep.mubr.bf16.mxu1 %v2985_v52  ;;  %v6226_v52 = vld [vmem:[%s6774_s17 + $0x68] ss:$0 sps:$4 sm:$0x11]  }
 0x1c5   : > { %v2143_v25 = vrot.slane %v6226_v52, 1 }
 0x1c9   : > { %5962 = vmatmul.mubr.bf16.vlgmr.msra.gmra.mrb[64].mxu0 %v2129_v5 }
 0x1ca   : > { %5738 = vmatpush3.bf16.msra.mxu0 %v8310_v1  ;;  %5965 = vmatprep.mubr.bf16.mxu0 %v2132_v43  ;;  %v8320_v43 = vld [vmem:[#allocation26_spill] sm:$0xff]  ;;  %v2144_v1 = vsel %vm1315_vm1, %v2142_v18, %v2143_v25  ;;  %v3049_v18 = vshll.u32 %v6244_v31, 16 }
 0x1cb   : > { %4199 = vmatmul.mubr.bf16.vlgmr.msra.gmra.mrb[64].mxu1 %v6210_v12  ;;  %5739 = vmatprep.subr.bf16.mxu0 %v8312_v32  ;;  %v8319_v12 = vld [vmem:[#allocation25_spill] sm:$0xff]  ;;  %v3030_v32 = vshll.u32 %v6233_v61, 16  ;;  %v6235_v25 = vld [vmem:[%s6774_s17 + $0x90] sm:$0xff]  }
 0x1cc   : > { %5802 = vmatpush3.bf16.msra.mxu1 %v8311_v42  ;;  %4206 = vmatprep.mubr.bf16.mxu1 %v2997_v46  ;;  %v2141_v46 = vsel %vm1315_vm1, %v2139_v15, %v2140_v22  ;;  %v8333_v61 = vld [vmem:[#allocation42_spill] sm:$0xff] }
 0x1cd   : > { %5803 = vmatprep.subr.bf16.mxu1 %v8313_v27  ;;  %v8324_v27 = vld [vmem:[#allocation28_spill] sm:$0xff] }
 0x1ce   : > { %5740 = vmatpush3.bf16.msra.mxu0 %v8314_v6  ;;  %v3028_v6 = vor.u32 %v3027_v39, %v3023_v60  ;;  %v3061_v60 = vshll.u32 %v6250_v49, 16  ;;  %v6241_v39 = vld [vmem:[%s6774_s17 + $0x9c] sm:$0xff]  }
 0x1cf   : > { %5741 = vmatprep.subr.bf16.mxu0 %v8315_v16  ;;  %v6236_v16 = vld [vmem:[%s6774_s17 + $0x60] sm:$0xfe]  }
 0x1d0   : > { %5804 = vmatpush3.bf16.msra.mxu1 %v7206_v14  ;;  %v3018_v14 = vshll.u32 %v6228_v57, 16  ;;  %v3037_v57 = vshll.u32 %v6238_v62, 16 }
 0x1d1   : > { %5805 = vmatprep.subr.bf16.mxu1 %v8316_v56  ;;  %5966 = vmatmul.mubr.bf16.gmra.mrb[68].mxu0 %v2135_v55  ;;  %v3032_v55 = vrot.slane %v3030_v32, 1  ;;  %v6237_v56 = vld [vmem:[%s6774_s17 + $0x68] ss:$0 sps:$4 sm:$0x11]   ;;  %v8336_v32 = vld [vmem:[#allocation47_spill] sm:$0xff] }
 0x1d2   : > { %5742 = vmatpush3.bf16.msra.mxu0 %v8317_v36  ;;  %5969 = vmatprep.mubr.bf16.mxu0 %v2138_v19  ;;  %v3020_v5 = vrot.slane %v3018_v14, 1  ;;  %v8329_v19 = vld [vmem:[#allocation34_spill] sm:$0xff]  ;;  %v3039_v52 = vrot.slane %v3037_v57, 1  ;;  %v3174_v36 = vrot.slane %v6236_v16, 1  ;;  %v3059_v57 = vshrl.u32 %v6250_v49, 16 }
 0x1d3   : > { %4207 = vmatmul.mubr.bf16.gmra.mrb[68].mxu1 %v6217_v9  ;;  %5743 = vmatprep.subr.bf16.mxu0 %v8319_v12  ;;  %v8325_v9 = vld [vmem:[#allocation30_spill] sm:$0xff]  ;;  %v3033_v14 = vsel %vm1114_vm0, %v3028_v6, %v3032_v55  ;;  %v8338_v55 = vld [vmem:[#allocation51_spill] sm:$0xff] }
 0x1d4   : > { %5806 = vmatpush3.bf16.msra.mxu1 %v8318_v11  ;;  %4214 = vmatprep.mubr.bf16.mxu1 %v3009_v41  ;;  %v3021_v42 = vsel %vm1114_vm0, %v3016_v2, %v3020_v5  ;;  %v3042_v41 = vshll.u32 %v6239_v23, 16  ;;  %v3175_v11 = vrot.slane %v6237_v56, 1  ;;  %v3040_v15 = vor.u32 %v3039_v52, %v3035_v59  ;;  %v6245_v12 = vld [vmem:[%s6774_s17 + $0xb0] ss:$0 sps:$4 sm:$0x11]   ;;  %v6246_v23 = vld [vmem:[%s6774_s17 + $0x84] sm:$0xff]  }
 0x1d5   : > { %5807 = vmatprep.subr.bf16.mxu1 %v7256_v40  ;;  %v8323_v40 = vld [vmem:[#allocation55_spill] sm:$0xff]  ;;  %v8340_v59 = vld [vmem:[#allocation54_spill] sm:$0xff] }
 0x1d6   : > { %5744 = vmatpush3.bf16.msra.mxu0 %v8320_v43  ;;  %v3044_v22 = vrot.slane %v3042_v41, 1  ;;  %v6242_v2 = vld [vmem:[%s6774_s17 + $0x6c] sm:$0xfe]   ;;  %v6243_v5 = vld [vmem:[%s6774_s17 + $0x74] ss:$0 sps:$4 sm:$0x11]  }
 0x1d7   : > { %5745 = vmatprep.subr.bf16.mxu0 %v8322_v24  ;;  %v3047_v43 = vshrl.u32 %v6244_v31, 16  ;;  %v3177_v3 = vrot.slane %v6242_v2, 1  ;;  %v3178_v24 = vrot.slane %v6243_v5, 1  ;;  %v6254_v41 = vld [vmem:[%s6774_s17 + $0x84] sm:$0xfe]   ;;  %v6253_v5 = vld [vmem:[%s6774_s17 + $0xb4] sm:$0xff]  }
 0x1d8   : > { %5808 = vmatpush3.bf16.msra.mxu1 %v8321_v17  ;;  %v3051_v17 = vrot.slane %v3049_v18, 1  ;;  %v6255_v31 = vld [vmem:[%s6774_s17 + $0x8c] ss:$0 sps:$4 sm:$0x11]  }
 0x1d9   : > { %5809 = vmatprep.subr.bf16.mxu1 %v8323_v40  ;;  %5970 = vmatmul.mubr.bf16.gmra.mrb[72].mxu0 %v2141_v46  ;;  %v3054_v46 = vshll.u32 %v6245_v12, 16  ;;  %v8335_v40 = vld [vmem:[#allocation46_spill] sm:$0xff]  ;;  %v3184_v12 = vrot.slane %v6255_v31, 1 }
 0x1da   : > { %5746 = vmatpush3.bf16.msra.mxu0 %v8324_v27  ;;  %5973 = vmatprep.mubr.bf16.mxu0 %v2144_v1  ;;  %v3052_v62 = vor.u32 %v3051_v17, %v3047_v43  ;;  %v3179_v27 = vsel %vm1315_vm1, %v3177_v3, %v3178_v24  ;;  %v6262_v18 = vld [vmem:[%s6774_s17 + $0x74] ss:$0 sps:$4 sm:$0x11]   ;;  %v6256_v17 = vld [vmem:[%s6774_s17 + $0x9c] sm:$0xff]  }
 0x1db   : > { %4215 = vmatmul.mubr.bf16.gmra.mrb[72].mxu1 %v6224_v45  ;;  %5747 = vmatprep.subr.bf16.mxu0 %v8325_v9  ;;  %v8332_v45 = vld [vmem:[#allocation40_spill] sm:$0xff]  ;;  %v3056_v1 = vrot.slane %v3054_v46, 1  ;;  %v8337_v9 = vld [vmem:[#allocation49_spill] sm:$0xff] }
 0x1dc   : > { %5810 = vmatpush3.bf16.msra.mxu1 %v7300_v51  ;;  %4222 = vmatprep.mubr.bf16.mxu1 %v3021_v42  ;;  %v2147_v51 = vsel %vm1315_vm1, %v2145_v44, %v2146_v8  ;;  %v6251_v42 = vld [vmem:[%s6774_s17 + $0xbc] ss:$0 sps:$4 sm:$0x11]   ;;  %v6249_v8 = vld [vmem:[%s6774_s17 + $0x80] ss:$0 sps:$4 sm:$0x11]  }
 0x1dd   : > { %5811 = vmatprep.subr.bf16.mxu1 %v8326_v30  ;;  %v6248_v44 = vld [vmem:[%s6774_s17 + $0x78] sm:$0xfe]   ;;  %v3057_v30 = vsel %vm1114_vm0, %v3052_v62, %v3056_v1  ;;  %v3066_v6 = vshll.u32 %v6251_v42, 16  ;;  %v6265_v62 = vld [vmem:[%s6774_s17 + $0x80] ss:$0 sps:$4 sm:$0x11]  }
 0x1de   : > { %5748 = vmatpush3.bf16.msra.mxu0 %v8327_v20  ;;  %v3180_v20 = vrot.slane %v6248_v44, 1  ;;  %v6268_v3 = vld [vmem:[%s6774_s17 + $0x78] sm:$0xff]   ;;  %v3582_v44 = vrot.slane %v6265_v62, 1 }
 0x1df   : > { %5749 = vmatprep.subr.bf16.mxu0 %v8329_v19  ;;  %v3068_v56 = vrot.slane %v3066_v6, 1  ;;  %v6247_v19 = vld [vmem:[%s6774_s17 + $0xa8] sm:$0xff]  }
 0x1e0   : > { %5812 = vmatpush3.bf16.msra.mxu1 %v8328_v38  ;;  %v3181_v38 = vrot.slane %v6249_v8, 1 }
 0x1e1   : > { %5813 = vmatprep.subr.bf16.mxu1 %v7356_v37  ;;  %5974 = vmatmul.mubr.bf16.gmra.mrb[76].mxu0 %v2147_v51  ;;  %v8331_v37 = vld [vmem:[#allocation38_spill] sm:$0xff]  ;;  %v8339_v51 = vld [vmem:[#allocation52_spill] sm:$0xff] }
 0x1e2   : > { %5750 = vmatpush3.bf16.msra.mxu0 %v8330_v29  ;;  %4295 = vmatprep.mubr.bf16.mxu0 %v6234_v26  ;;  %v3182_v52 = vsel %vm1315_vm1, %v3180_v20, %v3181_v38  ;;  %v6261_v26 = vld [vmem:[%s6774_s17 + $0x6c] sm:$0xff]   ;;  %v6271_v20 = vld [vmem:[%s6774_s17 + $0x84] sm:$0xfe]  }
 0x1e3   : > { %4223 = vmatmul.mubr.bf16.gmra.mrb[76].mxu1 %v6231_v33  ;;  %5751 = vmatprep.subr.bf16.mxu0 %v8331_v37  ;;  %v3063_v33 = vrot.slane %v3061_v60, 1  ;;  %v6258_v37 = vld [vmem:[%s6774_s17 + $0x74] ss:$0 sps:$4 sm:$0x11]   ;;  %v3379_v46 = vshrl.u32 %v6261_v26, 16 }
 0x1e4   : > { %5814 = vmatpush3.bf16.msra.mxu1 %v7373_v58  ;;  %4230 = vmatprep.mubr.bf16.mxu1 %v3033_v14  ;;  %v3176_v58 = vsel %vm1315_vm1, %v3174_v36, %v3175_v11  ;;  %v8341_v14 = vld [vmem:[#allocation56_spill] sm:$0xff]  ;;  %v6252_v36 = vld [vmem:[%s6774_s17 + $0x90] sm:$0xff]   ;;  %v3579_v2 = vrot.slane %v6258_v37, 1  ;;  %v6272_v38 = vld [vmem:[%s6774_s17 + $0x8c] ss:$0 sps:$4 sm:$0x11]  }
 0x1e5   : > { %5815 = vmatprep.subr.bf16.mxu1 %v7392_v21  ;;  %v3045_v21 = vsel %vm1114_vm0, %v3040_v15, %v3044_v22  ;;  %v3064_v16 = vor.u32 %v3063_v33, %v3059_v57  ;;  %v6257_v11 = vld [vmem:[%s6774_s17 + $0x6c] sm:$0xfe]   ;;  %v3183_v22 = vrot.slane %v6254_v41, 1  ;;  %v3391_v57 = vshrl.u32 %v6268_v3, 16 }
 0x1e6   : > { %5752 = vmatpush3.bf16.msra.mxu0 %v8332_v45  ;;  %v8342_v15 = vld [vmem:[#allocation57_spill] sm:$0xff]  ;;  %v8343_v45 = vld [vmem:[#allocation59_spill] sm:$0xff]  ;;  %v3585_v41 = vrot.slane %v6272_v38, 1 }
 0x1e7   : > { %5865 = vmatprep.subr.bf16.mxu0 %v8333_v61  ;;  %v3069_v29 = vsel %vm1114_vm0, %v3064_v16, %v3068_v56  ;;  %v6259_v61 = vld [vmem:[%s6774_s17 + $0x90] sm:$0xfe]   ;;  %v3185_v43 = vsel %vm1315_vm1, %v3183_v22, %v3184_v12  ;;  %v6294_v38 = vld [vmem:[%s6774_s17 + $0x8c] ss:$0 sps:$4 sm:$0x11]  }
 0x1e8   : > { %5816 = vmatpush3.bf16.msra.mxu1 %v7403_v4  ;;  %v8334_v4 = vld [vmem:[#allocation44_spill] sm:$0xff]  ;;  %v3186_v1 = vrot.slane %v6259_v61, 1  ;;  %v6278_v12 = vld [vmem:[%s6774_s17 + $0x90] sm:$0xfe]  }
 0x1e9   : > { %5977 = vmatprep.subr.bf16.mxu1 %v7418_v48  ;;  %4296 = vmatmul.mubr.bf16.vlgmr.msra.gmra.mrb[80].mxu0 %v3176_v58  ;;  %v3578_v58 = vrot.slane %v6257_v11, 1 }
 0x1ea   : > { %5866 = vmatpush3.bf16.msra.mxu0 %v8334_v4  ;;  %4303 = vmatprep.mubr.bf16.mxu0 %v6240_v28  ;;  %v8344_v28 = vld [vmem:[#allocation61_spill] sm:$0xff]  ;;  %v3386_v4 = vshll.u32 %v6262_v18, 16  ;;  %v6279_v18 = vld [vmem:[%s6774_s17 + $0x98] ss:$0 sps:$4 sm:$0x11]  }
 0x1eb   : > { %4231 = vmatmul.mubr.bf16.gmra.mrb[80].mxu1 %v6235_v25  ;;  %5867 = vmatprep.subr.bf16.mxu0 %v8335_v40  ;;  %v3381_v25 = vshll.u32 %v6261_v26, 16  ;;  %v3580_v24 = vsel %vm1315_vm1, %v3578_v58, %v3579_v2  ;;  %v6264_v40 = vld [vmem:[%s6774_s17 + $0x78] sm:$0xfe]   ;;  %v6273_v26 = vld [vmem:[%s6774_s17 + $0xa8] sm:$0xfe]  }
 0x1ec   : > { %4238 = vmatprep.mubr.bf16.mxu1 %v3045_v21  ;;  %v6260_v21 = vld [vmem:[%s6774_s17 + $0x98] ss:$0 sps:$4 sm:$0x11]  }
 0x1ed   : > { %v3383_v49 = vrot.slane %v3381_v25, 1  ;;  %v3187_v42 = vrot.slane %v6260_v21, 1  ;;  %v7767_v25 = vld [vmem:[%s6774_s17 + $0x78] sm:$0xff]  }
 0x1ee   : > { %5868 = vmatpush3.bf16.msra.mxu0 %v8336_v32  ;;  %v6269_v32 = vld [vmem:[%s6774_s17 + $0x80] ss:$0 sps:$4 sm:$0x11]   ;;  %v6280_v21 = vld [vmem:[%s6774_s17 + $0xb4] sm:$0xfe]  }
 0x1ef   : > { %5869 = vmatprep.subr.bf16.mxu0 %v8337_v9  ;;  %v3384_v60 = vor.u32 %v3383_v49, %v3379_v46  ;;  %v3188_v8 = vsel %vm1315_vm1, %v3186_v1, %v3187_v42  ;;  %v6266_v9 = vld [vmem:[%s6774_s17 + $0x9c] sm:$0xfe]   ;;  %v3398_v6 = vshll.u32 %v6269_v32, 16  ;;  %v6285_v32 = vld [vmem:[%s6774_s17 + $0xa4] ss:$0 sps:$4 sm:$0x11]  }
 0x1f0   : > { %v6287_v46 = vld [vmem:[%s6774_s17 + $0x80] ss:$0 sps:$4 sm:$0x11]  }
 0x1f1   : > { %4304 = vmatmul.mubr.bf16.gmra.mrb[84].mxu0 %v3179_v27  ;;  %v3393_v27 = vshll.u32 %v6268_v3, 16  ;;  %v3400_v56 = vrot.slane %v3398_v6, 1  ;;  %v6284_v1 = vld [vmem:[%s6774_s17 + $0x9c] sm:$0xfe]  }
 0x1f2   : > { %5870 = vmatpush3.bf16.msra.mxu0 %v8338_v55  ;;  %4311 = vmatprep.mubr.bf16.mxu0 %v6246_v23  ;;  %v6263_v23 = vld [vmem:[%s6774_s17 + $0xa8] sm:$0xff]   ;;  %v7782_v42 = vld [vmem:[%s6774_s17 + $0x9c] sm:$0xff]  }
 0x1f3   : > { %4239 = vmatmul.mubr.bf16.gmra.mrb[84].mxu1 %v6241_v39  ;;  %5871 = vmatprep.subr.bf16.mxu0 %v8339_v51  ;;  %v3388_v39 = vrot.slane %v3386_v4, 1  ;;  %v3395_v33 = vrot.slane %v3393_v27, 1  ;;  %v6275_v55 = vld [vmem:[%s6774_s17 + $0x84] sm:$0xff]   ;;  %v3189_v51 = vrot.slane %v6266_v9, 1  ;;  %v3790_v9 = vshll.u32 %v6287_v46, 16 }
 0x1f4   : > { %4246 = vmatprep.mubr.bf16.mxu1 %v3057_v30  ;;  %v6267_v30 = vld [vmem:[%s6774_s17 + $0xa4] ss:$0 sps:$4 sm:$0x11]  }
 0x1f5   : > { %v3190_v16 = vrot.slane %v6267_v30, 1  ;;  %v7787_v27 = vld [vmem:[%s6774_s17 + $0x84] sm:$0xff]  }
 0x1f6   : > { %5872 = vmatpush3.bf16.msra.mxu0 %v8340_v59  ;;  %v3405_v59 = vshll.u32 %v6275_v55, 16 }
 0x1f7   : > { %5873 = vmatprep.subr.bf16.mxu0 %v8341_v14  ;;  %v3191_v31 = vsel %vm1315_vm1, %v3189_v51, %v3190_v16  ;;  %v6274_v14 = vld [vmem:[%s6774_s17 + $0xb0] ss:$0 sps:$4 sm:$0x11]  }
 0x1f8   : > { %v3407_v11 = vrot.slane %v3405_v59, 1  ;;  %v3193_v58 = vrot.slane %v6274_v14, 1 }
 0x1f9   : > { %4312 = vmatmul.mubr.bf16.gmra.mrb[88].mxu0 %v3182_v52  ;;  %v3584_v52 = vrot.slane %v6271_v20, 1  ;;  %v3429_v20 = vshll.u32 %v7782_v42, 16 }
 0x1fa   : > { %5874 = vmatpush3.bf16.msra.mxu0 %v8342_v15  ;;  %4319 = vmatprep.mubr.bf16.mxu0 %v6252_v36  ;;  %v3403_v36 = vshrl.u32 %v6275_v55, 16  ;;  %v6282_v15 = vld [vmem:[%s6774_s17 + $0x90] sm:$0xff]  }
 0x1fb   : > { %4247 = vmatmul.mubr.bf16.gmra.mrb[88].mxu1 %v6247_v19  ;;  %5875 = vmatprep.subr.bf16.mxu0 %v8343_v45  ;;  %v6276_v19 = vld [vmem:[%s6774_s17 + $0x8c] ss:$0 sps:$4 sm:$0x11]   ;;  %v3586_v22 = vsel %vm1315_vm1, %v3584_v52, %v3585_v41  ;;  %v6283_v45 = vld [vmem:[%s6774_s17 + $0x98] ss:$0 sps:$4 sm:$0x11]  }
 0x1fc   : > { %4254 = vmatprep.mubr.bf16.mxu1 %v3069_v29  ;;  %v6270_v29 = vld [vmem:[%s6774_s17 + $0xb4] sm:$0xff]   ;;  %v3410_v37 = vshll.u32 %v6276_v19, 16  ;;  %v3408_v2 = vor.u32 %v3407_v11, %v3403_v36  ;;  %v3417_v61 = vshll.u32 %v6282_v15, 16  ;;  %v3422_v49 = vshll.u32 %v6283_v45, 16  ;;  %v6291_v11 = vld [vmem:[%s6774_s17 + $0xa8] sm:$0xfe]  }
 0x1fd   : > { %v3591_v19 = vrot.slane %v6285_v32, 1  ;;  %v3795_v45 = vshrl.u32 %v7787_v27, 16 }
 0x1fe   : > { %5876 = vmatpush3.bf16.msra.mxu0 %v8344_v28  ;;  %v6281_v28 = vld [vmem:[%s6774_s17 + $0xbc] ss:$0 sps:$4 sm:$0x11]   ;;  %v3419_v62 = vrot.slane %v3417_v61, 1 }
 0x1ff   : > { %5877 = vmatprep.subr.bf16.mxu0 %v7361_v53  ;;  %v3581_v53 = vrot.slane %v6264_v40, 1  ;;  %v3415_v40 = vshrl.u32 %v6282_v15, 16  ;;  %v3427_v15 = vshrl.u32 %v7782_v42, 16 }
 0x201   : > { %4320 = vmatmul.mubr.bf16.gmra.mrb[92].mxu0 %v3185_v43  ;;  %v3587_v43 = vrot.slane %v6278_v12, 1  ;;  %v6292_v12 = vld [vmem:[%s6774_s17 + $0xb0] ss:$0 sps:$4 sm:$0x11]  }
 0x202   : > { %5878 = vmatpush3.bf16.msra.mxu0 %v7378_v54  ;;  %4327 = vmatprep.mubr.bf16.mxu0 %v6256_v17  ;;  %v3389_v54 = vsel %vm1114_vm0, %v3384_v60, %v3388_v39  ;;  %v3588_v17 = vrot.slane %v6279_v18, 1  ;;  %v3195_v60 = vrot.slane %v6280_v21, 1  ;;  %v3196_v39 = vrot.slane %v6281_v28, 1 }
 0x203   : > { %4255 = vmatmul.mubr.bf16.gmra.mrb[92].mxu1 %v6253_v5  ;;  %5879 = vmatprep.subr.bf16.mxu0 %v7397_v35  ;;  %v3583_v35 = vsel %vm1315_vm1, %v3581_v53, %v3582_v44  ;;  %v3412_v5 = vrot.slane %v3410_v37, 1  ;;  %v3783_v44 = vshrl.u32 %v7767_v25, 16  ;;  %v3802_v18 = vshll.u32 %v6294_v38, 16 }
 0x204   : > { %4392 = vmatprep.mubr.bf16.mxu1 %v3580_v24  ;;  %v6277_v24 = vld [vmem:[%s6774_s17 + $0xc0] sm:$0xff]  }
 0x205   : > { %v3413_v3 = vsel %vm1114_vm0, %v3408_v2, %v3412_v5  ;;  %v7814_v2 = vld [vmem:[%s6774_s17 + $0x90] sm:$0xff]  }
 0x206   : > { %5880 = vmatpush3.bf16.msra.mxu0 %v7410_v7  ;;  %v3396_v7 = vor.u32 %v3395_v33, %v3391_v57  ;;  %v6289_v57 = vld [vmem:[%s6774_s17 + $0xa4] ss:$0 sps:$4 sm:$0x11]   ;;  %v6296_v5 = vld [vmem:[%s6774_s17 + $0xb0] ss:$0 sps:$4 sm:$0x11]  }
 0x207   : > { %v3434_v36 = vshll.u32 %v6289_v57, 16  ;;  %v3809_v42 = vshll.u32 %v7814_v2, 16 }
 0x209   : > { %4328 = vmatmul.mubr.bf16.gmra.mrb[96].mxu0 %v3188_v8  ;;  %v3436_v28 = vrot.slane %v3434_v36, 1  ;;  %v3811_v38 = vrot.slane %v3809_v42, 1 }
 0x20a   : > { %4335 = vmatprep.mubr.bf16.mxu0 %v6263_v23  ;;  %v3424_v23 = vrot.slane %v3422_v49, 1  ;;  %v3594_v49 = vrot.slane %v6292_v12, 1 }
 0x20b   : > { %4393 = vmatmul.mubr.bf16.vlgmr.msra.gmra.mrb[96].mxu1 %v3389_v54 }
 0x20c   : > { %5978 = vmatpush3.bf16.msra.mxu1 %v7418_v48  ;;  %4400 = vmatprep.mubr.bf16.mxu1 %v3583_v35  ;;  %v3401_v48 = vsel %vm1114_vm0, %v3396_v7, %v3400_v56  ;;  %v3420_v35 = vor.u32 %v3419_v62, %v3415_v40  ;;  %v3590_v56 = vrot.slane %v6284_v1, 1  ;;  %v6301_v1 = vld [vmem:[%s6774_s17 + $0x98] ss:$0 sps:$4 sm:$0x11]  }
 0x20d   : > { %5979 = vmatprep.subr.bf16.mxu1 %v7484_v50 }
 0x20e   : > { %v3425_v37 = vsel %vm1114_vm0, %v3420_v35, %v3424_v23  ;;  %v6299_v35 = vld [vmem:[%s6774_s17 + $0xbc] ss:$0 sps:$4 sm:$0x11]  }
 0x210   : > { %5980 = vmatpush3.bf16.msra.mxu1 %v7484_v50  ;;  %v3192_v50 = vrot.slane %v6273_v26, 1  ;;  %v7798_v26 = vld [vmem:[%s6774_s17 + $0xa8] sm:$0xff]  }
 0x211   : > { %5981 = vmatprep.subr.bf16.mxu1 %v7498_v63  ;;  %4336 = vmatmul.mubr.bf16.gmra.mrb[100].mxu0 %v3191_v31  ;;  %v3792_v31 = vrot.slane %v3790_v9, 1  ;;  %v3441_v61 = vshll.u32 %v7798_v26, 16  ;;  %v3439_v32 = vshrl.u32 %v7798_v26, 16  ;;  %v6302_v9 = vld [vmem:[%s6774_s17 + $0xb4] sm:$0xff]  }
 0x212   : > { %4343 = vmatprep.mubr.bf16.mxu0 %v6270_v29  ;;  %v3194_v4 = vsel %vm1315_vm1, %v3192_v50, %v3193_v58  ;;  %v3197_v29 = vsel %vm1315_vm1, %v3195_v60, %v3196_v39  ;;  %v3592_v50 = vsel %vm1315_vm1, %v3590_v56, %v3591_v19  ;;  %v3453_v19 = vshll.u32 %v6302_v9, 16 }
 0x213   : > { %4401 = vmatmul.mubr.bf16.gmra.mrb[100].mxu1 %v3401_v48 }
 0x214   : > { %5982 = vmatpush3.bf16.msra.mxu1 %v7498_v63  ;;  %4408 = vmatprep.mubr.bf16.mxu1 %v3586_v22  ;;  %v3785_v63 = vshll.u32 %v7767_v25, 16  ;;  %v3431_v22 = vrot.slane %v3429_v20, 1  ;;  %v3807_v20 = vshrl.u32 %v7814_v2, 16 }
 0x215   : > { %5983 = vmatprep.subr.bf16.mxu1 %v7519_v10 }
 0x216   : > { %v5417_v53 = vpop.f32.mrb[0].mxu0  ;;  %v3787_v8 = vrot.slane %v3785_v63, 1  ;;  %v3432_v46 = vor.u32 %v3431_v22, %v3427_v15  ;;  %v3593_v63 = vrot.slane %v6291_v11, 1  ;;  %v3812_v36 = vor.u32 %v3811_v38, %v3807_v20 }
 0x217   : > { %v5481_v30 = vpop.f32.mrb[0].mxu1  ;;  %v5418_v54 = vpop.f32.mrb[1].mxu0 }
 0x218   : > { %5984 = vmatpush3.bf16.msra.mxu1 %v7519_v10  ;;  %v3589_v10 = vsel %vm1315_vm1, %v3587_v43, %v3588_v17  ;;  %v5419_v33 = vadd.f32 %v5418_v54, %v5417_v53  ;;  %v5482_v6 = vpop.f32.mrb[1].mxu1  ;;  %v5420_v55 = vpop.f32.mrb[2].mxu0  ;;  %v3788_v41 = vor.u32 %v3787_v8, %v3783_v44  ;;  %v3446_v53 = vshll.u32 %v6296_v5, 16  ;;  %v6290_v8 = vld [vmem:[%s6774_s17 + $0x78] sm:$0xff]  }
 0x219   : > { %5985 = vmatprep.subr.bf16.mxu1 %v7538_v0  ;;  %4344 = vmatmul.mubr.bf16.gmra.mrb[104].mxu0 %v3194_v4  ;;  %v5483_v51 = vadd.f32 %v5482_v6, %v5481_v30  ;;  %v5484_v16 = vpop.f32.mrb[2].mxu1  ;;  %v5421_v7 = vpop.f32.mrb[3].mxu0  ;;  %v3804_v4 = vrot.slane %v3802_v18, 1  ;;  %v3437_v23 = vsel %vm1114_vm0, %v3432_v46, %v3436_v28  ;;  %v3595_v57 = vsel %vm1315_vm1, %v3593_v63, %v3594_v49  ;;  %v6307_v6 = vld [vmem:[%s6774_s17 + $0x9c] sm:$0xff]  }
 0x21a   : > { %4351 = vmatprep.mubr.bf16.mxu0 %v6277_v24  ;;  %v5422_v59 = vadd.f32 %v5421_v7, %v5420_v55  ;;  %v5485_v52 = vpop.f32.mrb[3].mxu1  ;;  %v3448_v56 = vrot.slane %v3446_v53, 1  ;;  %v3455_v5 = vrot.slane %v3453_v19, 1  ;;  %v6305_v63 = vld [vmem:[%s6774_s17 + $0xc0] sm:$0xfe]  }
 0x21b   : > { %4409 = vmatmul.mubr.bf16.gmra.mrb[104].mxu1 %v3413_v3  ;;  %v7800_v14 = vadd.f32 %v5483_v51, %v5419_v33  ;;  %v5486_v48 = vadd.f32 %v5485_v52, %v5484_v16  ;;  %v6298_v33 = vld [vmem:[%s6774_s17 + $0xb4] sm:$0xfe]   ;;  %v3814_v51 = vshll.u32 %v6301_v1, 16  ;;  %v6306_v49 = vld [vmem:[%s6774_s17 + $0xc8] ss:$0 sps:$4 sm:$0x11]  }
 0x21c   : > { %5986 = vmatpush3.bf16.msra.mxu1 %v7538_v0  ;;  %4416 = vmatprep.mubr.bf16.mxu1 %v3589_v10  ;;  %v3797_v0 = vshll.u32 %v7787_v27, 16  ;;  %v3443_v27 = vrot.slane %v3441_v61, 1 }
 0x21d   : > { %5987 = vmatprep.subr.bf16.mxu1 %v7549_v47  ;;  %v7809_v25 = vadd.f32 %v5486_v48, %v5422_v59  ;;  %v3596_v48 = vrot.slane %v6298_v33, 1  ;;  %v3816_v11 = vrot.slane %v3814_v51, 1 }
 0x21e   : > { %v3799_v58 = vrot.slane %v3797_v0, 1  ;;  %v5423_v21 = vpop.f32.mrb[4].mxu0  ;;  %v3444_v7 = vor.u32 %v3443_v27, %v3439_v32  ;;  %v6308_v0 = vld [vmem:[%s6774_s17 + $0xa4] ss:$0 sps:$4 sm:$0x11]   ;;  %v3600_v32 = vrot.slane %v6306_v49, 1 }
 0x21f   : > { %v5424_v17 = vpop.f32.mrb[5].mxu0  ;;  %v3826_v28 = vshll.u32 %v6308_v0, 16 }
 0x220   : > { %5988 = vmatpush3.bf16.msra.mxu1 %v7549_v47  ;;  %v3793_v47 = vsel %vm1114_vm0, %v3788_v41, %v3792_v31  ;;  %v5425_v3 = vadd.f32 %v5424_v17, %v5423_v21  ;;  %v5426_v40 = vpop.f32.mrb[6].mxu0  ;;  %v3800_v62 = vor.u32 %v3799_v58, %v3795_v45  ;;  %v3821_v41 = vshll.u32 %v6307_v6, 16  ;;  %v7843_v58 = vld [vmem:[%s6774_s17 + $0xc0] sm:$0xff]  }
 0x221   : > { %5989 = vmatprep.subr.bf16.mxu1 %v7566_v13  ;;  %4352 = vmatmul.mubr.bf16.gmra.mrb[108].mxu0 %v3197_v29  ;;  %v5487_v43 = vpop.f32.mrb[4].mxu1  ;;  %v5427_v39 = vpop.f32.mrb[7].mxu0  ;;  %v3597_v29 = vrot.slane %v6299_v35, 1  ;;  %v3449_v18 = vsel %vm1114_vm0, %v3444_v7, %v3448_v56  ;;  %v3451_v45 = vshrl.u32 %v6302_v9, 16  ;;  %v3819_v21 = vshrl.u32 %v6307_v6, 16 }
 0x222   : > { %v5488_v24 = vpop.f32.mrb[5].mxu1  ;;  %4489 = vmatprep.mubr.bf16.mxu0 %v3793_v47  ;;  %v5428_v10 = vadd.f32 %v5427_v39, %v5426_v40  ;;  %v3805_v55 = vsel %vm1114_vm0, %v3800_v62, %v3804_v4  ;;  %v3823_v4 = vrot.slane %v3821_v41, 1  ;;  %v6312_v40 = vld [vmem:[%s6774_s17 + $0xa8] sm:$0xff]   ;;  %v3465_v1 = vshll.u32 %v7843_v58, 16 }
 0x223   : > { %4417 = vmatmul.mubr.bf16.gmra.mrb[108].mxu1 %v3425_v37  ;;  %v5490_v60 = vpop.f32.mrb[6].mxu1  ;;  %v3456_v42 = vor.u32 %v3455_v5, %v3451_v45  ;;  %v3599_v39 = vrot.slane %v6305_v63, 1  ;;  %v3828_v53 = vrot.slane %v3826_v28, 1  ;;  %v3833_v9 = vshll.u32 %v6312_v40, 16  ;;  %v6321_v63 = vld [vmem:[%s6774_s17 + $0x90] sm:$0xfe]  }
 0x224   : > { %5990 = vmatpush3.bf16.msra.mxu1 %v7566_v13  ;;  %4424 = vmatprep.mubr.bf16.mxu1 %v3592_v50  ;;  %v5489_v13 = vadd.f32 %v5488_v24, %v5487_v43  ;;  %v5491_v44 = vpop.f32.mrb[7].mxu1  ;;  %v6297_v50 = vld [vmem:[%s6774_s17 + $0x84] sm:$0xff]   ;;  %v3817_v24 = vsel %vm1114_vm0, %v3812_v36, %v3816_v11  ;;  %v3824_v27 = vor.u32 %v3823_v4, %v3819_v21  ;;  %v3463_v33 = vshrl.u32 %v7843_v58, 16  ;;  %v6315_v56 = vld [vmem:[%s6774_s17 + $0x80] ss:$0 sps:$4 sm:$0x11]  }
 0x225   : > { %5991 = vmatprep.subr.bf16.mxu1 %v7447_v34  ;;  %v5492_v54 = vadd.f32 %v5491_v44, %v5490_v60  ;;  %v6310_v60 = vld [vmem:[%s6774_s17 + $0xc8] ss:$0 sps:$4 sm:$0x11]   ;;  %v3467_v6 = vrot.slane %v3465_v1, 1  ;;  %v3601_v0 = vsel %vm1315_vm1, %v3599_v39, %v3600_v32  ;;  %v3835_v36 = vrot.slane %v3833_v9, 1  ;;  %v6319_v11 = vld [vmem:[%s6774_s17 + $0xb4] sm:$0xff]  }
 0x226   : > { %v7826_v30 = vadd.f32 %v5489_v13, %v5425_v3  ;;  %v3598_v3 = vsel %vm1315_vm1, %v3596_v48, %v3597_v29  ;;  %v3470_v7 = vshll.u32 %v6310_v60, 16  ;;  %v6320_v58 = vld [vmem:[%s6774_s17 + $0xbc] ss:$0 sps:$4 sm:$0x11]   ;;  %v3843_v32 = vshrl.u32 %v6319_v11, 16 }
 0x227   : > { %v7836_v16 = vadd.f32 %v5492_v54, %v5428_v10  ;;  %v5429_v59 = vpop.f32.mrb[8].mxu0  ;;  %v6313_v10 = vld [vmem:[%s6774_s17 + $0xb0] ss:$0 sps:$4 sm:$0x11]  }
 0x228   : > { %5992 = vmatpush3.bf16.msra.mxu1 %v7447_v34  ;;  %v6303_v34 = vld [vmem:[%s6774_s17 + $0xbc] ss:$0 sps:$4 sm:$0x11]   ;;  %v5430_v31 = vpop.f32.mrb[9].mxu0  ;;  %v3838_v41 = vshll.u32 %v6313_v10, 16  ;;  %v6326_v10 = vld [vmem:[%s6774_s17 + $0xc0] sm:$0xff]  }
 0x229   : > { %4490 = vmatmul.mubr.bf16.vlgmr.msra.gmra.mrb[112].mxu0 %v6290_v8  ;;  %v5431_v37 = vadd.f32 %v5430_v31, %v5429_v59  ;;  %v5432_v22 = vpop.f32.mrb[10].mxu0  ;;  %v3458_v61 = vshll.u32 %v6303_v34, 16  ;;  %v3829_v59 = vsel %vm1114_vm0, %v3824_v27, %v3828_v53  ;;  %v6314_v31 = vld [vmem:[%s6774_s17 + $0x78] sm:$0xfe]   ;;  %v3850_v53 = vshll.u32 %v6320_v58, 16 }
 0x22a   : > { %v5493_v52 = vpop.f32.mrb[8].mxu1  ;;  %4497 = vmatprep.mubr.bf16.mxu0 %v3805_v55  ;;  %v5433_v2 = vpop.f32.mrb[11].mxu0  ;;  %v3840_v45 = vrot.slane %v3838_v41, 1  ;;  %v6318_v21 = vld [vmem:[%s6774_s17 + $0x8c] ss:$0 sps:$4 sm:$0x11]  }
 0x22b   : > { %4425 = vmatmul.mubr.bf16.gmra.mrb[112].mxu1 %v3437_v23  ;;  %v5494_v26 = vpop.f32.mrb[9].mxu1  ;;  %v5434_v17 = vadd.f32 %v5433_v2, %v5432_v22  ;;  %v3460_v13 = vrot.slane %v3458_v61, 1  ;;  %v3472_v22 = vrot.slane %v3470_v7, 1  ;;  %v3845_v2 = vshll.u32 %v6319_v11, 16  ;;  %v6311_v61 = vld [vmem:[%s6774_s17 + $0x9c] sm:$0xff]  }
 0x22c   : > { %4432 = vmatprep.mubr.bf16.mxu1 %v3595_v57  ;;  %v5495_v15 = vadd.f32 %v5494_v26, %v5493_v52  ;;  %v5496_v12 = vpop.f32.mrb[10].mxu1  ;;  %v6304_v57 = vld [vmem:[%s6774_s17 + $0x90] sm:$0xff]   ;;  %v3831_v52 = vshrl.u32 %v6312_v40, 16 }
 0x22d   : > { %v5497_v47 = vpop.f32.mrb[11].mxu1  ;;  %v3461_v51 = vsel %vm1114_vm0, %v3456_v42, %v3460_v13  ;;  %v6322_v42 = vld [vmem:[%s6774_s17 + $0x98] ss:$0 sps:$4 sm:$0x11]   ;;  %v3847_v27 = vrot.slane %v3845_v2, 1  ;;  %v6333_v2 = vld [vmem:[%s6774_s17 + $0xcc] sm:$0xff]  }
 0x22e   : > { %v7845_v43 = vadd.f32 %v5495_v15, %v5431_v37  ;;  %v5498_v46 = vadd.f32 %v5497_v47, %v5496_v12  ;;  %v3468_v15 = vor.u32 %v3467_v6, %v3463_v33  ;;  %v3982_v12 = vrot.slane %v6314_v31, 1 }
 0x22f   : > { %v3988_v33 = vrot.slane %v6321_v63, 1  ;;  %v3989_v6 = vrot.slane %v6322_v42, 1  ;;  %v6323_v42 = vld [vmem:[%s6774_s17 + $0xb4] sm:$0xff]  }
 0x230   : > { %v7852_v62 = vadd.f32 %v5498_v46, %v5434_v17  ;;  %v6317_v46 = vld [vmem:[%s6774_s17 + $0x84] sm:$0xfe]   ;;  %v3473_v40 = vsel %vm1114_vm0, %v3468_v15, %v3472_v22  ;;  %v6329_v15 = vld [vmem:[%s6774_s17 + $0xb0] ss:$0 sps:$4 sm:$0x11]  }
 0x231   : > { %4498 = vmatmul.mubr.bf16.gmra.mrb[116].mxu0 %v6297_v50  ;;  %v5435_v44 = vpop.f32.mrb[12].mxu0  ;;  %v3836_v50 = vor.u32 %v3835_v36, %v3831_v52  ;;  %v6328_v52 = vld [vmem:[%s6774_s17 + $0xa8] sm:$0xfe]   ;;  %v3990_v11 = vsel %vm1315_vm1, %v3988_v33, %v3989_v6  ;;  %v3995_v63 = vrot.slane %v6329_v15, 1 }
 0x232   : > { %4505 = vmatprep.mubr.bf16.mxu0 %v3817_v24  ;;  %v5436_v54 = vpop.f32.mrb[13].mxu0  ;;  %v6336_v33 = vld [vmem:[%s6774_s17 + $0xc8] ss:$0 sps:$4 sm:$0x11]  }
 0x233   : > { %4433 = vmatmul.mubr.bf16.gmra.mrb[116].mxu1 %v3449_v18  ;;  %v5437_v55 = vadd.f32 %v5436_v54, %v5435_v44  ;;  %v5438_v20 = vpop.f32.mrb[14].mxu0  ;;  %v3983_v18 = vrot.slane %v6315_v56, 1  ;;  %v3841_v39 = vsel %vm1114_vm0, %v3836_v50, %v3840_v45  ;;  %v3985_v54 = vrot.slane %v6317_v46, 1  ;;  %v6316_v56 = vld [vmem:[%s6774_s17 + $0xa8] sm:$0xff]  }
 0x234   : > { %4440 = vmatprep.mubr.bf16.mxu1 %v3598_v3  ;;  %v5499_v8 = vpop.f32.mrb[12].mxu1  ;;  %v5439_v34 = vpop.f32.mrb[15].mxu0  ;;  %v3855_v50 = vshrl.u32 %v6326_v10, 16  ;;  %v3994_v46 = vrot.slane %v6328_v52, 1 }
 0x235   : > { %v5500_v23 = vpop.f32.mrb[13].mxu1  ;;  %v5440_v48 = vadd.f32 %v5439_v34, %v5438_v20  ;;  %v3984_v1 = vsel %vm1315_vm1, %v3982_v12, %v3983_v18  ;;  %v6327_v20 = vld [vmem:[%s6774_s17 + $0xc8] ss:$0 sps:$4 sm:$0x11]  }
 0x236   : > { %v5501_v35 = vadd.f32 %v5500_v23, %v5499_v8  ;;  %v5502_v38 = vpop.f32.mrb[14].mxu1  ;;  %v6325_v34 = vld [vmem:[%s6774_s17 + $0xa4] ss:$0 sps:$4 sm:$0x11]   ;;  %v3862_v58 = vshll.u32 %v6327_v20, 16  ;;  %v3867_v20 = vshrl.u32 %v6333_v2, 16 }
 0x237   : > { %v5503_v19 = vpop.f32.mrb[15].mxu1 }
 0x238   : > { %v7864_v26 = vadd.f32 %v5501_v35, %v5437_v55  ;;  %v5504_v29 = vadd.f32 %v5503_v19, %v5502_v38  ;;  %v3848_v55 = vor.u32 %v3847_v27, %v3843_v32  ;;  %v3852_v35 = vrot.slane %v3850_v53, 1  ;;  %v6331_v32 = vld [vmem:[%s6774_s17 + $0xb4] sm:$0xfe]   ;;  %v6335_v27 = vld [vmem:[%s6774_s17 + $0xc0] sm:$0xfe]  }
 0x239   : > { %4506 = vmatmul.mubr.bf16.gmra.mrb[120].mxu0 %v6304_v57  ;;  %v3986_v57 = vrot.slane %v6318_v21, 1  ;;  %v3857_v38 = vshll.u32 %v6326_v10, 16 }
 0x23a   : > { %v7867_v37 = vadd.f32 %v5504_v29, %v5440_v48  ;;  %4513 = vmatprep.mubr.bf16.mxu0 %v3829_v59  ;;  %v6324_v59 = vld [vmem:[%s6774_s17 + $0x9c] sm:$0xfe]   ;;  %v3853_v18 = vsel %vm1114_vm0, %v3848_v55, %v3852_v35 }
 0x23b   : > { %4441 = vmatmul.mubr.bf16.gmra.mrb[120].mxu1 %v3461_v51  ;;  %v5441_v47 = vpop.f32.mrb[16].mxu0  ;;  %v3987_v36 = vsel %vm1315_vm1, %v3985_v54, %v3986_v57  ;;  %v3859_v45 = vrot.slane %v3857_v38, 1  ;;  %v3991_v21 = vrot.slane %v6324_v59, 1  ;;  %v3996_v57 = vsel %vm1315_vm1, %v3994_v46, %v3995_v63 }
 0x23c   : > { %4448 = vmatprep.mubr.bf16.mxu1 %v3601_v0  ;;  %v5442_v28 = vpop.f32.mrb[17].mxu0 }
 0x23d   : > { %v5443_v49 = vadd.f32 %v5442_v28, %v5441_v47  ;;  %v5444_v3 = vpop.f32.mrb[18].mxu0 }
 0x23e   : > { %v5505_v5 = vpop.f32.mrb[16].mxu1  ;;  %v5445_v13 = vpop.f32.mrb[19].mxu0 }
 0x23f   : > { %v5506_v17 = vpop.f32.mrb[17].mxu1  ;;  %v5446_v8 = vadd.f32 %v5445_v13, %v5444_v3  ;;  %v6334_v3 = vld [vmem:[%s6774_s17 + $0xd4] ss:$0 sps:$4 sm:$0x11]  }
 0x240   : > { %v5507_v4 = vadd.f32 %v5506_v17, %v5505_v5  ;;  %v5508_v24 = vpop.f32.mrb[18].mxu1  ;;  %v3992_v17 = vrot.slane %v6325_v34, 1  ;;  %v6332_v13 = vld [vmem:[%s6774_s17 + $0xbc] ss:$0 sps:$4 sm:$0x11]  }
 0x241   : > { %v5509_v60 = vpop.f32.mrb[19].mxu1  ;;  %4514 = vmatmul.mubr.bf16.gmra.mrb[124].mxu0 %v6311_v61  ;;  %v3998_v59 = vrot.slane %v6332_v13, 1 }
 0x242   : > { %v7879_v44 = vadd.f32 %v5507_v4, %v5443_v49  ;;  %v5510_v9 = vadd.f32 %v5509_v60, %v5508_v24  ;;  %4521 = vmatprep.mubr.bf16.mxu0 %v3841_v39  ;;  %v3860_v49 = vor.u32 %v3859_v45, %v3855_v50  ;;  %v3864_v4 = vrot.slane %v3862_v58, 1 }
 0x243   : > { %4449 = vmatmul.mubr.bf16.gmra.mrb[124].mxu1 %v3473_v40  ;;  %v3869_v24 = vshll.u32 %v6333_v2, 16  ;;  %v3993_v54 = vsel %vm1315_vm1, %v3991_v21, %v3992_v17 }
 0x244   : > { %v7881_v23 = vadd.f32 %v5510_v9, %v5446_v8  ;;  %5993 = vmatprep.mubr.bf16.mxu1 %v3984_v1  ;;  %v5447_v51 = vpop.f32.mrb[20].mxu0  ;;  %v3865_v35 = vsel %vm1114_vm0, %v3860_v49, %v3864_v4 }
 0x245   : > { %v5448_v19 = vpop.f32.mrb[21].mxu0  ;;  %v3871_v38 = vrot.slane %v3869_v24, 1 }
 0x246   : > { %v5511_v7 = vpop.f32.mrb[20].mxu1  ;;  %v5449_v41 = vadd.f32 %v5448_v19, %v5447_v51  ;;  %v5450_v48 = vpop.f32.mrb[22].mxu0  ;;  %v3874_v51 = vshll.u32 %v6334_v3, 16 }
 0x247   : > { %v5512_v0 = vpop.f32.mrb[21].mxu1  ;;  %v5451_v22 = vpop.f32.mrb[23].mxu0  ;;  %v3872_v52 = vor.u32 %v3871_v38, %v3867_v20 }
 0x248   : > { %v5513_v31 = vadd.f32 %v5512_v0, %v5511_v7  ;;  %v5514_v29 = vpop.f32.mrb[22].mxu1  ;;  %v5452_v5 = vadd.f32 %v5451_v22, %v5450_v48  ;;  %v3997_v0 = vrot.slane %v6331_v32, 1  ;;  %v4001_v48 = vrot.slane %v6336_v33, 1  ;;  %v6330_v22 = vld [vmem:[%s6774_s17 + $0xc0] sm:$0xff]  }
 0x249   : > { %v5515_v12 = vpop.f32.mrb[23].mxu1  ;;  %4522 = vmatmul.mubr.bf16.gmra.mrb[128].mxu0 %v6316_v56 }
 0x24a   : > { %v7893_v47 = vadd.f32 %v5513_v31, %v5449_v41  ;;  %v5516_v61 = vadd.f32 %v5515_v12, %v5514_v29  ;;  %4529 = vmatprep.mubr.bf16.mxu0 %v3853_v18  ;;  %v3876_v41 = vrot.slane %v3874_v51, 1  ;;  %v4000_v31 = vrot.slane %v6335_v27, 1  ;;  %v6338_v12 = vld [vmem:[%s6774_s17 + $0xcc] sm:$0xfe]  }
 0x24b   : > { %5994 = vmatmul.mubr.bf16.vlgmr.msra.gmra.mrb[128].mxu1 %v3987_v36  ;;  %v3999_v2 = vsel %vm1315_vm1, %v3997_v0, %v3998_v59  ;;  %v4003_v24 = vrot.slane %v6338_v12, 1 }
 0x24c   : > { %v7895_v28 = vadd.f32 %v5516_v61, %v5452_v5  ;;  %5997 = vmatprep.mubr.bf16.mxu1 %v3990_v11  ;;  %v5453_v40 = vpop.f32.mrb[24].mxu0  ;;  %v6339_v5 = vld [vmem:[%s6774_s17 + $0xd4] ss:$0 sps:$4 sm:$0x11]   ;;  %v3877_v17 = vsel %vm1114_vm0, %v3872_v52, %v3876_v41  ;;  %v4002_v46 = vsel %vm1315_vm1, %v4000_v31, %v4001_v48 }
 0x24d   : > { %v5454_v60 = vpop.f32.mrb[25].mxu0 }
 0x24e   : > { %v5517_v1 = vpop.f32.mrb[24].mxu1  ;;  %v5455_v53 = vadd.f32 %v5454_v60, %v5453_v40  ;;  %v5456_v8 = vpop.f32.mrb[26].mxu0  ;;  %v4004_v40 = vrot.slane %v6339_v5, 1 }
 0x24f   : > { %v5518_v39 = vpop.f32.mrb[25].mxu1  ;;  %v5457_v6 = vpop.f32.mrb[27].mxu0 }
 0x250   : > { %v5519_v10 = vadd.f32 %v5518_v39, %v5517_v1  ;;  %v5520_v9 = vpop.f32.mrb[26].mxu1  ;;  %v5458_v56 = vadd.f32 %v5457_v6, %v5456_v8  ;;  %v6337_v39 = vld [vmem:[%s6774_s17 + $0xcc] sm:$0xff]   ;;  %v4005_v8 = vsel %vm1315_vm1, %v4003_v24, %v4004_v40 }
 0x251   : > { %v5521_v55 = vpop.f32.mrb[27].mxu1  ;;  %4530 = vmatmul.mubr.bf16.gmra.mrb[132].mxu0 %v6323_v42 }
 0x252   : > { %v7906_v7 = vadd.f32 %v5519_v10, %v5455_v53  ;;  %v5522_v34 = vadd.f32 %v5521_v55, %v5520_v9  ;;  %4537 = vmatprep.mubr.bf16.mxu0 %v3865_v35 }
 0x253   : > { %5998 = vmatmul.mubr.bf16.gmra.mrb[132].mxu1 %v3993_v54 }
 0x254   : > { %v7908_v19 = vadd.f32 %v5522_v34, %v5458_v56  ;;  %6001 = vmatprep.mubr.bf16.mxu1 %v3996_v57  ;;  %v5459_v29 = vpop.f32.mrb[28].mxu0 }
 0x255   : > { %v5460_v11 = vpop.f32.mrb[29].mxu0 }
 0x256   : > { %v5523_v36 = vpop.f32.mrb[28].mxu1  ;;  %v5461_v18 = vadd.f32 %v5460_v11, %v5459_v29  ;;  %v5462_v45 = vpop.f32.mrb[30].mxu0 }
 0x257   : > { %v5524_v15 = vpop.f32.mrb[29].mxu1  ;;  %v5463_v61 = vpop.f32.mrb[31].mxu0 }
 0x258   : > { %v5525_v50 = vadd.f32 %v5524_v15, %v5523_v36  ;;  %v5526_v58 = vpop.f32.mrb[30].mxu1  ;;  %v5464_v49 = vadd.f32 %v5463_v61, %v5462_v45 }
 0x259   : > { %v5527_v21 = vpop.f32.mrb[31].mxu1  ;;  %4538 = vmatmul.mubr.bf16.gmra.mrb[136].mxu0 %v6330_v22 }
 0x25a   : > { %v7916_v63 = vadd.f32 %v5525_v50, %v5461_v18  ;;  %v5528_v4 = vadd.f32 %v5527_v21, %v5526_v58  ;;  %4545 = vmatprep.mubr.bf16.mxu0 %v3877_v17 }
 0x25b   : > { %6002 = vmatmul.mubr.bf16.gmra.mrb[136].mxu1 %v3999_v2 }
 0x25c   : > { %v7918_v3 = vadd.f32 %v5528_v4, %v5464_v49  ;;  %6005 = vmatprep.mubr.bf16.mxu1 %v4002_v46  ;;  %v5545_v1 = vpop.f32.mrb[32].mxu0 }
 0x25d   : > { %v5546_v13 = vpop.f32.mrb[33].mxu0 }
 0x25e   : > { %v5609_v42 = vpop.f32.mrb[32].mxu1  ;;  %v5547_v32 = vadd.f32 %v5546_v13, %v5545_v1  ;;  %v5548_v27 = vpop.f32.mrb[34].mxu0 }
 0x25f   : > { %v5610_v60 = vpop.f32.mrb[33].mxu1  ;;  %v5549_v9 = vpop.f32.mrb[35].mxu0 }
 0x260   : > { %v5611_v53 = vadd.f32 %v5610_v60, %v5609_v42  ;;  %v5612_v10 = vpop.f32.mrb[34].mxu1  ;;  %v2537_v57 = vadd.f32 %v5547_v32, %v7800_v14  ;;  %v5550_v33 = vadd.f32 %v5549_v9, %v5548_v27 }
 0x261   : > { %v5613_v54 = vpop.f32.mrb[35].mxu1  ;;  %4546 = vmatmul.mubr.bf16.gmra.mrb[140].mxu0 %v6337_v39 }
 0x262   : > { %v5614_v6 = vadd.f32 %v5613_v54, %v5612_v10  ;;  %v2540_v55 = vadd.f32 %v5550_v33, %v7809_v25  ;;  %v7924_v35 = vadd.f32 %v5611_v53, %v2537_v57 }
 0x263   : > { %6006 = vmatmul.mubr.bf16.gmra.mrb[140].mxu1 %v4005_v8 }
 0x264   : > { %v5551_v20 = vpop.f32.mrb[36].mxu0  ;;  %v7926_v51 = vadd.f32 %v5614_v6, %v2540_v55 }
 0x265   : > { %v5552_v56 = vpop.f32.mrb[37].mxu0 }
 0x266   : > { %v5615_v38 = vpop.f32.mrb[36].mxu1  ;;  %v5553_v0 = vadd.f32 %v5552_v56, %v5551_v20  ;;  %v5554_v59 = vpop.f32.mrb[38].mxu0 }
 0x267   : > { %v5616_v34 = vpop.f32.mrb[37].mxu1  ;;  %v5555_v31 = vpop.f32.mrb[39].mxu0 }
 0x268   : > { %v5617_v52 = vadd.f32 %v5616_v34, %v5615_v38  ;;  %v5618_v41 = vpop.f32.mrb[38].mxu1  ;;  %v2545_v48 = vadd.f32 %v5553_v0, %v7826_v30  ;;  %v5556_v29 = vadd.f32 %v5555_v31, %v5554_v59 }
 0x269   : > { %v5619_v14 = vpop.f32.mrb[39].mxu1 }
 0x26a   : > { %v5620_v36 = vadd.f32 %v5619_v14, %v5618_v41  ;;  %v2548_v25 = vadd.f32 %v5556_v29, %v7836_v16  ;;  %v7930_v11 = vadd.f32 %v5617_v52, %v2545_v48 }
 0x26c   : > { %v5557_v15 = vpop.f32.mrb[40].mxu0  ;;  %v7932_v12 = vadd.f32 %v5620_v36, %v2548_v25 }
 0x26d   : > { %v5558_v18 = vpop.f32.mrb[41].mxu0 }
 0x26e   : > { %v5621_v22 = vpop.f32.mrb[40].mxu1  ;;  %v5559_v45 = vadd.f32 %v5558_v18, %v5557_v15  ;;  %v5560_v58 = vpop.f32.mrb[42].mxu0 }
 0x26f   : > { %v5622_v50 = vpop.f32.mrb[41].mxu1  ;;  %v5561_v61 = vpop.f32.mrb[43].mxu0 }
 0x270   : > { %v5623_v2 = vadd.f32 %v5622_v50, %v5621_v22  ;;  %v5624_v5 = vpop.f32.mrb[42].mxu1  ;;  %v2553_v30 = vadd.f32 %v5559_v45, %v7845_v43  ;;  %v5562_v17 = vadd.f32 %v5561_v61, %v5560_v58 }
 0x271   : > { %v5625_v21 = vpop.f32.mrb[43].mxu1 }
 0x272   : > { %v5626_v46 = vadd.f32 %v5625_v21, %v5624_v5  ;;  %v2556_v16 = vadd.f32 %v5562_v17, %v7852_v62  ;;  %v7936_v49 = vadd.f32 %v5623_v2, %v2553_v30 }
 0x274   : > { %v5563_v4 = vpop.f32.mrb[44].mxu0  ;;  %v7938_v40 = vadd.f32 %v5626_v46, %v2556_v16 }
 0x275   : > { %v5564_v1 = vpop.f32.mrb[45].mxu0 }
 0x276   : > { %v5627_v24 = vpop.f32.mrb[44].mxu1  ;;  %v5565_v13 = vadd.f32 %v5564_v1, %v5563_v4  ;;  %v5566_v60 = vpop.f32.mrb[46].mxu0 }
 0x277   : > { %v5628_v42 = vpop.f32.mrb[45].mxu1  ;;  %v5567_v27 = vpop.f32.mrb[47].mxu0 }
 0x278   : > { %v5629_v39 = vadd.f32 %v5628_v42, %v5627_v24  ;;  %v5630_v32 = vpop.f32.mrb[46].mxu1  ;;  %v2561_v43 = vadd.f32 %v5565_v13, %v7864_v26  ;;  %v5568_v10 = vadd.f32 %v5567_v27, %v5566_v60 }
 0x279   : > { %v5631_v53 = vpop.f32.mrb[47].mxu1 }
 0x27a   : > { %v5632_v8 = vadd.f32 %v5631_v53, %v5630_v32  ;;  %v2564_v62 = vadd.f32 %v5568_v10, %v7867_v37  ;;  %v7942_v9 = vadd.f32 %v5629_v39, %v2561_v43 }
 0x27c   : > { %v5569_v54 = vpop.f32.mrb[48].mxu0  ;;  %v7944_v33 = vadd.f32 %v5632_v8, %v2564_v62 }
 0x27d   : > { %v5570_v6 = vpop.f32.mrb[49].mxu0 }
 0x27e   : > { %v5633_v57 = vpop.f32.mrb[48].mxu1  ;;  %v5571_v20 = vadd.f32 %v5570_v6, %v5569_v54  ;;  %v5572_v38 = vpop.f32.mrb[50].mxu0 }
 0x27f   : > { %v5634_v55 = vpop.f32.mrb[49].mxu1  ;;  %v5573_v0 = vpop.f32.mrb[51].mxu0 }
 0x280   : > { %v5635_v56 = vadd.f32 %v5634_v55, %v5633_v57  ;;  %v5636_v34 = vpop.f32.mrb[50].mxu1  ;;  %v2569_v26 = vadd.f32 %v5571_v20, %v7879_v44  ;;  %v5574_v52 = vadd.f32 %v5573_v0, %v5572_v38 }
 0x281   : > { %v5637_v59 = vpop.f32.mrb[51].mxu1 }
 0x282   : > { %v5638_v41 = vadd.f32 %v5637_v59, %v5636_v34  ;;  %v2572_v37 = vadd.f32 %v5574_v52, %v7881_v23  ;;  %v7948_v31 = vadd.f32 %v5635_v56, %v2569_v26 }
 0x284   : > { %v5575_v14 = vpop.f32.mrb[52].mxu0  ;;  %v7950_v29 = vadd.f32 %v5638_v41, %v2572_v37 }
 0x285   : > { %v5576_v36 = vpop.f32.mrb[53].mxu0 }
 0x286   : > { %v5639_v48 = vpop.f32.mrb[52].mxu1  ;;  %v5577_v15 = vadd.f32 %v5576_v36, %v5575_v14  ;;  %v5578_v22 = vpop.f32.mrb[54].mxu0 }
 0x287   : > { %v5640_v25 = vpop.f32.mrb[53].mxu1  ;;  %v5579_v45 = vpop.f32.mrb[55].mxu0 }
 0x288   : > { %v5641_v18 = vadd.f32 %v5640_v25, %v5639_v48  ;;  %v5642_v50 = vpop.f32.mrb[54].mxu1  ;;  %v2577_v44 = vadd.f32 %v5577_v15, %v7893_v47  ;;  %v5580_v2 = vadd.f32 %v5579_v45, %v5578_v22 }
 0x289   : > { %v5643_v58 = vpop.f32.mrb[55].mxu1 }
 0x28a   : > { %v5644_v5 = vadd.f32 %v5643_v58, %v5642_v50  ;;  %v2580_v23 = vadd.f32 %v5580_v2, %v7895_v28  ;;  %v7954_v61 = vadd.f32 %v5641_v18, %v2577_v44 }
 0x28c   : > { %v5581_v21 = vpop.f32.mrb[56].mxu0  ;;  %v7956_v17 = vadd.f32 %v5644_v5, %v2580_v23 }
 0x28d   : > { %v5582_v46 = vpop.f32.mrb[57].mxu0 }
 0x28e   : > { %v5645_v30 = vpop.f32.mrb[56].mxu1  ;;  %v5583_v4 = vadd.f32 %v5582_v46, %v5581_v21  ;;  %v5584_v24 = vpop.f32.mrb[58].mxu0 }
 0x28f   : > { %v5646_v16 = vpop.f32.mrb[57].mxu1  ;;  %v5585_v13 = vpop.f32.mrb[59].mxu0 }
 0x290   : > { %v5647_v1 = vadd.f32 %v5646_v16, %v5645_v30  ;;  %v5648_v42 = vpop.f32.mrb[58].mxu1  ;;  %v2585_v47 = vadd.f32 %v5583_v4, %v7906_v7  ;;  %v5586_v39 = vadd.f32 %v5585_v13, %v5584_v24 }
 0x291   : > { %v5649_v60 = vpop.f32.mrb[59].mxu1 }
 0x292   : > { %v5650_v32 = vadd.f32 %v5649_v60, %v5648_v42  ;;  %v2588_v28 = vadd.f32 %v5586_v39, %v7908_v19  ;;  %v7960_v27 = vadd.f32 %v5647_v1, %v2585_v47 }
 0x294   : > { %v5587_v53 = vpop.f32.mrb[60].mxu0  ;;  %v7962_v10 = vadd.f32 %v5650_v32, %v2588_v28 }
 0x295   : > { %v5588_v8 = vpop.f32.mrb[61].mxu0 }
 0x296   : > { %v5651_v43 = vpop.f32.mrb[60].mxu1  ;;  %v5589_v54 = vadd.f32 %v5588_v8, %v5587_v53  ;;  %v5590_v57 = vpop.f32.mrb[62].mxu0 }
 0x297   : > { %v5652_v62 = vpop.f32.mrb[61].mxu1  ;;  %v5591_v20 = vpop.f32.mrb[63].mxu0 }
 0x298   : > { %v5653_v6 = vadd.f32 %v5652_v62, %v5651_v43  ;;  %v5654_v55 = vpop.f32.mrb[62].mxu1  ;;  %v2593_v7 = vadd.f32 %v5589_v54, %v7916_v63  ;;  %v5592_v56 = vadd.f32 %v5591_v20, %v5590_v57 }
 0x299   : > { %v5655_v38 = vpop.f32.mrb[63].mxu1 }
 0x29a   : > { %v5656_v34 = vadd.f32 %v5655_v38, %v5654_v55  ;;  %v2596_v19 = vadd.f32 %v5592_v56, %v7918_v3  ;;  %v2690_v0 = vadd.f32 %v5653_v6, %v2593_v7 }
 0x29c   : > { %v5963_v59 = vpop.f32.mrb[64].mxu0  ;;  %v7967_v52 = vadd.f32 %v5656_v34, %v2596_v19 }
 0x29d   : > { %v2739_v41 = vadd.f32 %v5963_v59, %v7930_v11  ;;  %v2730_v37 = vpop.f32.mrb[65].mxu0 }
 0x29e   : > { %v5689_v26 = vpop.f32.mrb[64].mxu1  ;;  %v2731_v48 = vadd.f32 %v2730_v37, %v7924_v35  ;;  %v5964_v36 = vpop.f32.mrb[66].mxu0 }
 0x29f   : > { %v5690_v14 = vpop.f32.mrb[65].mxu1  ;;  %2795 = vst [vmem:[%s7973_s19 + $0x10] sm:$0xff] %v2739_v41  ;;  %v2742_v3 = vadd.f32 %v5964_v36, %v7932_v12  ;;  %v2733_v15 = vpop.f32.mrb[67].mxu0 }
 0x2a0   : > { %v7971_v25 = vadd.f32 %v5690_v14, %v5689_v26  ;;  %v5692_v63 = vpop.f32.mrb[66].mxu1  ;;  %2793 = vst [vmem:[%s7973_s19] sm:$0xff] %v2731_v48  ;;  %v2734_v22 = vadd.f32 %v2733_v15, %v7926_v51 }
 0x2a1   : > { %v5693_v11 = vpop.f32.mrb[67].mxu1  ;;  %2796 = vst [vmem:[%s7973_s19 + $0x18] sm:$0xff] %v2742_v3 }
 0x2a2   : > { %v7979_v35 = vadd.f32 %v5693_v11, %v5692_v63  ;;  %2794 = vst [vmem:[%s7973_s19 + $0x8] sm:$0xff] %v2734_v22 }
 0x2a4   : > { %v5967_v18 = vpop.f32.mrb[68].mxu0 }
 0x2a5   : > { %v2755_v45 = vadd.f32 %v5967_v18, %v7942_v9  ;;  %v2746_v58 = vpop.f32.mrb[69].mxu0 }
 0x2a6   : > { %v5695_v50 = vpop.f32.mrb[68].mxu1  ;;  %v2747_v12 = vadd.f32 %v2746_v58, %v7936_v49  ;;  %v5968_v2 = vpop.f32.mrb[70].mxu0 }
 0x2a7   : > { %v5696_v44 = vpop.f32.mrb[69].mxu1  ;;  %2799 = vst [vmem:[%s7973_s19 + $0x30] sm:$0xff] %v2755_v45  ;;  %v2758_v51 = vadd.f32 %v5968_v2, %v7944_v33  ;;  %v2749_v21 = vpop.f32.mrb[71].mxu0 }
 0x2a8   : > { %v7985_v5 = vadd.f32 %v5696_v44, %v5695_v50  ;;  %v5698_v23 = vpop.f32.mrb[70].mxu1  ;;  %2797 = vst [vmem:[%s7973_s19 + $0x20] sm:$0xff] %v2747_v12  ;;  %v2750_v46 = vadd.f32 %v2749_v21, %v7938_v40 }
 0x2a9   : > { %v5699_v30 = vpop.f32.mrb[71].mxu1  ;;  %2800 = vst [vmem:[%s7973_s19 + $0x38] sm:$0xff] %v2758_v51 }
 0x2aa   : > { %v7991_v16 = vadd.f32 %v5699_v30, %v5698_v23  ;;  %2798 = vst [vmem:[%s7973_s19 + $0x28] sm:$0xff] %v2750_v46 }
 0x2ac   : > { %v5971_v9 = vpop.f32.mrb[72].mxu0 }
 0x2ad   : > { %v2771_v4 = vadd.f32 %v5971_v9, %v7954_v61  ;;  %v2762_v24 = vpop.f32.mrb[73].mxu0 }
 0x2ae   : > { %v5701_v49 = vpop.f32.mrb[72].mxu1  ;;  %v2763_v33 = vadd.f32 %v2762_v24, %v7948_v31  ;;  %v5972_v42 = vpop.f32.mrb[74].mxu0 }
 0x2af   : > { %v5702_v1 = vpop.f32.mrb[73].mxu1  ;;  %2803 = vst [vmem:[%s7973_s19 + $0x50] sm:$0xff] %v2771_v4  ;;  %v2774_v40 = vadd.f32 %v5972_v42, %v7956_v17  ;;  %v2765_v47 = vpop.f32.mrb[75].mxu0 }
 0x2b0   : > { %v7997_v13 = vadd.f32 %v5702_v1, %v5701_v49  ;;  %v5704_v60 = vpop.f32.mrb[74].mxu1  ;;  %2801 = vst [vmem:[%s7973_s19 + $0x40] sm:$0xff] %v2763_v33  ;;  %v2766_v32 = vadd.f32 %v2765_v47, %v7950_v29 }
 0x2b1   : > { %v5705_v39 = vpop.f32.mrb[75].mxu1  ;;  %2804 = vst [vmem:[%s7973_s19 + $0x58] sm:$0xff] %v2774_v40 }
 0x2b2   : > { %v5706_v28 = vadd.f32 %v5705_v39, %v5704_v60  ;;  %2802 = vst [vmem:[%s7973_s19 + $0x48] sm:$0xff] %v2766_v32 }
 0x2b4   : > { %v5975_v61 = vpop.f32.mrb[76].mxu0 }
 0x2b5   : > { %v2787_v53 = vadd.f32 %v5975_v61, %v2690_v0  ;;  %v2778_v43 = vpop.f32.mrb[77].mxu0 }
 0x2b6   : > { %v5707_v31 = vpop.f32.mrb[76].mxu1  ;;  %v2779_v62 = vadd.f32 %v2778_v43, %v7960_v27  ;;  %v5976_v17 = vpop.f32.mrb[78].mxu0 }
 0x2b7   : > { %v5708_v8 = vpop.f32.mrb[77].mxu1  ;;  %2807 = vst [vmem:[%s7973_s19 + $0x70] sm:$0xff] %v2787_v53  ;;  %v2790_v29 = vadd.f32 %v5976_v17, %v7967_v52  ;;  %v2781_v6 = vpop.f32.mrb[79].mxu0 }
 0x2b8   : > { %v8006_v54 = vadd.f32 %v5708_v8, %v5707_v31  ;;  %v5710_v57 = vpop.f32.mrb[78].mxu1  ;;  %2805 = vst [vmem:[%s7973_s19 + $0x60] sm:$0xff] %v2779_v62  ;;  %v2782_v20 = vadd.f32 %v2781_v6, %v7962_v10 }
 0x2b9   : > { %v5711_v55 = vpop.f32.mrb[79].mxu1  ;;  %2808 = vst [vmem:[%s7973_s19 + $0x78] sm:$0xff] %v2790_v29 }
 0x2ba   : > { %v5712_v38 = vadd.f32 %v5711_v55, %v5710_v57  ;;  %2806 = vst [vmem:[%s7973_s19 + $0x68] sm:$0xff] %v2782_v20 }
 0x2bc   : > { %v5753_v7 = vpop.f32.mrb[80].mxu0 }
 0x2bd   : > { %v5754_v34 = vpop.f32.mrb[81].mxu0 }
 0x2be   : > { %v5713_v56 = vpop.f32.mrb[80].mxu1  ;;  %v5755_v27 = vadd.f32 %v5754_v34, %v5753_v7  ;;  %v5756_v0 = vpop.f32.mrb[82].mxu0 }
 0x2bf   : > { %v5714_v19 = vpop.f32.mrb[81].mxu1  ;;  %v5757_v41 = vpop.f32.mrb[83].mxu0 }
 0x2c0   : > { %v5715_v59 = vadd.f32 %v5714_v19, %v5713_v56  ;;  %v5716_v26 = vpop.f32.mrb[82].mxu1  ;;  %v4298_v52 = vadd.f32 %v5755_v27, %v7971_v25  ;;  %v5758_v14 = vadd.f32 %v5757_v41, %v5756_v0 }
 0x2c1   : > { %v5717_v37 = vpop.f32.mrb[83].mxu1 }
 0x2c2   : > { %v5718_v48 = vadd.f32 %v5717_v37, %v5716_v26  ;;  %v4301_v36 = vadd.f32 %v5758_v14, %v7979_v35 }
 0x2c4   : > { %v5759_v10 = vpop.f32.mrb[84].mxu0 }
 0x2c5   : > { %v5760_v3 = vpop.f32.mrb[85].mxu0 }
 0x2c6   : > { %v5719_v63 = vpop.f32.mrb[84].mxu1  ;;  %v5761_v11 = vadd.f32 %v5760_v3, %v5759_v10  ;;  %v5762_v22 = vpop.f32.mrb[86].mxu0 }
 0x2c7   : > { %v5720_v15 = vpop.f32.mrb[85].mxu1  ;;  %v5763_v45 = vpop.f32.mrb[87].mxu0 }
 0x2c8   : > { %v5721_v18 = vadd.f32 %v5720_v15, %v5719_v63  ;;  %v5722_v50 = vpop.f32.mrb[86].mxu1  ;;  %v4306_v44 = vadd.f32 %v5761_v11, %v7985_v5  ;;  %v5764_v12 = vadd.f32 %v5763_v45, %v5762_v22 }
 0x2c9   : > { %v5723_v58 = vpop.f32.mrb[87].mxu1 }
 0x2ca   : > { %v5724_v2 = vadd.f32 %v5723_v58, %v5722_v50  ;;  %v4309_v25 = vadd.f32 %v5764_v12, %v7991_v16 }
 0x2cc   : > { %v5765_v23 = vpop.f32.mrb[88].mxu0 }
 0x2cd   : > { %v5766_v21 = vpop.f32.mrb[89].mxu0 }
 0x2ce   : > { %v5725_v51 = vpop.f32.mrb[88].mxu1  ;;  %v5767_v30 = vadd.f32 %v5766_v21, %v5765_v23  ;;  %v5768_v46 = vpop.f32.mrb[90].mxu0 }
 0x2cf   : > { %v5726_v35 = vpop.f32.mrb[89].mxu1  ;;  %v5769_v4 = vpop.f32.mrb[91].mxu0 }
 0x2d0   : > { %v8018_v9 = vadd.f32 %v5726_v35, %v5725_v51  ;;  %v5728_v49 = vpop.f32.mrb[90].mxu1  ;;  %v4314_v1 = vadd.f32 %v5767_v30, %v7997_v13  ;;  %v5770_v33 = vadd.f32 %v5769_v4, %v5768_v46 }
 0x2d1   : > { %v5729_v24 = vpop.f32.mrb[91].mxu1 }
 0x2d2   : > { %v5730_v42 = vadd.f32 %v5729_v24, %v5728_v49  ;;  %v4317_v5 = vadd.f32 %v5770_v33, %v5706_v28 }
 0x2d4   : > { %v5771_v60 = vpop.f32.mrb[92].mxu0 }
 0x2d5   : > { %v5772_v47 = vpop.f32.mrb[93].mxu0 }
 0x2d6   : > { %v5731_v40 = vpop.f32.mrb[92].mxu1  ;;  %v5773_v39 = vadd.f32 %v5772_v47, %v5771_v60  ;;  %v5774_v32 = vpop.f32.mrb[94].mxu0 }
 0x2d7   : > { %v5732_v16 = vpop.f32.mrb[93].mxu1  ;;  %v5775_v53 = vpop.f32.mrb[95].mxu0 }
 0x2d8   : > { %v8021_v61 = vadd.f32 %v5732_v16, %v5731_v40  ;;  %v5734_v31 = vpop.f32.mrb[94].mxu1  ;;  %v8024_v8 = vadd.f32 %v5773_v39, %v8006_v54  ;;  %v5776_v62 = vadd.f32 %v5775_v53, %v5774_v32 }
 0x2d9   : > { %v5735_v43 = vpop.f32.mrb[95].mxu1 }
 0x2da   : > { %v8026_v17 = vadd.f32 %v5735_v43, %v5734_v31  ;;  %v8028_v13 = vadd.f32 %v5776_v62, %v5712_v38 }
 0x2dc   : > { %v5777_v28 = vpop.f32.mrb[96].mxu0 }
 0x2dd   : > { %v5778_v29 = vpop.f32.mrb[97].mxu0 }
 0x2de   : > { %v5817_v57 = vpop.f32.mrb[96].mxu1  ;;  %v5779_v55 = vadd.f32 %v5778_v29, %v5777_v28  ;;  %v5780_v7 = vpop.f32.mrb[98].mxu0 }
 0x2df   : > { %v5818_v6 = vpop.f32.mrb[97].mxu1  ;;  %v5781_v34 = vpop.f32.mrb[99].mxu0 }
 0x2e0   : > { %v5819_v20 = vadd.f32 %v5818_v6, %v5817_v57  ;;  %v5820_v56 = vpop.f32.mrb[98].mxu1  ;;  %v8030_v27 = vadd.f32 %v5779_v55, %v5715_v59  ;;  %v5782_v54 = vadd.f32 %v5781_v34, %v5780_v7 }
 0x2e1   : > { %v5821_v19 = vpop.f32.mrb[99].mxu1 }
 0x2e2   : > { %v8032_v0 = vadd.f32 %v5819_v20, %v4298_v52  ;;  %v5822_v26 = vadd.f32 %v5821_v19, %v5820_v56  ;;  %v8034_v41 = vadd.f32 %v5782_v54, %v5718_v48 }
 0x2e4   : > { %v8036_v38 = vadd.f32 %v5822_v26, %v4301_v36  ;;  %v5783_v37 = vpop.f32.mrb[100].mxu0 }
 0x2e5   : > { %v5784_v10 = vpop.f32.mrb[101].mxu0 }
 0x2e6   : > { %v5823_v14 = vpop.f32.mrb[100].mxu1  ;;  %v5785_v3 = vadd.f32 %v5784_v10, %v5783_v37  ;;  %v5786_v11 = vpop.f32.mrb[102].mxu0 }
 0x2e7   : > { %v5824_v63 = vpop.f32.mrb[101].mxu1  ;;  %v5787_v50 = vpop.f32.mrb[103].mxu0 }
 0x2e8   : > { %v5825_v15 = vadd.f32 %v5824_v63, %v5823_v14  ;;  %v5826_v22 = vpop.f32.mrb[102].mxu1  ;;  %v8038_v59 = vadd.f32 %v5785_v3, %v5721_v18  ;;  %v5788_v58 = vadd.f32 %v5787_v50, %v5786_v11 }
 0x2e9   : > { %v5827_v45 = vpop.f32.mrb[103].mxu1 }
 0x2ea   : > { %v8040_v52 = vadd.f32 %v5825_v15, %v4306_v44  ;;  %v5828_v12 = vadd.f32 %v5827_v45, %v5826_v22  ;;  %v8042_v48 = vadd.f32 %v5788_v58, %v5724_v2 }
 0x2ec   : > { %v8044_v36 = vadd.f32 %v5828_v12, %v4309_v25  ;;  %v5789_v23 = vpop.f32.mrb[104].mxu0 }
 0x2ed   : > { %v5790_v21 = vpop.f32.mrb[105].mxu0 }
 0x2ee   : > { %v5829_v51 = vpop.f32.mrb[104].mxu1  ;;  %v5791_v30 = vadd.f32 %v5790_v21, %v5789_v23  ;;  %v5792_v49 = vpop.f32.mrb[106].mxu0 }
 0x2ef   : > { %v5830_v35 = vpop.f32.mrb[105].mxu1  ;;  %v5793_v24 = vpop.f32.mrb[107].mxu0 }
 0x2f0   : > { %v5831_v46 = vadd.f32 %v5830_v35, %v5829_v51  ;;  %v5832_v4 = vpop.f32.mrb[106].mxu1  ;;  %v8047_v18 = vadd.f32 %v5791_v30, %v8018_v9  ;;  %v5794_v60 = vadd.f32 %v5793_v24, %v5792_v49 }
 0x2f1   : > { %v5833_v33 = vpop.f32.mrb[107].mxu1 }
 0x2f2   : > { %v8049_v44 = vadd.f32 %v5831_v46, %v4314_v1  ;;  %v5834_v2 = vadd.f32 %v5833_v33, %v5832_v4  ;;  %v8051_v40 = vadd.f32 %v5794_v60, %v5730_v42 }
 0x2f4   : > { %v8053_v25 = vadd.f32 %v5834_v2, %v4317_v5  ;;  %v5795_v47 = vpop.f32.mrb[108].mxu0 }
 0x2f5   : > { %v5796_v39 = vpop.f32.mrb[109].mxu0 }
 0x2f6   : > { %v5835_v16 = vpop.f32.mrb[108].mxu1  ;;  %v5797_v31 = vadd.f32 %v5796_v39, %v5795_v47  ;;  %v5798_v43 = vpop.f32.mrb[110].mxu0 }
 0x2f7   : > { %v5836_v32 = vpop.f32.mrb[109].mxu1  ;;  %v5799_v28 = vpop.f32.mrb[111].mxu0 }
 0x2f8   : > { %v5837_v53 = vadd.f32 %v5836_v32, %v5835_v16  ;;  %v5838_v62 = vpop.f32.mrb[110].mxu1  ;;  %v8056_v9 = vadd.f32 %v5797_v31, %v8021_v61  ;;  %v5800_v42 = vadd.f32 %v5799_v28, %v5798_v43 }
 0x2f9   : > { %v5839_v57 = vpop.f32.mrb[111].mxu1 }
 0x2fa   : > { %v8059_v1 = vadd.f32 %v5837_v53, %v8024_v8  ;;  %v5840_v29 = vadd.f32 %v5839_v57, %v5838_v62  ;;  %v8062_v5 = vadd.f32 %v5800_v42, %v8026_v17 }
 0x2fc   : > { %v8065_v6 = vadd.f32 %v5840_v29, %v8028_v13  ;;  %v5881_v20 = vpop.f32.mrb[112].mxu0 }
 0x2fd   : > { %v5882_v56 = vpop.f32.mrb[113].mxu0 }
 0x2fe   : > { %v5841_v55 = vpop.f32.mrb[112].mxu1  ;;  %v5883_v19 = vadd.f32 %v5882_v56, %v5881_v20  ;;  %v5884_v61 = vpop.f32.mrb[114].mxu0 }
 0x2ff   : > { %v5842_v7 = vpop.f32.mrb[113].mxu1  ;;  %v5885_v37 = vpop.f32.mrb[115].mxu0 }
 0x300   : > { %v5843_v34 = vadd.f32 %v5842_v7, %v5841_v55  ;;  %v5844_v54 = vpop.f32.mrb[114].mxu1  ;;  %v5886_v10 = vadd.f32 %v5885_v37, %v5884_v61  ;;  %v4492_v17 = vadd.f32 %v5883_v19, %v8032_v0 }
 0x301   : > { %v5845_v26 = vpop.f32.mrb[115].mxu1 }
 0x302   : > { %v8068_v8 = vadd.f32 %v5843_v34, %v8030_v27  ;;  %v5846_v14 = vadd.f32 %v5845_v26, %v5844_v54  ;;  %v8075_v63 = vadd.f32 %v5886_v10, %v8036_v38 }
 0x304   : > { %v8072_v13 = vadd.f32 %v5846_v14, %v8034_v41  ;;  %v5887_v15 = vpop.f32.mrb[116].mxu0 }
 0x305   : > { %v5888_v22 = vpop.f32.mrb[117].mxu0 }
 0x306   : > { %v5847_v3 = vpop.f32.mrb[116].mxu1  ;;  %v5889_v45 = vadd.f32 %v5888_v22, %v5887_v15  ;;  %v5890_v12 = vpop.f32.mrb[118].mxu0 }
 0x307   : > { %v5848_v11 = vpop.f32.mrb[117].mxu1  ;;  %v5891_v23 = vpop.f32.mrb[119].mxu0 }
 0x308   : > { %v5849_v50 = vadd.f32 %v5848_v11, %v5847_v3  ;;  %v5850_v58 = vpop.f32.mrb[118].mxu1  ;;  %v5892_v21 = vadd.f32 %v5891_v23, %v5890_v12  ;;  %v4500_v41 = vadd.f32 %v5889_v45, %v8040_v52 }
 0x309   : > { %v5851_v27 = vpop.f32.mrb[119].mxu1 }
 0x30a   : > { %v8078_v51 = vadd.f32 %v5849_v50, %v8038_v59  ;;  %v5852_v0 = vadd.f32 %v5851_v27, %v5850_v58  ;;  %v4503_v35 = vadd.f32 %v5892_v21, %v8044_v36 }
 0x30c   : > { %v8082_v38 = vadd.f32 %v5852_v0, %v8042_v48  ;;  %v5893_v46 = vpop.f32.mrb[120].mxu0 }
 0x30d   : > { %v5894_v4 = vpop.f32.mrb[121].mxu0 }
 0x30e   : > { %v5853_v30 = vpop.f32.mrb[120].mxu1  ;;  %v5895_v33 = vadd.f32 %v5894_v4, %v5893_v46  ;;  %v5896_v2 = vpop.f32.mrb[122].mxu0 }
 0x30f   : > { %v5854_v49 = vpop.f32.mrb[121].mxu1  ;;  %v5897_v59 = vpop.f32.mrb[123].mxu0 }
 0x310   : > { %v5855_v24 = vadd.f32 %v5854_v49, %v5853_v30  ;;  %v5856_v60 = vpop.f32.mrb[122].mxu1  ;;  %v5898_v52 = vadd.f32 %v5897_v59, %v5896_v2  ;;  %v4508_v48 = vadd.f32 %v5895_v33, %v8049_v44 }
 0x311   : > { %v5857_v47 = vpop.f32.mrb[123].mxu1 }
 0x312   : > { %v8086_v16 = vadd.f32 %v5855_v24, %v8047_v18  ;;  %v5858_v39 = vadd.f32 %v5857_v47, %v5856_v60  ;;  %v4511_v36 = vadd.f32 %v5898_v52, %v8053_v25 }
 0x314   : > { %v8090_v32 = vadd.f32 %v5858_v39, %v8051_v40  ;;  %v5899_v53 = vpop.f32.mrb[124].mxu0 }
 0x315   : > { %v5900_v62 = vpop.f32.mrb[125].mxu0 }
 0x316   : > { %v5859_v31 = vpop.f32.mrb[124].mxu1  ;;  %v5901_v57 = vadd.f32 %v5900_v62, %v5899_v53  ;;  %v5902_v29 = vpop.f32.mrb[126].mxu0 }
 0x317   : > { %v5860_v43 = vpop.f32.mrb[125].mxu1  ;;  %v5903_v18 = vpop.f32.mrb[127].mxu0 }
 0x318   : > { %v5861_v28 = vadd.f32 %v5860_v43, %v5859_v31  ;;  %v5862_v42 = vpop.f32.mrb[126].mxu1  ;;  %v5904_v7 = vadd.f32 %v5903_v18, %v5902_v29  ;;  %v4516_v40 = vadd.f32 %v5901_v57, %v8059_v1 }
 0x319   : > { %v5863_v55 = vpop.f32.mrb[127].mxu1 }
 0x31a   : > { %v8094_v20 = vadd.f32 %v5861_v28, %v8056_v9  ;;  %v5864_v44 = vadd.f32 %v5863_v55, %v5862_v42  ;;  %v4519_v56 = vadd.f32 %v5904_v7, %v8065_v6 }
 0x31c   : > { %v8098_v25 = vadd.f32 %v5864_v44, %v8062_v5  ;;  %v5905_v34 = vpop.f32.mrb[128].mxu0 }
 0x31d   : > { %v5906_v61 = vpop.f32.mrb[129].mxu0 }
 0x31e   : > { %v5995_v19 = vpop.f32.mrb[128].mxu1  ;;  %v5907_v37 = vadd.f32 %v5906_v61, %v5905_v34  ;;  %v5908_v14 = vpop.f32.mrb[130].mxu0 }
 0x31f   : > { %v4597_v54 = vadd.f32 %v5995_v19, %v4500_v41  ;;  %v4588_v26 = vpop.f32.mrb[129].mxu1  ;;  %v5909_v1 = vpop.f32.mrb[131].mxu0 }
 0x320   : > { %v4589_v9 = vadd.f32 %v4588_v26, %v4492_v17  ;;  %v5996_v10 = vpop.f32.mrb[130].mxu1  ;;  %v5910_v5 = vadd.f32 %v5909_v1, %v5908_v14  ;;  %v4524_v11 = vadd.f32 %v5907_v37, %v8068_v8 }
 0x321   : > { %4653 = vst [vmem:[%s7973_s19 + $0x90] sm:$0xff] %v4597_v54  ;;  %v4600_v3 = vadd.f32 %v5996_v10, %v4503_v35  ;;  %v4591_v15 = vpop.f32.mrb[131].mxu1 }
 0x322   : > { %4651 = vst [vmem:[%s7973_s19 + $0x80] sm:$0xff] %v4589_v9  ;;  %v4592_v6 = vadd.f32 %v4591_v15, %v8075_v63  ;;  %v4527_v22 = vadd.f32 %v5910_v5, %v8072_v13 }
 0x323   : > { %4654 = vst [vmem:[%s7973_s19 + $0x98] sm:$0xff] %v4600_v3 }
 0x324   : > { %4652 = vst [vmem:[%s7973_s19 + $0x88] sm:$0xff] %v4592_v6  ;;  %v5911_v50 = vpop.f32.mrb[132].mxu0 }
 0x325   : > { %v5912_v58 = vpop.f32.mrb[133].mxu0 }
 0x326   : > { %v5999_v17 = vpop.f32.mrb[132].mxu1  ;;  %v5913_v27 = vadd.f32 %v5912_v58, %v5911_v50  ;;  %v5914_v0 = vpop.f32.mrb[134].mxu0 }
 0x327   : > { %v4613_v45 = vadd.f32 %v5999_v17, %v4516_v40  ;;  %v4604_v12 = vpop.f32.mrb[133].mxu1  ;;  %v5915_v41 = vpop.f32.mrb[135].mxu0 }
 0x328   : > { %v4605_v23 = vadd.f32 %v4604_v12, %v4508_v48  ;;  %v6000_v21 = vpop.f32.mrb[134].mxu1  ;;  %v5916_v35 = vadd.f32 %v5915_v41, %v5914_v0  ;;  %v4532_v13 = vadd.f32 %v5913_v27, %v8078_v51 }
 0x329   : > { %4657 = vst [vmem:[%s7973_s19 + $0xb0] sm:$0xff] %v4613_v45  ;;  %v4616_v63 = vadd.f32 %v6000_v21, %v4519_v56  ;;  %v4607_v8 = vpop.f32.mrb[135].mxu1 }
 0x32a   : > { %4655 = vst [vmem:[%s7973_s19 + $0xa0] sm:$0xff] %v4605_v23  ;;  %v4608_v30 = vadd.f32 %v4607_v8, %v4511_v36  ;;  %v4535_v46 = vadd.f32 %v5916_v35, %v8082_v38 }
 0x32b   : > { %4658 = vst [vmem:[%s7973_s19 + $0xb8] sm:$0xff] %v4616_v63 }
 0x32c   : > { %4656 = vst [vmem:[%s7973_s19 + $0xa8] sm:$0xff] %v4608_v30  ;;  %v5917_v49 = vpop.f32.mrb[136].mxu0 }
 0x32d   : > { %v5918_v33 = vpop.f32.mrb[137].mxu0 }
 0x32e   : > { %v6003_v4 = vpop.f32.mrb[136].mxu1  ;;  %v5919_v2 = vadd.f32 %v5918_v33, %v5917_v49  ;;  %v5920_v59 = vpop.f32.mrb[138].mxu0 }
 0x32f   : > { %v4629_v24 = vadd.f32 %v6003_v4, %v4532_v13  ;;  %v4620_v60 = vpop.f32.mrb[137].mxu1  ;;  %v5921_v48 = vpop.f32.mrb[139].mxu0 }
 0x330   : > { %v4621_v47 = vadd.f32 %v4620_v60, %v4524_v11  ;;  %v6004_v39 = vpop.f32.mrb[138].mxu1  ;;  %v5922_v36 = vadd.f32 %v5921_v48, %v5920_v59  ;;  %v4540_v38 = vadd.f32 %v5919_v2, %v8086_v16 }
 0x331   : > { %4661 = vst [vmem:[%s7973_s19 + $0xd0] sm:$0xff] %v4629_v24  ;;  %v4632_v52 = vadd.f32 %v6004_v39, %v4535_v46  ;;  %v4623_v51 = vpop.f32.mrb[139].mxu1 }
 0x332   : > { %4659 = vst [vmem:[%s7973_s19 + $0xc0] sm:$0xff] %v4621_v47  ;;  %v4624_v31 = vadd.f32 %v4623_v51, %v4527_v22  ;;  %v4543_v53 = vadd.f32 %v5922_v36, %v8090_v32 }
 0x333   : > { %4662 = vst [vmem:[%s7973_s19 + $0xd8] sm:$0xff] %v4632_v52 }
 0x334   : > { %4660 = vst [vmem:[%s7973_s19 + $0xc8] sm:$0xff] %v4624_v31  ;;  %v5923_v43 = vpop.f32.mrb[140].mxu0 }
 0x335   : > { %v5924_v28 = vpop.f32.mrb[141].mxu0 }
 0x336   : > { %v6007_v62 = vpop.f32.mrb[140].mxu1  ;;  %v5925_v42 = vadd.f32 %v5924_v28, %v5923_v43  ;;  %v5926_v55 = vpop.f32.mrb[142].mxu0 }
 0x337   : > { %v4636_v57 = vpop.f32.mrb[141].mxu1  ;;  %v5927_v44 = vpop.f32.mrb[143].mxu0 }
 0x338   : > { %v4637_v29 = vadd.f32 %v4636_v57, %v4540_v38  ;;  %v6008_v18 = vpop.f32.mrb[142].mxu1  ;;  %v4548_v7 = vadd.f32 %v5925_v42, %v8094_v20  ;;  %v5928_v32 = vadd.f32 %v5927_v44, %v5926_v55 }
 0x339   : > { %v4639_v16 = vpop.f32.mrb[143].mxu1 }
 0x33a   : > { %4663 = vst [vmem:[%s7973_s19 + $0xe0] sm:$0xff] %v4637_v29  ;;  %v4640_v40 = vadd.f32 %v4639_v16, %v4543_v53  ;;  %v4645_v56 = vadd.f32 %v6007_v62, %v4548_v7  ;;  %v4551_v34 = vadd.f32 %v5928_v32, %v8098_v25 }
 0x33c   : > { %4664 = vst [vmem:[%s7973_s19 + $0xe8] sm:$0xff] %v4640_v40  ;;  %4665 = vst [vmem:[%s7973_s19 + $0xf0] sm:$0xff] %v4645_v56  ;;  %v4648_v20 = vadd.f32 %v6008_v18, %v4551_v34 }
 0x33e   : > { %4666 = vst [vmem:[%s7973_s19 + $0xf8] sm:$0xff] %v4648_v20 }
 0x33f   : > { %6451 = shalt.err (!%p6448_p11)
}
 0x340   : > { %s6452_s21 = scalar_lea.hbm %s8129_s22, 4096  ;;  %s6456_s3 = scalar_lea.hbm %s8186_s4, 8192 }
 0x341   : > { %p6453_p1 = scmp.ne.s32.totalorder %s8129_s22, %s6452_s21  ;;  %p6457_p9 = scmp.lt.u32.totalorder %s8129_s22, %s8186_s4 }
 0x342   : > { %p6458_p0 = scmp.lt.u32.totalorder %s6456_s3, %s6452_s21  ;;  %p6460_p8 = scmp.lt.u32.totalorder %s6452_s21, %s8129_s22 }
 0x343   : > { %p6454_p2 = pnand %p6453_p1, %p6672_p13 }
 0x344   : > { %p6459_p3 = por %p6458_p0, %p6457_p9 }
 0x345   : > { %p6455_p6 = pneg %p6454_p2 }
 0x346   : > { %p6461_p12 = por %p6460_p8, %p6459_p3 }
 0x348   : > { %p6462_p4 = pnand %p6461_p12, %p6455_p6 }
 0x34a   : > { %6465 = shalt.err (!%p6462_p4)
}
 0x34b   : > { %s6542_s24 = smov 128   ;;  %s6543_s30 = smov 8  }
 0x34c   : > { %6020 = dma.vmem_to_hbm [thread:$0]  (%p6672_p13), %s8131_s5, 4096, %s8129_s22, %s4668_s15, %s6542_s24, %s6542_s24, %s6543_s30  }
 0x34d PF: > { %s4698_s6 = sand.u32 1, %s6510_s25   ;;  %p8345_p5 = scmp.ne.s32.totalorder %s8239_s7, 0 }
 0x34e   : > { %p8346_p10 = scmp.ge.s32.totalorder %s6530_s0, 2  ;;  %s4699_s19 = scalar_lea.sflag [#allocation8], %s4698_s6 }
 0x350   : > { %p6034_p7 = pnand %p8346_p10, %p8345_p5 }
 0x352   : > { %6505 = dma.done.wait (!%p6034_p7), %s4699_s19, 4096  }
 0x353   : > { %6507 = vsyncadd (!%p6034_p7), %s4699_s19, 4294963200  ;;  %s27_s0 = sadd.s32 1, %s6530_s0   ;;  %s8347_s9 = sld [smem:[#allocation18_spill]] }
 0x354   : > { %p24_p11 = scmp.ge.s32.totalorder %s27_s0, 4   ;;  %s8348_s25 = smov %s6514_s26 }
 0x355   : > { %s8349_s26 = smov %s6518_s27  ;;  %s8350_s27 = smov %s6684_s14 }
 0x356   : > { %s8351_s28 = smov %s6526_s29  ;;  %26 = sbr.rel (!%p24_p11) target bundleno = 21 (0x15), region = 113 }
 0x359   : > { %s8352_s29 = smov %s8347_s9 }
 0x35d   :  { %4704 = vsyncpa [#allocation7], 1 }
 0x35e   :  { %4706 = vsyncpa [#allocation7 + $0x1], 1 }
 0x35f   :  { %4707 = vsyncpa [#allocation10], 1 }
 0x360   :  { %4709 = vsyncpa [#allocation10 + $0x1], 1 }
 0x361   :  { %4710 = vsyncpa [#allocation8], 1 }
 0x362   :  { %4712 = vsyncpa [#allocation8 + $0x1], 1 }

</bundles_post_ra>
